<compile_context>
chip_gen: v6e
topology: v6e:2x2x1
jax: 0.10.0
libtpu: 0.0.40
codegen_flags: <defaults>
</compile_context>

<pallas_src>
import numpy as np
import jax
import jax.numpy as jnp
from jax.experimental import pallas as pl
from jax.experimental.pallas import tpu as pltpu


# ----------------------------- configuration --------------------------------
DIM = 32                  # dim
RES = (8, 8)              # input_resolution (H, W)
DEPTH = 2                 # depth (block 0: shift 0, block 1: shift window//2)
NUM_HEADS = 4
WINDOW = 4                # window_size
MLP_RATIO = 4.0
HEAD_DIM = DIM // NUM_HEADS
HIDDEN = int(DIM * MLP_RATIO)
N_TOK = WINDOW * WINDOW   # tokens per window
N_WIN = (RES[0] // WINDOW) * (RES[1] // WINDOW)   # windows per image
LN_EPS = 1e-5


# ----------------------------- small helpers --------------------------------
def window_partition(x, ws):
    B, H, W, C = x.shape
    x = x.reshape(B, H // ws, ws, W // ws, ws, C)
    x = jnp.transpose(x, (0, 1, 3, 2, 4, 5))
    return x.reshape(-1, ws * ws, C)


def window_reverse(windows, ws, H, W, B):
    C = windows.shape[-1]
    x = windows.reshape(B, H // ws, W // ws, ws, ws, C)
    x = jnp.transpose(x, (0, 1, 3, 2, 4, 5))
    return x.reshape(B, H, W, C)


def relative_position_index(ws):
    coords = np.stack(np.meshgrid(np.arange(ws), np.arange(ws), indexing="ij"))
    coords_flat = coords.reshape(2, -1)
    rel = coords_flat[:, :, None] - coords_flat[:, None, :]
    rel = rel.transpose(1, 2, 0).astype(np.int64)
    rel[:, :, 0] += ws - 1
    rel[:, :, 1] += ws - 1
    rel[:, :, 0] *= 2 * ws - 1
    return rel.sum(-1)  # (ws*ws, ws*ws)


def compute_attn_mask(H, W, ws, shift):
    nW = (H // ws) * (W // ws)
    if shift == 0:
        return np.zeros((nW, ws * ws, ws * ws), np.float32)
    img_mask = np.zeros((1, H, W, 1), np.float32)
    cnt = 0
    for hs in (slice(0, -ws), slice(-ws, -shift), slice(-shift, None)):
        for wsl in (slice(0, -ws), slice(-ws, -shift), slice(-shift, None)):
            img_mask[:, hs, wsl, :] = cnt
            cnt += 1
    m = img_mask.reshape(1, H // ws, ws, W // ws, ws, 1)
    m = m.transpose(0, 1, 3, 2, 4, 5).reshape(-1, ws * ws)
    attn_mask = m[:, None, :] - m[:, :, None]
    return np.where(attn_mask != 0, -100.0, 0.0).astype(np.float32)


def gelu_tanh(x):
    c = np.float32(np.sqrt(2.0 / np.pi))
    return 0.5 * x * (1.0 + jnp.tanh(c * (x + 0.044715 * x * x * x)))


# ----------------------------- fused Pallas kernel ----------------------------
def make_fused_kernel(shifts):
    """One grid step = one image (L=64 tokens): all Swin blocks fused."""
    H, W = RES
    WS = WINDOW
    nww = W // WS

    def gather_windows(xn, shift):
        # (H*W, C) original token order -> (H*W, C) windowed order, via static
        # row slices (wrap-aware for the cyclic shift) + one concat.  Exact.
        pieces = []
        for wh in range(H // WS):
            for ww in range(nww):
                for i in range(WS):
                    hh = (wh * WS + i + shift) % H
                    base = hh * W
                    w0 = (ww * WS + shift) % W
                    if w0 + WS <= W:
                        pieces.append(xn[base + w0: base + w0 + WS, :])
                    else:
                        k = W - w0
                        pieces.append(xn[base + w0: base + W, :])
                        pieces.append(xn[base: base + (WS - k), :])
        return jnp.concatenate(pieces, axis=0)

    def scatter_windows(pw, shift):
        # (H*W, C) windowed order -> (H*W, C) original token order (inverse).
        pieces = []
        for h in range(H):
            hs = (h - shift) % H
            wh, i = hs // WS, hs % WS
            w = 0
            while w < W:
                ws_ = (w - shift) % W
                ww, j = ws_ // WS, ws_ % WS
                run = min(WS - j, W - w)
                base = (wh * nww + ww) * (WS * WS) + i * WS + j
                pieces.append(pw[base: base + run, :])
                w += run
        return jnp.concatenate(pieces, axis=0)

    def kernel(x_ref, g1_ref, b1_ref, wqkv_ref, bqkv_ref, wproj_ref, bproj_ref,
               g2_ref, b2_ref, w1_ref, bb1_ref, w2_ref, bb2_ref,
               bias_ref, mask_ref, o_ref):
        y = x_ref[...]                       # (L, C) f32 residual stream

        for d, shift in enumerate(shifts):   # DEPTH is static -> unrolled
            # ----------------------- LayerNorm 1 -----------------------
            mu = jnp.mean(y, axis=-1, keepdims=True)
            var = jnp.mean(jnp.square(y - mu), axis=-1, keepdims=True)
            xn = (y - mu) * jax.lax.rsqrt(var + LN_EPS) * g1_ref[d] + b1_ref[d]

            # shift + window partition (static slices, no matmul, no DMA)
            xnw = gather_windows(xn, shift)                       # (L, C)

            # ----------------------- fused QKV (q scale pre-folded) ----
            qkv = jnp.dot(xnw.astype(jnp.bfloat16), wqkv_ref[d],
                          preferred_element_type=jnp.float32) + bqkv_ref[d]
            qkv_b = qkv.astype(jnp.bfloat16)                      # (L, 3C)

            bias_d = bias_ref[d]                                  # (NH, N, N)

            # ----------- window attention: heads unrolled, windows batched ---
            heads = []
            for h in range(NUM_HEADS):
                c0 = h * HEAD_DIM
                q = qkv_b[:, c0:c0 + HEAD_DIM].reshape(N_WIN, N_TOK, HEAD_DIM)
                k = qkv_b[:, DIM + c0:DIM + c0 + HEAD_DIM].reshape(
                    N_WIN, N_TOK, HEAD_DIM)
                v = qkv_b[:, 2 * DIM + c0:2 * DIM + c0 + HEAD_DIM].reshape(
                    N_WIN, N_TOK, HEAD_DIM)

                s = jnp.einsum("wnd,wmd->wnm", q, k,
                               preferred_element_type=jnp.float32)  # (nW, N, N)
                s = s + bias_d[h]
                if shift > 0:                                      # static skip
                    s = s + mask_ref[...]
                s = s - jnp.max(s, axis=-1, keepdims=True)
                e = jnp.exp(s)
                # approx reciprocal (EUP): documented deviation vs exact softmax
                p = e * pl.reciprocal(jnp.sum(e, axis=-1, keepdims=True),
                                      approx=True)
                oh = jnp.einsum("wnm,wmd->wnd", p.astype(jnp.bfloat16), v,
                                preferred_element_type=jnp.float32)
                heads.append(oh.reshape(N_WIN * N_TOK, HEAD_DIM)
                               .astype(jnp.bfloat16))

            # head-major lane concat -> ONE output-projection matmul (K=C)
            attn = jnp.concatenate(heads, axis=-1)                 # (L, C) bf16
            proj_w = jnp.dot(attn, wproj_ref[d],
                             preferred_element_type=jnp.float32)   # (L, C) f32

            # window reverse + un-shift (static slices) and residual add
            proj = scatter_windows(proj_w, shift)
            y = y + proj + bproj_ref[d]

            # ----------------------- LayerNorm 2 + MLP -----------------------
            mu2 = jnp.mean(y, axis=-1, keepdims=True)
            var2 = jnp.mean(jnp.square(y - mu2), axis=-1, keepdims=True)
            xn2 = (y - mu2) * jax.lax.rsqrt(var2 + LN_EPS) * g2_ref[d] + b2_ref[d]
            hid = jnp.dot(xn2.astype(jnp.bfloat16), w1_ref[d],
                          preferred_element_type=jnp.float32) + bb1_ref[d]
            hid = gelu_tanh(hid)
            y = y + jnp.dot(hid.astype(jnp.bfloat16), w2_ref[d],
                            preferred_element_type=jnp.float32) + bb2_ref[d]

        o_ref[...] = y

    return kernel


# ----------------------------- build-time constants ---------------------------
def build_constants(block_params):
    """Host-side, one time: stacked / pre-scaled weights (bf16), rel-pos biases,
    and a single (nW, N, N) attention mask for the shifted block only."""
    H, W = RES
    shifts = [0 if i % 2 == 0 else WINDOW // 2 for i in range(DEPTH)]
    rel_idx = relative_position_index(WINDOW).reshape(-1)

    # fold q scale into the q columns of W_qkv / b_qkv (one-time transform)
    col_scale = np.concatenate([np.full((DIM,), HEAD_DIM ** -0.5, np.float32),
                                np.ones((2 * DIM,), np.float32)])

    biases = []
    for p in block_params:
        b = np.asarray(p["rel_table"])[rel_idx].reshape(N_TOK, N_TOK, NUM_HEADS)
        biases.append(b.transpose(2, 0, 1))                       # (NH, N, N)

    # only the shifted block's mask; block 0's all-zero mask is skipped statically
    mask = compute_attn_mask(H, W, WINDOW, WINDOW // 2)           # (nW, N, N)

    f32 = lambda name: jnp.stack([p[name] for p in block_params]).astype(jnp.float32)
    bf16 = lambda name: jnp.stack([p[name] for p in block_params]).astype(jnp.bfloat16)

    consts = (
        f32("g1"), f32("b1"),
        jnp.stack([p["wqkv"] * col_scale[None, :]
                   for p in block_params]).astype(jnp.bfloat16),
        jnp.stack([p["bqkv"] * col_scale
                   for p in block_params]).astype(jnp.float32),
        bf16("wproj"), f32("bproj"),
        f32("g2"), f32("b2"),
        bf16("w1"), f32("bb1"),
        bf16("w2"), f32("bb2"),
        jnp.asarray(np.stack(biases), jnp.float32),
        jnp.asarray(mask, jnp.float32),
    )
    return consts, shifts


def build_forward(block_params, batch):
    consts, shifts = build_constants(block_params)
    kernel = make_fused_kernel(shifts)
    L = RES[0] * RES[1]

    def const_spec(a):
        # full array, same block for every grid step (kept VMEM-resident)
        return pl.BlockSpec(a.shape, lambda b, _nd=a.ndim: (0,) * _nd)

    pcall = pl.pallas_call(
        kernel,
        grid=(batch,),                                   # one image per grid step
        in_specs=[pl.BlockSpec((None, L, DIM), lambda b: (b, 0, 0))]
                 + [const_spec(a) for a in consts],
        out_specs=pl.BlockSpec((None, L, DIM), lambda b: (b, 0, 0)),
        out_shape=jax.ShapeDtypeStruct((batch, L, DIM), jnp.float32),
        compiler_params=pltpu.CompilerParams(
            dimension_semantics=("parallel",)),          # v7x: 2 TCs split batch
    )

    @jax.jit
    def forward(x):
        return pcall(x, *consts)

    return forward


# ----------------------------- pure-JAX reference -----------------------------
def window_attention_ref(x_win, p, bias, mask):
    B_, N, C = x_win.shape
    hp = jax.lax.Precision.HIGHEST
    mu = x_win.mean(-1, keepdims=True)
    var = ((x_win - mu) ** 2).mean(-1, keepdims=True)
    xn = (x_win - mu) / jnp.sqrt(var + LN_EPS) * p["g1"] + p["b1"]
    qkv = jnp.einsum("bnc,cd->bnd", xn, p["wqkv"], precision=hp) + p["bqkv"]
    qkv = qkv.reshape(B_, N, 3, NUM_HEADS, HEAD_DIM).transpose(2, 0, 3, 1, 4)
    q, k, v = qkv[0] * (HEAD_DIM ** -0.5), qkv[1], qkv[2]
    attn = jnp.einsum("bhnd,bhmd->bhnm", q, k, precision=hp) + bias[None]
    nW = mask.shape[0]
    attn = attn.reshape(B_ // nW, nW, NUM_HEADS, N, N) + mask[None, :, None]
    attn = jax.nn.softmax(attn.reshape(B_, NUM_HEADS, N, N), axis=-1)
    out = jnp.einsum("bhnm,bhmd->bhnd", attn, v, precision=hp)
    out = out.transpose(0, 2, 1, 3).reshape(B_, N, C)
    return jnp.einsum("bnc,cd->bnd", out, p["wproj"], precision=hp) + p["bproj"]


def mlp_block_ref(shortcut, attn_sp, p):
    hp = jax.lax.Precision.HIGHEST
    x = shortcut + attn_sp
    mu = x.mean(-1, keepdims=True)
    var = ((x - mu) ** 2).mean(-1, keepdims=True)
    xn = (x - mu) / jnp.sqrt(var + LN_EPS) * p["g2"] + p["b2"]
    h = gelu_tanh(jnp.einsum("blc,ch->blh", xn, p["w1"], precision=hp) + p["bb1"])
    y = jnp.einsum("blh,hc->blc", h, p["w2"], precision=hp) + p["bb2"]
    return x + y


def maskgit_forward_ref(x, block_params):
    H, W = RES
    B, L, C = x.shape
    rel_idx = relative_position_index(WINDOW)
    for i, p in enumerate(block_params):
        shift = 0 if i % 2 == 0 else WINDOW // 2
        bias = p["rel_table"][rel_idx.reshape(-1)].reshape(
            N_TOK, N_TOK, NUM_HEADS).transpose(2, 0, 1)
        mask = jnp.asarray(compute_attn_mask(H, W, WINDOW, shift))
        shortcut = x
        xs = x.reshape(B, H, W, C)
        if shift > 0:
            xs = jnp.roll(xs, (-shift, -shift), axis=(1, 2))
        xw = window_partition(xs, WINDOW)
        aw = window_attention_ref(xw, p, bias, mask)
        xs = window_reverse(aw, WINDOW, H, W, B)
        if shift > 0:
            xs = jnp.roll(xs, (shift, shift), axis=(1, 2))
        attn_sp = xs.reshape(B, L, C)
        x = mlp_block_ref(shortcut, attn_sp, p)
    return x   # downsample is None -> identity


# ----------------------------- param init -------------------------------------
def init_block_params(key):
    ks = jax.random.split(key, 12)
    s = 0.02
    f32 = jnp.float32
    return dict(
        g1=1.0 + s * jax.random.normal(ks[0], (DIM,), f32),
        b1=s * jax.random.normal(ks[1], (DIM,), f32),
        wqkv=s * jax.random.normal(ks[2], (DIM, 3 * DIM), f32),
        bqkv=s * jax.random.normal(ks[3], (3 * DIM,), f32),
        wproj=s * jax.random.normal(ks[4], (DIM, DIM), f32),
        bproj=s * jax.random.normal(ks[5], (DIM,), f32),
        g2=1.0 + s * jax.random.normal(ks[6], (DIM,), f32),
        b2=s * jax.random.normal(ks[7], (DIM,), f32),
        w1=s * jax.random.normal(ks[8], (DIM, HIDDEN), f32),
        bb1=s * jax.random.normal(ks[9], (HIDDEN,), f32),
        w2=s * jax.random.normal(ks[10], (HIDDEN, DIM), f32),
        bb2=s * jax.random.normal(ks[11], (DIM,), f32),
        rel_table=s * jax.random.normal(
            jax.random.fold_in(key, 99), ((2 * WINDOW - 1) ** 2, NUM_HEADS), f32),
    )


# ----------------------------- main --------------------------------------------
if __name__ == "__main__":
    key = jax.random.PRNGKey(0)
    kx, kp = jax.random.split(key)
    B = 2
    L = RES[0] * RES[1]
    x = jax.random.normal(kx, (B, L, DIM), jnp.float32)

    block_params = [init_block_params(jax.random.fold_in(kp, i)) for i in range(DEPTH)]

    forward = build_forward(block_params, B)       # constants built once here
    out = jax.block_until_ready(forward(x))

    ref = jax.block_until_ready(maskgit_forward_ref(x, block_params))
    # bf16 MXU operands (f32 accumulate) + approx-reciprocal softmax + tanh GELU
    np.testing.assert_allclose(np.asarray(out), np.asarray(ref), rtol=3e-3, atol=3e-3)

    print("KERNEL_OK")
</pallas_src>

<mosaic_0001>
module attributes {stable_mosaic.version = 11 : i64} {
  func.func @kernel(%arg0: i32, %arg1: memref<1x64x32xf32, #tpu.memory_space<vmem>>, %arg2: memref<2x32xf32, #tpu.memory_space<vmem>>, %arg3: memref<2x32xf32, #tpu.memory_space<vmem>>, %arg4: memref<2x32x96xbf16, #tpu.memory_space<vmem>>, %arg5: memref<2x96xf32, #tpu.memory_space<vmem>>, %arg6: memref<2x32x32xbf16, #tpu.memory_space<vmem>>, %arg7: memref<2x32xf32, #tpu.memory_space<vmem>>, %arg8: memref<2x32xf32, #tpu.memory_space<vmem>>, %arg9: memref<2x32xf32, #tpu.memory_space<vmem>>, %arg10: memref<2x32x128xbf16, #tpu.memory_space<vmem>>, %arg11: memref<2x128xf32, #tpu.memory_space<vmem>>, %arg12: memref<2x128x32xbf16, #tpu.memory_space<vmem>>, %arg13: memref<2x32xf32, #tpu.memory_space<vmem>>, %arg14: memref<2x4x16x16xf32, #tpu.memory_space<vmem>>, %arg15: memref<4x16x16xf32, #tpu.memory_space<vmem>>, %arg16: memref<1x64x32xf32, #tpu.memory_space<vmem>>) attributes {dimension_semantics = [#tpu.dimension_semantics<parallel>], iteration_bounds = array<i64: 2>, scalar_prefetch = 0 : i64, scratch_operands = 0 : i64, tpu.core_type = #tpu.core_type<tc>, window_params = [{transform_indices = @transform_0, window_bounds = array<i64: 1, 64, 32>}, {pipeline_mode = #tpu.pipeline_mode<synchronous>, transform_indices = @transform_1, window_bounds = array<i64: 2, 32>}, {pipeline_mode = #tpu.pipeline_mode<synchronous>, transform_indices = @transform_2, window_bounds = array<i64: 2, 32>}, {pipeline_mode = #tpu.pipeline_mode<synchronous>, transform_indices = @transform_3, window_bounds = array<i64: 2, 32, 96>}, {pipeline_mode = #tpu.pipeline_mode<synchronous>, transform_indices = @transform_4, window_bounds = array<i64: 2, 96>}, {pipeline_mode = #tpu.pipeline_mode<synchronous>, transform_indices = @transform_5, window_bounds = array<i64: 2, 32, 32>}, {pipeline_mode = #tpu.pipeline_mode<synchronous>, transform_indices = @transform_6, window_bounds = array<i64: 2, 32>}, {pipeline_mode = #tpu.pipeline_mode<synchronous>, transform_indices = @transform_7, window_bounds = array<i64: 2, 32>}, {pipeline_mode = #tpu.pipeline_mode<synchronous>, transform_indices = @transform_8, window_bounds = array<i64: 2, 32>}, {pipeline_mode = #tpu.pipeline_mode<synchronous>, transform_indices = @transform_9, window_bounds = array<i64: 2, 32, 128>}, {pipeline_mode = #tpu.pipeline_mode<synchronous>, transform_indices = @transform_10, window_bounds = array<i64: 2, 128>}, {pipeline_mode = #tpu.pipeline_mode<synchronous>, transform_indices = @transform_11, window_bounds = array<i64: 2, 128, 32>}, {pipeline_mode = #tpu.pipeline_mode<synchronous>, transform_indices = @transform_12, window_bounds = array<i64: 2, 32>}, {pipeline_mode = #tpu.pipeline_mode<synchronous>, transform_indices = @transform_13, window_bounds = array<i64: 2, 4, 16, 16>}, {pipeline_mode = #tpu.pipeline_mode<synchronous>, transform_indices = @transform_14, window_bounds = array<i64: 4, 16, 16>}, {transform_indices = @transform_15, window_bounds = array<i64: 1, 64, 32>}]} {
    %c0 = arith.constant 0 : index
    %c0_0 = arith.constant 0 : index
    %c0_1 = arith.constant 0 : index
    %0 = vector.load %arg1[%c0, %c0_0, %c0_1] : memref<1x64x32xf32, #tpu.memory_space<vmem>>, vector<1x64x32xf32>
    %1 = vector.shape_cast %0 : vector<1x64x32xf32> to vector<64x32xf32>
    %cst = arith.constant dense<0.000000e+00> : vector<64xf32>
    %2 = vector.multi_reduction <add>, %1, %cst [1] : vector<64x32xf32> to vector<64xf32>
    %3 = vector.shape_cast %2 : vector<64xf32> to vector<64x1xf32>
    %cst_2 = arith.constant 3.200000e+01 : f32
    %4 = vector.broadcast %cst_2 : f32 to vector<64x1xf32>
    %5 = arith.divf %3, %4 : vector<64x1xf32>
    %6 = vector.broadcast %5 : vector<64x1xf32> to vector<64x32xf32>
    %7 = arith.subf %1, %6 : vector<64x32xf32>
    %8 = arith.mulf %7, %7 : vector<64x32xf32>
    %cst_3 = arith.constant dense<0.000000e+00> : vector<64xf32>
    %9 = vector.multi_reduction <add>, %8, %cst_3 [1] : vector<64x32xf32> to vector<64xf32>
    %10 = vector.shape_cast %9 : vector<64xf32> to vector<64x1xf32>
    %cst_4 = arith.constant 3.200000e+01 : f32
    %11 = vector.broadcast %cst_4 : f32 to vector<64x1xf32>
    %12 = arith.divf %10, %11 : vector<64x1xf32>
    %13 = vector.broadcast %5 : vector<64x1xf32> to vector<64x32xf32>
    %14 = arith.subf %1, %13 : vector<64x32xf32>
    %cst_5 = arith.constant 9.99999974E-6 : f32
    %15 = vector.broadcast %cst_5 : f32 to vector<64x1xf32>
    %16 = arith.addf %12, %15 : vector<64x1xf32>
    %17 = math.rsqrt %16 : vector<64x1xf32>
    %18 = vector.broadcast %17 : vector<64x1xf32> to vector<64x32xf32>
    %19 = arith.mulf %14, %18 : vector<64x32xf32>
    %c0_6 = arith.constant 0 : index
    %c0_7 = arith.constant 0 : index
    %20 = vector.load %arg2[%c0_6, %c0_7] : memref<2x32xf32, #tpu.memory_space<vmem>>, vector<1x32xf32>
    %21 = vector.shape_cast %20 : vector<1x32xf32> to vector<32xf32>
    %22 = vector.shape_cast %21 : vector<32xf32> to vector<1x32xf32>
    %23 = vector.broadcast %22 : vector<1x32xf32> to vector<64x32xf32>
    %24 = arith.mulf %19, %23 : vector<64x32xf32>
    %c0_8 = arith.constant 0 : index
    %c0_9 = arith.constant 0 : index
    %25 = vector.load %arg3[%c0_8, %c0_9] : memref<2x32xf32, #tpu.memory_space<vmem>>, vector<1x32xf32>
    %26 = vector.shape_cast %25 : vector<1x32xf32> to vector<32xf32>
    %27 = vector.shape_cast %26 : vector<32xf32> to vector<1x32xf32>
    %28 = vector.broadcast %27 : vector<1x32xf32> to vector<64x32xf32>
    %29 = arith.addf %24, %28 : vector<64x32xf32>
    %30 = vector.extract_strided_slice %29 {offsets = [0, 0], sizes = [4, 32], strides = [1, 1]} : vector<64x32xf32> to vector<4x32xf32>
    %31 = vector.extract_strided_slice %29 {offsets = [8, 0], sizes = [4, 32], strides = [1, 1]} : vector<64x32xf32> to vector<4x32xf32>
    %32 = vector.extract_strided_slice %29 {offsets = [16, 0], sizes = [4, 32], strides = [1, 1]} : vector<64x32xf32> to vector<4x32xf32>
    %33 = vector.extract_strided_slice %29 {offsets = [24, 0], sizes = [4, 32], strides = [1, 1]} : vector<64x32xf32> to vector<4x32xf32>
    %34 = vector.extract_strided_slice %29 {offsets = [4, 0], sizes = [4, 32], strides = [1, 1]} : vector<64x32xf32> to vector<4x32xf32>
    %35 = vector.extract_strided_slice %29 {offsets = [12, 0], sizes = [4, 32], strides = [1, 1]} : vector<64x32xf32> to vector<4x32xf32>
    %36 = vector.extract_strided_slice %29 {offsets = [20, 0], sizes = [4, 32], strides = [1, 1]} : vector<64x32xf32> to vector<4x32xf32>
    %37 = vector.extract_strided_slice %29 {offsets = [28, 0], sizes = [4, 32], strides = [1, 1]} : vector<64x32xf32> to vector<4x32xf32>
    %38 = vector.extract_strided_slice %29 {offsets = [32, 0], sizes = [4, 32], strides = [1, 1]} : vector<64x32xf32> to vector<4x32xf32>
    %39 = vector.extract_strided_slice %29 {offsets = [40, 0], sizes = [4, 32], strides = [1, 1]} : vector<64x32xf32> to vector<4x32xf32>
    %40 = vector.extract_strided_slice %29 {offsets = [48, 0], sizes = [4, 32], strides = [1, 1]} : vector<64x32xf32> to vector<4x32xf32>
    %41 = vector.extract_strided_slice %29 {offsets = [56, 0], sizes = [4, 32], strides = [1, 1]} : vector<64x32xf32> to vector<4x32xf32>
    %42 = vector.extract_strided_slice %29 {offsets = [36, 0], sizes = [4, 32], strides = [1, 1]} : vector<64x32xf32> to vector<4x32xf32>
    %43 = vector.extract_strided_slice %29 {offsets = [44, 0], sizes = [4, 32], strides = [1, 1]} : vector<64x32xf32> to vector<4x32xf32>
    %44 = vector.extract_strided_slice %29 {offsets = [52, 0], sizes = [4, 32], strides = [1, 1]} : vector<64x32xf32> to vector<4x32xf32>
    %45 = vector.extract_strided_slice %29 {offsets = [60, 0], sizes = [4, 32], strides = [1, 1]} : vector<64x32xf32> to vector<4x32xf32>
    %46 = tpu.concatenate %30, %31, %32, %33, %34, %35, %36, %37, %38, %39, %40, %41, %42, %43, %44, %45 in 0 : vector<4x32xf32>, vector<4x32xf32>, vector<4x32xf32>, vector<4x32xf32>, vector<4x32xf32>, vector<4x32xf32>, vector<4x32xf32>, vector<4x32xf32>, vector<4x32xf32>, vector<4x32xf32>, vector<4x32xf32>, vector<4x32xf32>, vector<4x32xf32>, vector<4x32xf32>, vector<4x32xf32>, vector<4x32xf32> -> vector<64x32xf32>
    %47 = arith.truncf %46 : vector<64x32xf32> to vector<64x32xbf16>
    %c0_10 = arith.constant 0 : index
    %c0_11 = arith.constant 0 : index
    %c0_12 = arith.constant 0 : index
    %48 = vector.load %arg4[%c0_10, %c0_11, %c0_12] : memref<2x32x96xbf16, #tpu.memory_space<vmem>>, vector<1x32x96xbf16>
    %49 = vector.shape_cast %48 : vector<1x32x96xbf16> to vector<32x96xbf16>
    %cst_13 = arith.constant dense<0.000000e+00> : vector<64x96xf32>
    %50 = tpu.matmul %47, %49, %cst_13 {dimension_numbers = #tpu.dot_dimension_numbers<[1], [0], [0], [1], [0, 0, 1, 1], [], []>} : vector<64x32xbf16>, vector<32x96xbf16>, vector<64x96xf32> -> vector<64x96xf32>
    %c0_14 = arith.constant 0 : index
    %c0_15 = arith.constant 0 : index
    %51 = vector.load %arg5[%c0_14, %c0_15] : memref<2x96xf32, #tpu.memory_space<vmem>>, vector<1x96xf32>
    %52 = vector.shape_cast %51 : vector<1x96xf32> to vector<96xf32>
    %53 = vector.shape_cast %52 : vector<96xf32> to vector<1x96xf32>
    %54 = vector.broadcast %53 : vector<1x96xf32> to vector<64x96xf32>
    %55 = arith.addf %50, %54 : vector<64x96xf32>
    %56 = arith.truncf %55 : vector<64x96xf32> to vector<64x96xbf16>
    %c0_16 = arith.constant 0 : index
    %c0_17 = arith.constant 0 : index
    %c0_18 = arith.constant 0 : index
    %c0_19 = arith.constant 0 : index
    %57 = vector.load %arg14[%c0_16, %c0_17, %c0_18, %c0_19] : memref<2x4x16x16xf32, #tpu.memory_space<vmem>>, vector<1x4x16x16xf32>
    %58 = vector.shape_cast %57 : vector<1x4x16x16xf32> to vector<4x16x16xf32>
    %59 = vector.extract_strided_slice %56 {offsets = [0, 0], sizes = [64, 8], strides = [1, 1]} : vector<64x96xbf16> to vector<64x8xbf16>
    %60 = vector.shape_cast %59 : vector<64x8xbf16> to vector<4x16x8xbf16>
    %61 = vector.extract_strided_slice %56 {offsets = [0, 32], sizes = [64, 8], strides = [1, 1]} : vector<64x96xbf16> to vector<64x8xbf16>
    %62 = vector.shape_cast %61 : vector<64x8xbf16> to vector<4x16x8xbf16>
    %63 = vector.extract_strided_slice %56 {offsets = [0, 64], sizes = [64, 8], strides = [1, 1]} : vector<64x96xbf16> to vector<64x8xbf16>
    %64 = vector.shape_cast %63 : vector<64x8xbf16> to vector<4x16x8xbf16>
    "tpu.trace_start"() <{level = 10 : i32, message = "wnd,wmd->wnm"}> : () -> ()
    %cst_20 = arith.constant dense<0.000000e+00> : vector<4x16x16xf32>
    %65 = tpu.matmul %60, %62, %cst_20 {dimension_numbers = #tpu.dot_dimension_numbers<[2], [2], [1], [1], [0, 0, 0, 1, 1, 1], [0], [0]>} : vector<4x16x8xbf16>, vector<4x16x8xbf16>, vector<4x16x16xf32> -> vector<4x16x16xf32>
    "tpu.trace_stop"() : () -> ()
    %66 = vector.extract_strided_slice %58 {offsets = [0, 0, 0], sizes = [1, 16, 16], strides = [1, 1, 1]} : vector<4x16x16xf32> to vector<1x16x16xf32>
    %67 = vector.shape_cast %66 : vector<1x16x16xf32> to vector<16x16xf32>
    %68 = vector.shape_cast %67 : vector<16x16xf32> to vector<1x16x16xf32>
    %69 = vector.broadcast %68 : vector<1x16x16xf32> to vector<4x16x16xf32>
    %70 = arith.addf %65, %69 : vector<4x16x16xf32>
    %cst_21 = arith.constant dense<0xFF800000> : vector<4x16xf32>
    %71 = vector.multi_reduction <maximumf>, %70, %cst_21 [2] : vector<4x16x16xf32> to vector<4x16xf32>
    %72 = vector.shape_cast %71 : vector<4x16xf32> to vector<4x16x1xf32>
    %73 = vector.broadcast %72 : vector<4x16x1xf32> to vector<4x16x16xf32>
    %74 = arith.subf %70, %73 : vector<4x16x16xf32>
    %75 = math.exp %74 : vector<4x16x16xf32>
    %cst_22 = arith.constant dense<0.000000e+00> : vector<4x16xf32>
    %76 = vector.multi_reduction <add>, %75, %cst_22 [2] : vector<4x16x16xf32> to vector<4x16xf32>
    %77 = vector.shape_cast %76 : vector<4x16xf32> to vector<4x16x1xf32>
    %78 = tpu.reciprocal %77 {approx = true} : vector<4x16x1xf32> -> vector<4x16x1xf32>
    %79 = vector.broadcast %78 : vector<4x16x1xf32> to vector<4x16x16xf32>
    %80 = arith.mulf %75, %79 : vector<4x16x16xf32>
    %81 = arith.truncf %80 : vector<4x16x16xf32> to vector<4x16x16xbf16>
    "tpu.trace_start"() <{level = 10 : i32, message = "wnm,wmd->wnd"}> : () -> ()
    %cst_23 = arith.constant dense<0.000000e+00> : vector<4x16x8xf32>
    %82 = tpu.matmul %81, %64, %cst_23 {dimension_numbers = #tpu.dot_dimension_numbers<[2], [1], [1], [2], [0, 0, 0, 1, 1, 2], [0], [0]>} : vector<4x16x16xbf16>, vector<4x16x8xbf16>, vector<4x16x8xf32> -> vector<4x16x8xf32>
    "tpu.trace_stop"() : () -> ()
    %83 = vector.shape_cast %82 : vector<4x16x8xf32> to vector<64x8xf32>
    %84 = arith.truncf %83 : vector<64x8xf32> to vector<64x8xbf16>
    %85 = vector.extract_strided_slice %56 {offsets = [0, 8], sizes = [64, 8], strides = [1, 1]} : vector<64x96xbf16> to vector<64x8xbf16>
    %86 = vector.shape_cast %85 : vector<64x8xbf16> to vector<4x16x8xbf16>
    %87 = vector.extract_strided_slice %56 {offsets = [0, 40], sizes = [64, 8], strides = [1, 1]} : vector<64x96xbf16> to vector<64x8xbf16>
    %88 = vector.shape_cast %87 : vector<64x8xbf16> to vector<4x16x8xbf16>
    %89 = vector.extract_strided_slice %56 {offsets = [0, 72], sizes = [64, 8], strides = [1, 1]} : vector<64x96xbf16> to vector<64x8xbf16>
    %90 = vector.shape_cast %89 : vector<64x8xbf16> to vector<4x16x8xbf16>
    "tpu.trace_start"() <{level = 10 : i32, message = "wnd,wmd->wnm"}> : () -> ()
    %cst_24 = arith.constant dense<0.000000e+00> : vector<4x16x16xf32>
    %91 = tpu.matmul %86, %88, %cst_24 {dimension_numbers = #tpu.dot_dimension_numbers<[2], [2], [1], [1], [0, 0, 0, 1, 1, 1], [0], [0]>} : vector<4x16x8xbf16>, vector<4x16x8xbf16>, vector<4x16x16xf32> -> vector<4x16x16xf32>
    "tpu.trace_stop"() : () -> ()
    %92 = vector.extract_strided_slice %58 {offsets = [1, 0, 0], sizes = [1, 16, 16], strides = [1, 1, 1]} : vector<4x16x16xf32> to vector<1x16x16xf32>
    %93 = vector.shape_cast %92 : vector<1x16x16xf32> to vector<16x16xf32>
    %94 = vector.shape_cast %93 : vector<16x16xf32> to vector<1x16x16xf32>
    %95 = vector.broadcast %94 : vector<1x16x16xf32> to vector<4x16x16xf32>
    %96 = arith.addf %91, %95 : vector<4x16x16xf32>
    %cst_25 = arith.constant dense<0xFF800000> : vector<4x16xf32>
    %97 = vector.multi_reduction <maximumf>, %96, %cst_25 [2] : vector<4x16x16xf32> to vector<4x16xf32>
    %98 = vector.shape_cast %97 : vector<4x16xf32> to vector<4x16x1xf32>
    %99 = vector.broadcast %98 : vector<4x16x1xf32> to vector<4x16x16xf32>
    %100 = arith.subf %96, %99 : vector<4x16x16xf32>
    %101 = math.exp %100 : vector<4x16x16xf32>
    %cst_26 = arith.constant dense<0.000000e+00> : vector<4x16xf32>
    %102 = vector.multi_reduction <add>, %101, %cst_26 [2] : vector<4x16x16xf32> to vector<4x16xf32>
    %103 = vector.shape_cast %102 : vector<4x16xf32> to vector<4x16x1xf32>
    %104 = tpu.reciprocal %103 {approx = true} : vector<4x16x1xf32> -> vector<4x16x1xf32>
    %105 = vector.broadcast %104 : vector<4x16x1xf32> to vector<4x16x16xf32>
    %106 = arith.mulf %101, %105 : vector<4x16x16xf32>
    %107 = arith.truncf %106 : vector<4x16x16xf32> to vector<4x16x16xbf16>
    "tpu.trace_start"() <{level = 10 : i32, message = "wnm,wmd->wnd"}> : () -> ()
    %cst_27 = arith.constant dense<0.000000e+00> : vector<4x16x8xf32>
    %108 = tpu.matmul %107, %90, %cst_27 {dimension_numbers = #tpu.dot_dimension_numbers<[2], [1], [1], [2], [0, 0, 0, 1, 1, 2], [0], [0]>} : vector<4x16x16xbf16>, vector<4x16x8xbf16>, vector<4x16x8xf32> -> vector<4x16x8xf32>
    "tpu.trace_stop"() : () -> ()
    %109 = vector.shape_cast %108 : vector<4x16x8xf32> to vector<64x8xf32>
    %110 = arith.truncf %109 : vector<64x8xf32> to vector<64x8xbf16>
    %111 = vector.extract_strided_slice %56 {offsets = [0, 16], sizes = [64, 8], strides = [1, 1]} : vector<64x96xbf16> to vector<64x8xbf16>
    %112 = vector.shape_cast %111 : vector<64x8xbf16> to vector<4x16x8xbf16>
    %113 = vector.extract_strided_slice %56 {offsets = [0, 48], sizes = [64, 8], strides = [1, 1]} : vector<64x96xbf16> to vector<64x8xbf16>
    %114 = vector.shape_cast %113 : vector<64x8xbf16> to vector<4x16x8xbf16>
    %115 = vector.extract_strided_slice %56 {offsets = [0, 80], sizes = [64, 8], strides = [1, 1]} : vector<64x96xbf16> to vector<64x8xbf16>
    %116 = vector.shape_cast %115 : vector<64x8xbf16> to vector<4x16x8xbf16>
    "tpu.trace_start"() <{level = 10 : i32, message = "wnd,wmd->wnm"}> : () -> ()
    %cst_28 = arith.constant dense<0.000000e+00> : vector<4x16x16xf32>
    %117 = tpu.matmul %112, %114, %cst_28 {dimension_numbers = #tpu.dot_dimension_numbers<[2], [2], [1], [1], [0, 0, 0, 1, 1, 1], [0], [0]>} : vector<4x16x8xbf16>, vector<4x16x8xbf16>, vector<4x16x16xf32> -> vector<4x16x16xf32>
    "tpu.trace_stop"() : () -> ()
    %118 = vector.extract_strided_slice %58 {offsets = [2, 0, 0], sizes = [1, 16, 16], strides = [1, 1, 1]} : vector<4x16x16xf32> to vector<1x16x16xf32>
    %119 = vector.shape_cast %118 : vector<1x16x16xf32> to vector<16x16xf32>
    %120 = vector.shape_cast %119 : vector<16x16xf32> to vector<1x16x16xf32>
    %121 = vector.broadcast %120 : vector<1x16x16xf32> to vector<4x16x16xf32>
    %122 = arith.addf %117, %121 : vector<4x16x16xf32>
    %cst_29 = arith.constant dense<0xFF800000> : vector<4x16xf32>
    %123 = vector.multi_reduction <maximumf>, %122, %cst_29 [2] : vector<4x16x16xf32> to vector<4x16xf32>
    %124 = vector.shape_cast %123 : vector<4x16xf32> to vector<4x16x1xf32>
    %125 = vector.broadcast %124 : vector<4x16x1xf32> to vector<4x16x16xf32>
    %126 = arith.subf %122, %125 : vector<4x16x16xf32>
    %127 = math.exp %126 : vector<4x16x16xf32>
    %cst_30 = arith.constant dense<0.000000e+00> : vector<4x16xf32>
    %128 = vector.multi_reduction <add>, %127, %cst_30 [2] : vector<4x16x16xf32> to vector<4x16xf32>
    %129 = vector.shape_cast %128 : vector<4x16xf32> to vector<4x16x1xf32>
    %130 = tpu.reciprocal %129 {approx = true} : vector<4x16x1xf32> -> vector<4x16x1xf32>
    %131 = vector.broadcast %130 : vector<4x16x1xf32> to vector<4x16x16xf32>
    %132 = arith.mulf %127, %131 : vector<4x16x16xf32>
    %133 = arith.truncf %132 : vector<4x16x16xf32> to vector<4x16x16xbf16>
    "tpu.trace_start"() <{level = 10 : i32, message = "wnm,wmd->wnd"}> : () -> ()
    %cst_31 = arith.constant dense<0.000000e+00> : vector<4x16x8xf32>
    %134 = tpu.matmul %133, %116, %cst_31 {dimension_numbers = #tpu.dot_dimension_numbers<[2], [1], [1], [2], [0, 0, 0, 1, 1, 2], [0], [0]>} : vector<4x16x16xbf16>, vector<4x16x8xbf16>, vector<4x16x8xf32> -> vector<4x16x8xf32>
    "tpu.trace_stop"() : () -> ()
    %135 = vector.shape_cast %134 : vector<4x16x8xf32> to vector<64x8xf32>
    %136 = arith.truncf %135 : vector<64x8xf32> to vector<64x8xbf16>
    %137 = vector.extract_strided_slice %56 {offsets = [0, 24], sizes = [64, 8], strides = [1, 1]} : vector<64x96xbf16> to vector<64x8xbf16>
    %138 = vector.shape_cast %137 : vector<64x8xbf16> to vector<4x16x8xbf16>
    %139 = vector.extract_strided_slice %56 {offsets = [0, 56], sizes = [64, 8], strides = [1, 1]} : vector<64x96xbf16> to vector<64x8xbf16>
    %140 = vector.shape_cast %139 : vector<64x8xbf16> to vector<4x16x8xbf16>
    %141 = vector.extract_strided_slice %56 {offsets = [0, 88], sizes = [64, 8], strides = [1, 1]} : vector<64x96xbf16> to vector<64x8xbf16>
    %142 = vector.shape_cast %141 : vector<64x8xbf16> to vector<4x16x8xbf16>
    "tpu.trace_start"() <{level = 10 : i32, message = "wnd,wmd->wnm"}> : () -> ()
    %cst_32 = arith.constant dense<0.000000e+00> : vector<4x16x16xf32>
    %143 = tpu.matmul %138, %140, %cst_32 {dimension_numbers = #tpu.dot_dimension_numbers<[2], [2], [1], [1], [0, 0, 0, 1, 1, 1], [0], [0]>} : vector<4x16x8xbf16>, vector<4x16x8xbf16>, vector<4x16x16xf32> -> vector<4x16x16xf32>
    "tpu.trace_stop"() : () -> ()
    %144 = vector.extract_strided_slice %58 {offsets = [3, 0, 0], sizes = [1, 16, 16], strides = [1, 1, 1]} : vector<4x16x16xf32> to vector<1x16x16xf32>
    %145 = vector.shape_cast %144 : vector<1x16x16xf32> to vector<16x16xf32>
    %146 = vector.shape_cast %145 : vector<16x16xf32> to vector<1x16x16xf32>
    %147 = vector.broadcast %146 : vector<1x16x16xf32> to vector<4x16x16xf32>
    %148 = arith.addf %143, %147 : vector<4x16x16xf32>
    %cst_33 = arith.constant dense<0xFF800000> : vector<4x16xf32>
    %149 = vector.multi_reduction <maximumf>, %148, %cst_33 [2] : vector<4x16x16xf32> to vector<4x16xf32>
    %150 = vector.shape_cast %149 : vector<4x16xf32> to vector<4x16x1xf32>
    %151 = vector.broadcast %150 : vector<4x16x1xf32> to vector<4x16x16xf32>
    %152 = arith.subf %148, %151 : vector<4x16x16xf32>
    %153 = math.exp %152 : vector<4x16x16xf32>
    %cst_34 = arith.constant dense<0.000000e+00> : vector<4x16xf32>
    %154 = vector.multi_reduction <add>, %153, %cst_34 [2] : vector<4x16x16xf32> to vector<4x16xf32>
    %155 = vector.shape_cast %154 : vector<4x16xf32> to vector<4x16x1xf32>
    %156 = tpu.reciprocal %155 {approx = true} : vector<4x16x1xf32> -> vector<4x16x1xf32>
    %157 = vector.broadcast %156 : vector<4x16x1xf32> to vector<4x16x16xf32>
    %158 = arith.mulf %153, %157 : vector<4x16x16xf32>
    %159 = arith.truncf %158 : vector<4x16x16xf32> to vector<4x16x16xbf16>
    "tpu.trace_start"() <{level = 10 : i32, message = "wnm,wmd->wnd"}> : () -> ()
    %cst_35 = arith.constant dense<0.000000e+00> : vector<4x16x8xf32>
    %160 = tpu.matmul %159, %142, %cst_35 {dimension_numbers = #tpu.dot_dimension_numbers<[2], [1], [1], [2], [0, 0, 0, 1, 1, 2], [0], [0]>} : vector<4x16x16xbf16>, vector<4x16x8xbf16>, vector<4x16x8xf32> -> vector<4x16x8xf32>
    "tpu.trace_stop"() : () -> ()
    %161 = vector.shape_cast %160 : vector<4x16x8xf32> to vector<64x8xf32>
    %162 = arith.truncf %161 : vector<64x8xf32> to vector<64x8xbf16>
    %163 = tpu.concatenate %84, %110, %136, %162 in 1 : vector<64x8xbf16>, vector<64x8xbf16>, vector<64x8xbf16>, vector<64x8xbf16> -> vector<64x32xbf16>
    %c0_36 = arith.constant 0 : index
    %c0_37 = arith.constant 0 : index
    %c0_38 = arith.constant 0 : index
    %164 = vector.load %arg6[%c0_36, %c0_37, %c0_38] : memref<2x32x32xbf16, #tpu.memory_space<vmem>>, vector<1x32x32xbf16>
    %165 = vector.shape_cast %164 : vector<1x32x32xbf16> to vector<32x32xbf16>
    %cst_39 = arith.constant dense<0.000000e+00> : vector<64x32xf32>
    %166 = tpu.matmul %163, %165, %cst_39 {dimension_numbers = #tpu.dot_dimension_numbers<[1], [0], [0], [1], [0, 0, 1, 1], [], []>} : vector<64x32xbf16>, vector<32x32xbf16>, vector<64x32xf32> -> vector<64x32xf32>
    %167 = vector.extract_strided_slice %166 {offsets = [0, 0], sizes = [4, 32], strides = [1, 1]} : vector<64x32xf32> to vector<4x32xf32>
    %168 = vector.extract_strided_slice %166 {offsets = [16, 0], sizes = [4, 32], strides = [1, 1]} : vector<64x32xf32> to vector<4x32xf32>
    %169 = vector.extract_strided_slice %166 {offsets = [4, 0], sizes = [4, 32], strides = [1, 1]} : vector<64x32xf32> to vector<4x32xf32>
    %170 = vector.extract_strided_slice %166 {offsets = [20, 0], sizes = [4, 32], strides = [1, 1]} : vector<64x32xf32> to vector<4x32xf32>
    %171 = vector.extract_strided_slice %166 {offsets = [8, 0], sizes = [4, 32], strides = [1, 1]} : vector<64x32xf32> to vector<4x32xf32>
    %172 = vector.extract_strided_slice %166 {offsets = [24, 0], sizes = [4, 32], strides = [1, 1]} : vector<64x32xf32> to vector<4x32xf32>
    %173 = vector.extract_strided_slice %166 {offsets = [12, 0], sizes = [4, 32], strides = [1, 1]} : vector<64x32xf32> to vector<4x32xf32>
    %174 = vector.extract_strided_slice %166 {offsets = [28, 0], sizes = [4, 32], strides = [1, 1]} : vector<64x32xf32> to vector<4x32xf32>
    %175 = vector.extract_strided_slice %166 {offsets = [32, 0], sizes = [4, 32], strides = [1, 1]} : vector<64x32xf32> to vector<4x32xf32>
    %176 = vector.extract_strided_slice %166 {offsets = [48, 0], sizes = [4, 32], strides = [1, 1]} : vector<64x32xf32> to vector<4x32xf32>
    %177 = vector.extract_strided_slice %166 {offsets = [36, 0], sizes = [4, 32], strides = [1, 1]} : vector<64x32xf32> to vector<4x32xf32>
    %178 = vector.extract_strided_slice %166 {offsets = [52, 0], sizes = [4, 32], strides = [1, 1]} : vector<64x32xf32> to vector<4x32xf32>
    %179 = vector.extract_strided_slice %166 {offsets = [40, 0], sizes = [4, 32], strides = [1, 1]} : vector<64x32xf32> to vector<4x32xf32>
    %180 = vector.extract_strided_slice %166 {offsets = [56, 0], sizes = [4, 32], strides = [1, 1]} : vector<64x32xf32> to vector<4x32xf32>
    %181 = vector.extract_strided_slice %166 {offsets = [44, 0], sizes = [4, 32], strides = [1, 1]} : vector<64x32xf32> to vector<4x32xf32>
    %182 = vector.extract_strided_slice %166 {offsets = [60, 0], sizes = [4, 32], strides = [1, 1]} : vector<64x32xf32> to vector<4x32xf32>
    %183 = tpu.concatenate %167, %168, %169, %170, %171, %172, %173, %174, %175, %176, %177, %178, %179, %180, %181, %182 in 0 : vector<4x32xf32>, vector<4x32xf32>, vector<4x32xf32>, vector<4x32xf32>, vector<4x32xf32>, vector<4x32xf32>, vector<4x32xf32>, vector<4x32xf32>, vector<4x32xf32>, vector<4x32xf32>, vector<4x32xf32>, vector<4x32xf32>, vector<4x32xf32>, vector<4x32xf32>, vector<4x32xf32>, vector<4x32xf32> -> vector<64x32xf32>
    %184 = arith.addf %1, %183 : vector<64x32xf32>
    %c0_40 = arith.constant 0 : index
    %c0_41 = arith.constant 0 : index
    %185 = vector.load %arg7[%c0_40, %c0_41] : memref<2x32xf32, #tpu.memory_space<vmem>>, vector<1x32xf32>
    %186 = vector.shape_cast %185 : vector<1x32xf32> to vector<32xf32>
    %187 = vector.shape_cast %186 : vector<32xf32> to vector<1x32xf32>
    %188 = vector.broadcast %187 : vector<1x32xf32> to vector<64x32xf32>
    %189 = arith.addf %184, %188 : vector<64x32xf32>
    %cst_42 = arith.constant dense<0.000000e+00> : vector<64xf32>
    %190 = vector.multi_reduction <add>, %189, %cst_42 [1] : vector<64x32xf32> to vector<64xf32>
    %191 = vector.shape_cast %190 : vector<64xf32> to vector<64x1xf32>
    %cst_43 = arith.constant 3.200000e+01 : f32
    %192 = vector.broadcast %cst_43 : f32 to vector<64x1xf32>
    %193 = arith.divf %191, %192 : vector<64x1xf32>
    %194 = vector.broadcast %193 : vector<64x1xf32> to vector<64x32xf32>
    %195 = arith.subf %189, %194 : vector<64x32xf32>
    %196 = arith.mulf %195, %195 : vector<64x32xf32>
    %cst_44 = arith.constant dense<0.000000e+00> : vector<64xf32>
    %197 = vector.multi_reduction <add>, %196, %cst_44 [1] : vector<64x32xf32> to vector<64xf32>
    %198 = vector.shape_cast %197 : vector<64xf32> to vector<64x1xf32>
    %cst_45 = arith.constant 3.200000e+01 : f32
    %199 = vector.broadcast %cst_45 : f32 to vector<64x1xf32>
    %200 = arith.divf %198, %199 : vector<64x1xf32>
    %201 = vector.broadcast %193 : vector<64x1xf32> to vector<64x32xf32>
    %202 = arith.subf %189, %201 : vector<64x32xf32>
    %cst_46 = arith.constant 9.99999974E-6 : f32
    %203 = vector.broadcast %cst_46 : f32 to vector<64x1xf32>
    %204 = arith.addf %200, %203 : vector<64x1xf32>
    %205 = math.rsqrt %204 : vector<64x1xf32>
    %206 = vector.broadcast %205 : vector<64x1xf32> to vector<64x32xf32>
    %207 = arith.mulf %202, %206 : vector<64x32xf32>
    %c0_47 = arith.constant 0 : index
    %c0_48 = arith.constant 0 : index
    %208 = vector.load %arg8[%c0_47, %c0_48] : memref<2x32xf32, #tpu.memory_space<vmem>>, vector<1x32xf32>
    %209 = vector.shape_cast %208 : vector<1x32xf32> to vector<32xf32>
    %210 = vector.shape_cast %209 : vector<32xf32> to vector<1x32xf32>
    %211 = vector.broadcast %210 : vector<1x32xf32> to vector<64x32xf32>
    %212 = arith.mulf %207, %211 : vector<64x32xf32>
    %c0_49 = arith.constant 0 : index
    %c0_50 = arith.constant 0 : index
    %213 = vector.load %arg9[%c0_49, %c0_50] : memref<2x32xf32, #tpu.memory_space<vmem>>, vector<1x32xf32>
    %214 = vector.shape_cast %213 : vector<1x32xf32> to vector<32xf32>
    %215 = vector.shape_cast %214 : vector<32xf32> to vector<1x32xf32>
    %216 = vector.broadcast %215 : vector<1x32xf32> to vector<64x32xf32>
    %217 = arith.addf %212, %216 : vector<64x32xf32>
    %218 = arith.truncf %217 : vector<64x32xf32> to vector<64x32xbf16>
    %c0_51 = arith.constant 0 : index
    %c0_52 = arith.constant 0 : index
    %c0_53 = arith.constant 0 : index
    %219 = vector.load %arg10[%c0_51, %c0_52, %c0_53] : memref<2x32x128xbf16, #tpu.memory_space<vmem>>, vector<1x32x128xbf16>
    %220 = vector.shape_cast %219 : vector<1x32x128xbf16> to vector<32x128xbf16>
    %cst_54 = arith.constant dense<0.000000e+00> : vector<64x128xf32>
    %221 = tpu.matmul %218, %220, %cst_54 {dimension_numbers = #tpu.dot_dimension_numbers<[1], [0], [0], [1], [0, 0, 1, 1], [], []>} : vector<64x32xbf16>, vector<32x128xbf16>, vector<64x128xf32> -> vector<64x128xf32>
    %c0_55 = arith.constant 0 : index
    %c0_56 = arith.constant 0 : index
    %222 = vector.load %arg11[%c0_55, %c0_56] : memref<2x128xf32, #tpu.memory_space<vmem>>, vector<1x128xf32>
    %223 = vector.shape_cast %222 : vector<1x128xf32> to vector<128xf32>
    %224 = vector.shape_cast %223 : vector<128xf32> to vector<1x128xf32>
    %225 = vector.broadcast %224 : vector<1x128xf32> to vector<64x128xf32>
    %226 = arith.addf %221, %225 : vector<64x128xf32>
    %cst_57 = arith.constant 5.000000e-01 : f32
    %227 = vector.broadcast %cst_57 : f32 to vector<64x128xf32>
    %228 = arith.mulf %227, %226 : vector<64x128xf32>
    %cst_58 = arith.constant 4.471500e-02 : f32
    %229 = vector.broadcast %cst_58 : f32 to vector<64x128xf32>
    %230 = arith.mulf %229, %226 : vector<64x128xf32>
    %231 = arith.mulf %230, %226 : vector<64x128xf32>
    %232 = arith.mulf %231, %226 : vector<64x128xf32>
    %233 = arith.addf %226, %232 : vector<64x128xf32>
    %cst_59 = arith.constant 0.797884583 : f32
    %234 = vector.broadcast %cst_59 : f32 to vector<64x128xf32>
    %235 = arith.mulf %234, %233 : vector<64x128xf32>
    %236 = math.tanh %235 : vector<64x128xf32>
    %cst_60 = arith.constant 1.000000e+00 : f32
    %237 = vector.broadcast %cst_60 : f32 to vector<64x128xf32>
    %238 = arith.addf %237, %236 : vector<64x128xf32>
    %239 = arith.mulf %228, %238 : vector<64x128xf32>
    %240 = arith.truncf %239 : vector<64x128xf32> to vector<64x128xbf16>
    %c0_61 = arith.constant 0 : index
    %c0_62 = arith.constant 0 : index
    %c0_63 = arith.constant 0 : index
    %241 = vector.load %arg12[%c0_61, %c0_62, %c0_63] : memref<2x128x32xbf16, #tpu.memory_space<vmem>>, vector<1x128x32xbf16>
    %242 = vector.shape_cast %241 : vector<1x128x32xbf16> to vector<128x32xbf16>
    %cst_64 = arith.constant dense<0.000000e+00> : vector<64x32xf32>
    %243 = tpu.matmul %240, %242, %cst_64 {dimension_numbers = #tpu.dot_dimension_numbers<[1], [0], [0], [1], [0, 0, 1, 1], [], []>} : vector<64x128xbf16>, vector<128x32xbf16>, vector<64x32xf32> -> vector<64x32xf32>
    %244 = arith.addf %189, %243 : vector<64x32xf32>
    %c0_65 = arith.constant 0 : index
    %c0_66 = arith.constant 0 : index
    %245 = vector.load %arg13[%c0_65, %c0_66] : memref<2x32xf32, #tpu.memory_space<vmem>>, vector<1x32xf32>
    %246 = vector.shape_cast %245 : vector<1x32xf32> to vector<32xf32>
    %247 = vector.shape_cast %246 : vector<32xf32> to vector<1x32xf32>
    %248 = vector.broadcast %247 : vector<1x32xf32> to vector<64x32xf32>
    %249 = arith.addf %244, %248 : vector<64x32xf32>
    %cst_67 = arith.constant dense<0.000000e+00> : vector<64xf32>
    %250 = vector.multi_reduction <add>, %249, %cst_67 [1] : vector<64x32xf32> to vector<64xf32>
    %251 = vector.shape_cast %250 : vector<64xf32> to vector<64x1xf32>
    %cst_68 = arith.constant 3.200000e+01 : f32
    %252 = vector.broadcast %cst_68 : f32 to vector<64x1xf32>
    %253 = arith.divf %251, %252 : vector<64x1xf32>
    %254 = vector.broadcast %253 : vector<64x1xf32> to vector<64x32xf32>
    %255 = arith.subf %249, %254 : vector<64x32xf32>
    %256 = arith.mulf %255, %255 : vector<64x32xf32>
    %cst_69 = arith.constant dense<0.000000e+00> : vector<64xf32>
    %257 = vector.multi_reduction <add>, %256, %cst_69 [1] : vector<64x32xf32> to vector<64xf32>
    %258 = vector.shape_cast %257 : vector<64xf32> to vector<64x1xf32>
    %cst_70 = arith.constant 3.200000e+01 : f32
    %259 = vector.broadcast %cst_70 : f32 to vector<64x1xf32>
    %260 = arith.divf %258, %259 : vector<64x1xf32>
    %261 = vector.broadcast %253 : vector<64x1xf32> to vector<64x32xf32>
    %262 = arith.subf %249, %261 : vector<64x32xf32>
    %cst_71 = arith.constant 9.99999974E-6 : f32
    %263 = vector.broadcast %cst_71 : f32 to vector<64x1xf32>
    %264 = arith.addf %260, %263 : vector<64x1xf32>
    %265 = math.rsqrt %264 : vector<64x1xf32>
    %266 = vector.broadcast %265 : vector<64x1xf32> to vector<64x32xf32>
    %267 = arith.mulf %262, %266 : vector<64x32xf32>
    %c1 = arith.constant 1 : index
    %c0_72 = arith.constant 0 : index
    %268 = vector.load %arg2[%c1, %c0_72] : memref<2x32xf32, #tpu.memory_space<vmem>>, vector<1x32xf32>
    %269 = vector.shape_cast %268 : vector<1x32xf32> to vector<32xf32>
    %270 = vector.shape_cast %269 : vector<32xf32> to vector<1x32xf32>
    %271 = vector.broadcast %270 : vector<1x32xf32> to vector<64x32xf32>
    %272 = arith.mulf %267, %271 : vector<64x32xf32>
    %c1_73 = arith.constant 1 : index
    %c0_74 = arith.constant 0 : index
    %273 = vector.load %arg3[%c1_73, %c0_74] : memref<2x32xf32, #tpu.memory_space<vmem>>, vector<1x32xf32>
    %274 = vector.shape_cast %273 : vector<1x32xf32> to vector<32xf32>
    %275 = vector.shape_cast %274 : vector<32xf32> to vector<1x32xf32>
    %276 = vector.broadcast %275 : vector<1x32xf32> to vector<64x32xf32>
    %277 = arith.addf %272, %276 : vector<64x32xf32>
    %278 = vector.extract_strided_slice %277 {offsets = [18, 0], sizes = [4, 32], strides = [1, 1]} : vector<64x32xf32> to vector<4x32xf32>
    %279 = vector.extract_strided_slice %277 {offsets = [26, 0], sizes = [4, 32], strides = [1, 1]} : vector<64x32xf32> to vector<4x32xf32>
    %280 = vector.extract_strided_slice %277 {offsets = [34, 0], sizes = [4, 32], strides = [1, 1]} : vector<64x32xf32> to vector<4x32xf32>
    %281 = vector.extract_strided_slice %277 {offsets = [42, 0], sizes = [4, 32], strides = [1, 1]} : vector<64x32xf32> to vector<4x32xf32>
    %282 = vector.extract_strided_slice %277 {offsets = [22, 0], sizes = [2, 32], strides = [1, 1]} : vector<64x32xf32> to vector<2x32xf32>
    %283 = vector.extract_strided_slice %277 {offsets = [16, 0], sizes = [2, 32], strides = [1, 1]} : vector<64x32xf32> to vector<2x32xf32>
    %284 = vector.extract_strided_slice %277 {offsets = [30, 0], sizes = [2, 32], strides = [1, 1]} : vector<64x32xf32> to vector<2x32xf32>
    %285 = vector.extract_strided_slice %277 {offsets = [24, 0], sizes = [2, 32], strides = [1, 1]} : vector<64x32xf32> to vector<2x32xf32>
    %286 = vector.extract_strided_slice %277 {offsets = [38, 0], sizes = [2, 32], strides = [1, 1]} : vector<64x32xf32> to vector<2x32xf32>
    %287 = vector.extract_strided_slice %277 {offsets = [32, 0], sizes = [2, 32], strides = [1, 1]} : vector<64x32xf32> to vector<2x32xf32>
    %288 = vector.extract_strided_slice %277 {offsets = [46, 0], sizes = [2, 32], strides = [1, 1]} : vector<64x32xf32> to vector<2x32xf32>
    %289 = vector.extract_strided_slice %277 {offsets = [40, 0], sizes = [2, 32], strides = [1, 1]} : vector<64x32xf32> to vector<2x32xf32>
    %290 = vector.extract_strided_slice %277 {offsets = [50, 0], sizes = [4, 32], strides = [1, 1]} : vector<64x32xf32> to vector<4x32xf32>
    %291 = vector.extract_strided_slice %277 {offsets = [58, 0], sizes = [4, 32], strides = [1, 1]} : vector<64x32xf32> to vector<4x32xf32>
    %292 = vector.extract_strided_slice %277 {offsets = [2, 0], sizes = [4, 32], strides = [1, 1]} : vector<64x32xf32> to vector<4x32xf32>
    %293 = vector.extract_strided_slice %277 {offsets = [10, 0], sizes = [4, 32], strides = [1, 1]} : vector<64x32xf32> to vector<4x32xf32>
    %294 = vector.extract_strided_slice %277 {offsets = [54, 0], sizes = [2, 32], strides = [1, 1]} : vector<64x32xf32> to vector<2x32xf32>
    %295 = vector.extract_strided_slice %277 {offsets = [48, 0], sizes = [2, 32], strides = [1, 1]} : vector<64x32xf32> to vector<2x32xf32>
    %296 = vector.extract_strided_slice %277 {offsets = [62, 0], sizes = [2, 32], strides = [1, 1]} : vector<64x32xf32> to vector<2x32xf32>
    %297 = vector.extract_strided_slice %277 {offsets = [56, 0], sizes = [2, 32], strides = [1, 1]} : vector<64x32xf32> to vector<2x32xf32>
    %298 = vector.extract_strided_slice %277 {offsets = [6, 0], sizes = [2, 32], strides = [1, 1]} : vector<64x32xf32> to vector<2x32xf32>
    %299 = vector.extract_strided_slice %277 {offsets = [0, 0], sizes = [2, 32], strides = [1, 1]} : vector<64x32xf32> to vector<2x32xf32>
    %300 = vector.extract_strided_slice %277 {offsets = [14, 0], sizes = [2, 32], strides = [1, 1]} : vector<64x32xf32> to vector<2x32xf32>
    %301 = vector.extract_strided_slice %277 {offsets = [8, 0], sizes = [2, 32], strides = [1, 1]} : vector<64x32xf32> to vector<2x32xf32>
    %302 = tpu.concatenate %278, %279, %280, %281, %282, %283, %284, %285, %286, %287, %288, %289, %290, %291, %292, %293 in 0 : vector<4x32xf32>, vector<4x32xf32>, vector<4x32xf32>, vector<4x32xf32>, vector<2x32xf32>, vector<2x32xf32>, vector<2x32xf32>, vector<2x32xf32>, vector<2x32xf32>, vector<2x32xf32>, vector<2x32xf32>, vector<2x32xf32>, vector<4x32xf32>, vector<4x32xf32>, vector<4x32xf32>, vector<4x32xf32> -> vector<48x32xf32>
    %303 = tpu.concatenate %294, %295, %296, %297, %298, %299, %300, %301 in 0 : vector<2x32xf32>, vector<2x32xf32>, vector<2x32xf32>, vector<2x32xf32>, vector<2x32xf32>, vector<2x32xf32>, vector<2x32xf32>, vector<2x32xf32> -> vector<16x32xf32>
    %304 = tpu.concatenate %302, %303 in 0 : vector<48x32xf32>, vector<16x32xf32> -> vector<64x32xf32>
    %305 = arith.truncf %304 : vector<64x32xf32> to vector<64x32xbf16>
    %c1_75 = arith.constant 1 : index
    %c0_76 = arith.constant 0 : index
    %c0_77 = arith.constant 0 : index
    %306 = vector.load %arg4[%c1_75, %c0_76, %c0_77] : memref<2x32x96xbf16, #tpu.memory_space<vmem>>, vector<1x32x96xbf16>
    %307 = vector.shape_cast %306 : vector<1x32x96xbf16> to vector<32x96xbf16>
    %cst_78 = arith.constant dense<0.000000e+00> : vector<64x96xf32>
    %308 = tpu.matmul %305, %307, %cst_78 {dimension_numbers = #tpu.dot_dimension_numbers<[1], [0], [0], [1], [0, 0, 1, 1], [], []>} : vector<64x32xbf16>, vector<32x96xbf16>, vector<64x96xf32> -> vector<64x96xf32>
    %c1_79 = arith.constant 1 : index
    %c0_80 = arith.constant 0 : index
    %309 = vector.load %arg5[%c1_79, %c0_80] : memref<2x96xf32, #tpu.memory_space<vmem>>, vector<1x96xf32>
    %310 = vector.shape_cast %309 : vector<1x96xf32> to vector<96xf32>
    %311 = vector.shape_cast %310 : vector<96xf32> to vector<1x96xf32>
    %312 = vector.broadcast %311 : vector<1x96xf32> to vector<64x96xf32>
    %313 = arith.addf %308, %312 : vector<64x96xf32>
    %314 = arith.truncf %313 : vector<64x96xf32> to vector<64x96xbf16>
    %c1_81 = arith.constant 1 : index
    %c0_82 = arith.constant 0 : index
    %c0_83 = arith.constant 0 : index
    %c0_84 = arith.constant 0 : index
    %315 = vector.load %arg14[%c1_81, %c0_82, %c0_83, %c0_84] : memref<2x4x16x16xf32, #tpu.memory_space<vmem>>, vector<1x4x16x16xf32>
    %316 = vector.shape_cast %315 : vector<1x4x16x16xf32> to vector<4x16x16xf32>
    %317 = vector.extract_strided_slice %314 {offsets = [0, 0], sizes = [64, 8], strides = [1, 1]} : vector<64x96xbf16> to vector<64x8xbf16>
    %318 = vector.shape_cast %317 : vector<64x8xbf16> to vector<4x16x8xbf16>
    %319 = vector.extract_strided_slice %314 {offsets = [0, 32], sizes = [64, 8], strides = [1, 1]} : vector<64x96xbf16> to vector<64x8xbf16>
    %320 = vector.shape_cast %319 : vector<64x8xbf16> to vector<4x16x8xbf16>
    %321 = vector.extract_strided_slice %314 {offsets = [0, 64], sizes = [64, 8], strides = [1, 1]} : vector<64x96xbf16> to vector<64x8xbf16>
    %322 = vector.shape_cast %321 : vector<64x8xbf16> to vector<4x16x8xbf16>
    "tpu.trace_start"() <{level = 10 : i32, message = "wnd,wmd->wnm"}> : () -> ()
    %cst_85 = arith.constant dense<0.000000e+00> : vector<4x16x16xf32>
    %323 = tpu.matmul %318, %320, %cst_85 {dimension_numbers = #tpu.dot_dimension_numbers<[2], [2], [1], [1], [0, 0, 0, 1, 1, 1], [0], [0]>} : vector<4x16x8xbf16>, vector<4x16x8xbf16>, vector<4x16x16xf32> -> vector<4x16x16xf32>
    "tpu.trace_stop"() : () -> ()
    %324 = vector.extract_strided_slice %316 {offsets = [0, 0, 0], sizes = [1, 16, 16], strides = [1, 1, 1]} : vector<4x16x16xf32> to vector<1x16x16xf32>
    %325 = vector.shape_cast %324 : vector<1x16x16xf32> to vector<16x16xf32>
    %326 = vector.shape_cast %325 : vector<16x16xf32> to vector<1x16x16xf32>
    %327 = vector.broadcast %326 : vector<1x16x16xf32> to vector<4x16x16xf32>
    %328 = arith.addf %323, %327 : vector<4x16x16xf32>
    %c0_86 = arith.constant 0 : index
    %c0_87 = arith.constant 0 : index
    %c0_88 = arith.constant 0 : index
    %329 = vector.load %arg15[%c0_86, %c0_87, %c0_88] : memref<4x16x16xf32, #tpu.memory_space<vmem>>, vector<4x16x16xf32>
    %330 = arith.addf %328, %329 : vector<4x16x16xf32>
    %cst_89 = arith.constant dense<0xFF800000> : vector<4x16xf32>
    %331 = vector.multi_reduction <maximumf>, %330, %cst_89 [2] : vector<4x16x16xf32> to vector<4x16xf32>
    %332 = vector.shape_cast %331 : vector<4x16xf32> to vector<4x16x1xf32>
    %333 = vector.broadcast %332 : vector<4x16x1xf32> to vector<4x16x16xf32>
    %334 = arith.subf %330, %333 : vector<4x16x16xf32>
    %335 = math.exp %334 : vector<4x16x16xf32>
    %cst_90 = arith.constant dense<0.000000e+00> : vector<4x16xf32>
    %336 = vector.multi_reduction <add>, %335, %cst_90 [2] : vector<4x16x16xf32> to vector<4x16xf32>
    %337 = vector.shape_cast %336 : vector<4x16xf32> to vector<4x16x1xf32>
    %338 = tpu.reciprocal %337 {approx = true} : vector<4x16x1xf32> -> vector<4x16x1xf32>
    %339 = vector.broadcast %338 : vector<4x16x1xf32> to vector<4x16x16xf32>
    %340 = arith.mulf %335, %339 : vector<4x16x16xf32>
    %341 = arith.truncf %340 : vector<4x16x16xf32> to vector<4x16x16xbf16>
    "tpu.trace_start"() <{level = 10 : i32, message = "wnm,wmd->wnd"}> : () -> ()
    %cst_91 = arith.constant dense<0.000000e+00> : vector<4x16x8xf32>
    %342 = tpu.matmul %341, %322, %cst_91 {dimension_numbers = #tpu.dot_dimension_numbers<[2], [1], [1], [2], [0, 0, 0, 1, 1, 2], [0], [0]>} : vector<4x16x16xbf16>, vector<4x16x8xbf16>, vector<4x16x8xf32> -> vector<4x16x8xf32>
    "tpu.trace_stop"() : () -> ()
    %343 = vector.shape_cast %342 : vector<4x16x8xf32> to vector<64x8xf32>
    %344 = arith.truncf %343 : vector<64x8xf32> to vector<64x8xbf16>
    %345 = vector.extract_strided_slice %314 {offsets = [0, 8], sizes = [64, 8], strides = [1, 1]} : vector<64x96xbf16> to vector<64x8xbf16>
    %346 = vector.shape_cast %345 : vector<64x8xbf16> to vector<4x16x8xbf16>
    %347 = vector.extract_strided_slice %314 {offsets = [0, 40], sizes = [64, 8], strides = [1, 1]} : vector<64x96xbf16> to vector<64x8xbf16>
    %348 = vector.shape_cast %347 : vector<64x8xbf16> to vector<4x16x8xbf16>
    %349 = vector.extract_strided_slice %314 {offsets = [0, 72], sizes = [64, 8], strides = [1, 1]} : vector<64x96xbf16> to vector<64x8xbf16>
    %350 = vector.shape_cast %349 : vector<64x8xbf16> to vector<4x16x8xbf16>
    "tpu.trace_start"() <{level = 10 : i32, message = "wnd,wmd->wnm"}> : () -> ()
    %cst_92 = arith.constant dense<0.000000e+00> : vector<4x16x16xf32>
    %351 = tpu.matmul %346, %348, %cst_92 {dimension_numbers = #tpu.dot_dimension_numbers<[2], [2], [1], [1], [0, 0, 0, 1, 1, 1], [0], [0]>} : vector<4x16x8xbf16>, vector<4x16x8xbf16>, vector<4x16x16xf32> -> vector<4x16x16xf32>
    "tpu.trace_stop"() : () -> ()
    %352 = vector.extract_strided_slice %316 {offsets = [1, 0, 0], sizes = [1, 16, 16], strides = [1, 1, 1]} : vector<4x16x16xf32> to vector<1x16x16xf32>
    %353 = vector.shape_cast %352 : vector<1x16x16xf32> to vector<16x16xf32>
    %354 = vector.shape_cast %353 : vector<16x16xf32> to vector<1x16x16xf32>
    %355 = vector.broadcast %354 : vector<1x16x16xf32> to vector<4x16x16xf32>
    %356 = arith.addf %351, %355 : vector<4x16x16xf32>
    %c0_93 = arith.constant 0 : index
    %c0_94 = arith.constant 0 : index
    %c0_95 = arith.constant 0 : index
    %357 = vector.load %arg15[%c0_93, %c0_94, %c0_95] : memref<4x16x16xf32, #tpu.memory_space<vmem>>, vector<4x16x16xf32>
    %358 = arith.addf %356, %357 : vector<4x16x16xf32>
    %cst_96 = arith.constant dense<0xFF800000> : vector<4x16xf32>
    %359 = vector.multi_reduction <maximumf>, %358, %cst_96 [2] : vector<4x16x16xf32> to vector<4x16xf32>
    %360 = vector.shape_cast %359 : vector<4x16xf32> to vector<4x16x1xf32>
    %361 = vector.broadcast %360 : vector<4x16x1xf32> to vector<4x16x16xf32>
    %362 = arith.subf %358, %361 : vector<4x16x16xf32>
    %363 = math.exp %362 : vector<4x16x16xf32>
    %cst_97 = arith.constant dense<0.000000e+00> : vector<4x16xf32>
    %364 = vector.multi_reduction <add>, %363, %cst_97 [2] : vector<4x16x16xf32> to vector<4x16xf32>
    %365 = vector.shape_cast %364 : vector<4x16xf32> to vector<4x16x1xf32>
    %366 = tpu.reciprocal %365 {approx = true} : vector<4x16x1xf32> -> vector<4x16x1xf32>
    %367 = vector.broadcast %366 : vector<4x16x1xf32> to vector<4x16x16xf32>
    %368 = arith.mulf %363, %367 : vector<4x16x16xf32>
    %369 = arith.truncf %368 : vector<4x16x16xf32> to vector<4x16x16xbf16>
    "tpu.trace_start"() <{level = 10 : i32, message = "wnm,wmd->wnd"}> : () -> ()
    %cst_98 = arith.constant dense<0.000000e+00> : vector<4x16x8xf32>
    %370 = tpu.matmul %369, %350, %cst_98 {dimension_numbers = #tpu.dot_dimension_numbers<[2], [1], [1], [2], [0, 0, 0, 1, 1, 2], [0], [0]>} : vector<4x16x16xbf16>, vector<4x16x8xbf16>, vector<4x16x8xf32> -> vector<4x16x8xf32>
    "tpu.trace_stop"() : () -> ()
    %371 = vector.shape_cast %370 : vector<4x16x8xf32> to vector<64x8xf32>
    %372 = arith.truncf %371 : vector<64x8xf32> to vector<64x8xbf16>
    %373 = vector.extract_strided_slice %314 {offsets = [0, 16], sizes = [64, 8], strides = [1, 1]} : vector<64x96xbf16> to vector<64x8xbf16>
    %374 = vector.shape_cast %373 : vector<64x8xbf16> to vector<4x16x8xbf16>
    %375 = vector.extract_strided_slice %314 {offsets = [0, 48], sizes = [64, 8], strides = [1, 1]} : vector<64x96xbf16> to vector<64x8xbf16>
    %376 = vector.shape_cast %375 : vector<64x8xbf16> to vector<4x16x8xbf16>
    %377 = vector.extract_strided_slice %314 {offsets = [0, 80], sizes = [64, 8], strides = [1, 1]} : vector<64x96xbf16> to vector<64x8xbf16>
    %378 = vector.shape_cast %377 : vector<64x8xbf16> to vector<4x16x8xbf16>
    "tpu.trace_start"() <{level = 10 : i32, message = "wnd,wmd->wnm"}> : () -> ()
    %cst_99 = arith.constant dense<0.000000e+00> : vector<4x16x16xf32>
    %379 = tpu.matmul %374, %376, %cst_99 {dimension_numbers = #tpu.dot_dimension_numbers<[2], [2], [1], [1], [0, 0, 0, 1, 1, 1], [0], [0]>} : vector<4x16x8xbf16>, vector<4x16x8xbf16>, vector<4x16x16xf32> -> vector<4x16x16xf32>
    "tpu.trace_stop"() : () -> ()
    %380 = vector.extract_strided_slice %316 {offsets = [2, 0, 0], sizes = [1, 16, 16], strides = [1, 1, 1]} : vector<4x16x16xf32> to vector<1x16x16xf32>
    %381 = vector.shape_cast %380 : vector<1x16x16xf32> to vector<16x16xf32>
    %382 = vector.shape_cast %381 : vector<16x16xf32> to vector<1x16x16xf32>
    %383 = vector.broadcast %382 : vector<1x16x16xf32> to vector<4x16x16xf32>
    %384 = arith.addf %379, %383 : vector<4x16x16xf32>
    %c0_100 = arith.constant 0 : index
    %c0_101 = arith.constant 0 : index
    %c0_102 = arith.constant 0 : index
    %385 = vector.load %arg15[%c0_100, %c0_101, %c0_102] : memref<4x16x16xf32, #tpu.memory_space<vmem>>, vector<4x16x16xf32>
    %386 = arith.addf %384, %385 : vector<4x16x16xf32>
    %cst_103 = arith.constant dense<0xFF800000> : vector<4x16xf32>
    %387 = vector.multi_reduction <maximumf>, %386, %cst_103 [2] : vector<4x16x16xf32> to vector<4x16xf32>
    %388 = vector.shape_cast %387 : vector<4x16xf32> to vector<4x16x1xf32>
    %389 = vector.broadcast %388 : vector<4x16x1xf32> to vector<4x16x16xf32>
    %390 = arith.subf %386, %389 : vector<4x16x16xf32>
    %391 = math.exp %390 : vector<4x16x16xf32>
    %cst_104 = arith.constant dense<0.000000e+00> : vector<4x16xf32>
    %392 = vector.multi_reduction <add>, %391, %cst_104 [2] : vector<4x16x16xf32> to vector<4x16xf32>
    %393 = vector.shape_cast %392 : vector<4x16xf32> to vector<4x16x1xf32>
    %394 = tpu.reciprocal %393 {approx = true} : vector<4x16x1xf32> -> vector<4x16x1xf32>
    %395 = vector.broadcast %394 : vector<4x16x1xf32> to vector<4x16x16xf32>
    %396 = arith.mulf %391, %395 : vector<4x16x16xf32>
    %397 = arith.truncf %396 : vector<4x16x16xf32> to vector<4x16x16xbf16>
    "tpu.trace_start"() <{level = 10 : i32, message = "wnm,wmd->wnd"}> : () -> ()
    %cst_105 = arith.constant dense<0.000000e+00> : vector<4x16x8xf32>
    %398 = tpu.matmul %397, %378, %cst_105 {dimension_numbers = #tpu.dot_dimension_numbers<[2], [1], [1], [2], [0, 0, 0, 1, 1, 2], [0], [0]>} : vector<4x16x16xbf16>, vector<4x16x8xbf16>, vector<4x16x8xf32> -> vector<4x16x8xf32>
    "tpu.trace_stop"() : () -> ()
    %399 = vector.shape_cast %398 : vector<4x16x8xf32> to vector<64x8xf32>
    %400 = arith.truncf %399 : vector<64x8xf32> to vector<64x8xbf16>
    %401 = vector.extract_strided_slice %314 {offsets = [0, 24], sizes = [64, 8], strides = [1, 1]} : vector<64x96xbf16> to vector<64x8xbf16>
    %402 = vector.shape_cast %401 : vector<64x8xbf16> to vector<4x16x8xbf16>
    %403 = vector.extract_strided_slice %314 {offsets = [0, 56], sizes = [64, 8], strides = [1, 1]} : vector<64x96xbf16> to vector<64x8xbf16>
    %404 = vector.shape_cast %403 : vector<64x8xbf16> to vector<4x16x8xbf16>
    %405 = vector.extract_strided_slice %314 {offsets = [0, 88], sizes = [64, 8], strides = [1, 1]} : vector<64x96xbf16> to vector<64x8xbf16>
    %406 = vector.shape_cast %405 : vector<64x8xbf16> to vector<4x16x8xbf16>
    "tpu.trace_start"() <{level = 10 : i32, message = "wnd,wmd->wnm"}> : () -> ()
    %cst_106 = arith.constant dense<0.000000e+00> : vector<4x16x16xf32>
    %407 = tpu.matmul %402, %404, %cst_106 {dimension_numbers = #tpu.dot_dimension_numbers<[2], [2], [1], [1], [0, 0, 0, 1, 1, 1], [0], [0]>} : vector<4x16x8xbf16>, vector<4x16x8xbf16>, vector<4x16x16xf32> -> vector<4x16x16xf32>
    "tpu.trace_stop"() : () -> ()
    %408 = vector.extract_strided_slice %316 {offsets = [3, 0, 0], sizes = [1, 16, 16], strides = [1, 1, 1]} : vector<4x16x16xf32> to vector<1x16x16xf32>
    %409 = vector.shape_cast %408 : vector<1x16x16xf32> to vector<16x16xf32>
    %410 = vector.shape_cast %409 : vector<16x16xf32> to vector<1x16x16xf32>
    %411 = vector.broadcast %410 : vector<1x16x16xf32> to vector<4x16x16xf32>
    %412 = arith.addf %407, %411 : vector<4x16x16xf32>
    %c0_107 = arith.constant 0 : index
    %c0_108 = arith.constant 0 : index
    %c0_109 = arith.constant 0 : index
    %413 = vector.load %arg15[%c0_107, %c0_108, %c0_109] : memref<4x16x16xf32, #tpu.memory_space<vmem>>, vector<4x16x16xf32>
    %414 = arith.addf %412, %413 : vector<4x16x16xf32>
    %cst_110 = arith.constant dense<0xFF800000> : vector<4x16xf32>
    %415 = vector.multi_reduction <maximumf>, %414, %cst_110 [2] : vector<4x16x16xf32> to vector<4x16xf32>
    %416 = vector.shape_cast %415 : vector<4x16xf32> to vector<4x16x1xf32>
    %417 = vector.broadcast %416 : vector<4x16x1xf32> to vector<4x16x16xf32>
    %418 = arith.subf %414, %417 : vector<4x16x16xf32>
    %419 = math.exp %418 : vector<4x16x16xf32>
    %cst_111 = arith.constant dense<0.000000e+00> : vector<4x16xf32>
    %420 = vector.multi_reduction <add>, %419, %cst_111 [2] : vector<4x16x16xf32> to vector<4x16xf32>
    %421 = vector.shape_cast %420 : vector<4x16xf32> to vector<4x16x1xf32>
    %422 = tpu.reciprocal %421 {approx = true} : vector<4x16x1xf32> -> vector<4x16x1xf32>
    %423 = vector.broadcast %422 : vector<4x16x1xf32> to vector<4x16x16xf32>
    %424 = arith.mulf %419, %423 : vector<4x16x16xf32>
    %425 = arith.truncf %424 : vector<4x16x16xf32> to vector<4x16x16xbf16>
    "tpu.trace_start"() <{level = 10 : i32, message = "wnm,wmd->wnd"}> : () -> ()
    %cst_112 = arith.constant dense<0.000000e+00> : vector<4x16x8xf32>
    %426 = tpu.matmul %425, %406, %cst_112 {dimension_numbers = #tpu.dot_dimension_numbers<[2], [1], [1], [2], [0, 0, 0, 1, 1, 2], [0], [0]>} : vector<4x16x16xbf16>, vector<4x16x8xbf16>, vector<4x16x8xf32> -> vector<4x16x8xf32>
    "tpu.trace_stop"() : () -> ()
    %427 = vector.shape_cast %426 : vector<4x16x8xf32> to vector<64x8xf32>
    %428 = arith.truncf %427 : vector<64x8xf32> to vector<64x8xbf16>
    %429 = tpu.concatenate %344, %372, %400, %428 in 1 : vector<64x8xbf16>, vector<64x8xbf16>, vector<64x8xbf16>, vector<64x8xbf16> -> vector<64x32xbf16>
    %c1_113 = arith.constant 1 : index
    %c0_114 = arith.constant 0 : index
    %c0_115 = arith.constant 0 : index
    %430 = vector.load %arg6[%c1_113, %c0_114, %c0_115] : memref<2x32x32xbf16, #tpu.memory_space<vmem>>, vector<1x32x32xbf16>
    %431 = vector.shape_cast %430 : vector<1x32x32xbf16> to vector<32x32xbf16>
    %cst_116 = arith.constant dense<0.000000e+00> : vector<64x32xf32>
    %432 = tpu.matmul %429, %431, %cst_116 {dimension_numbers = #tpu.dot_dimension_numbers<[1], [0], [0], [1], [0, 0, 1, 1], [], []>} : vector<64x32xbf16>, vector<32x32xbf16>, vector<64x32xf32> -> vector<64x32xf32>
    %433 = vector.extract_strided_slice %432 {offsets = [58, 0], sizes = [2, 32], strides = [1, 1]} : vector<64x32xf32> to vector<2x32xf32>
    %434 = vector.extract_strided_slice %432 {offsets = [40, 0], sizes = [4, 32], strides = [1, 1]} : vector<64x32xf32> to vector<4x32xf32>
    %435 = vector.extract_strided_slice %432 {offsets = [56, 0], sizes = [2, 32], strides = [1, 1]} : vector<64x32xf32> to vector<2x32xf32>
    %436 = vector.extract_strided_slice %432 {offsets = [62, 0], sizes = [2, 32], strides = [1, 1]} : vector<64x32xf32> to vector<2x32xf32>
    %437 = vector.extract_strided_slice %432 {offsets = [44, 0], sizes = [4, 32], strides = [1, 1]} : vector<64x32xf32> to vector<4x32xf32>
    %438 = vector.extract_strided_slice %432 {offsets = [60, 0], sizes = [2, 32], strides = [1, 1]} : vector<64x32xf32> to vector<2x32xf32>
    %439 = vector.extract_strided_slice %432 {offsets = [18, 0], sizes = [2, 32], strides = [1, 1]} : vector<64x32xf32> to vector<2x32xf32>
    %440 = vector.extract_strided_slice %432 {offsets = [0, 0], sizes = [4, 32], strides = [1, 1]} : vector<64x32xf32> to vector<4x32xf32>
    %441 = vector.extract_strided_slice %432 {offsets = [16, 0], sizes = [2, 32], strides = [1, 1]} : vector<64x32xf32> to vector<2x32xf32>
    %442 = vector.extract_strided_slice %432 {offsets = [22, 0], sizes = [2, 32], strides = [1, 1]} : vector<64x32xf32> to vector<2x32xf32>
    %443 = vector.extract_strided_slice %432 {offsets = [4, 0], sizes = [4, 32], strides = [1, 1]} : vector<64x32xf32> to vector<4x32xf32>
    %444 = vector.extract_strided_slice %432 {offsets = [20, 0], sizes = [2, 32], strides = [1, 1]} : vector<64x32xf32> to vector<2x32xf32>
    %445 = vector.extract_strided_slice %432 {offsets = [26, 0], sizes = [2, 32], strides = [1, 1]} : vector<64x32xf32> to vector<2x32xf32>
    %446 = vector.extract_strided_slice %432 {offsets = [8, 0], sizes = [4, 32], strides = [1, 1]} : vector<64x32xf32> to vector<4x32xf32>
    %447 = vector.extract_strided_slice %432 {offsets = [24, 0], sizes = [2, 32], strides = [1, 1]} : vector<64x32xf32> to vector<2x32xf32>
    %448 = vector.extract_strided_slice %432 {offsets = [30, 0], sizes = [2, 32], strides = [1, 1]} : vector<64x32xf32> to vector<2x32xf32>
    %449 = vector.extract_strided_slice %432 {offsets = [12, 0], sizes = [4, 32], strides = [1, 1]} : vector<64x32xf32> to vector<4x32xf32>
    %450 = vector.extract_strided_slice %432 {offsets = [28, 0], sizes = [2, 32], strides = [1, 1]} : vector<64x32xf32> to vector<2x32xf32>
    %451 = vector.extract_strided_slice %432 {offsets = [50, 0], sizes = [2, 32], strides = [1, 1]} : vector<64x32xf32> to vector<2x32xf32>
    %452 = vector.extract_strided_slice %432 {offsets = [32, 0], sizes = [4, 32], strides = [1, 1]} : vector<64x32xf32> to vector<4x32xf32>
    %453 = vector.extract_strided_slice %432 {offsets = [48, 0], sizes = [2, 32], strides = [1, 1]} : vector<64x32xf32> to vector<2x32xf32>
    %454 = vector.extract_strided_slice %432 {offsets = [54, 0], sizes = [2, 32], strides = [1, 1]} : vector<64x32xf32> to vector<2x32xf32>
    %455 = vector.extract_strided_slice %432 {offsets = [36, 0], sizes = [4, 32], strides = [1, 1]} : vector<64x32xf32> to vector<4x32xf32>
    %456 = vector.extract_strided_slice %432 {offsets = [52, 0], sizes = [2, 32], strides = [1, 1]} : vector<64x32xf32> to vector<2x32xf32>
    %457 = tpu.concatenate %433, %434, %435, %436, %437, %438, %439, %440, %441, %442, %443, %444, %445, %446, %447, %448 in 0 : vector<2x32xf32>, vector<4x32xf32>, vector<2x32xf32>, vector<2x32xf32>, vector<4x32xf32>, vector<2x32xf32>, vector<2x32xf32>, vector<4x32xf32>, vector<2x32xf32>, vector<2x32xf32>, vector<4x32xf32>, vector<2x32xf32>, vector<2x32xf32>, vector<4x32xf32>, vector<2x32xf32>, vector<2x32xf32> -> vector<42x32xf32>
    %458 = tpu.concatenate %449, %450, %451, %452, %453, %454, %455, %456 in 0 : vector<4x32xf32>, vector<2x32xf32>, vector<2x32xf32>, vector<4x32xf32>, vector<2x32xf32>, vector<2x32xf32>, vector<4x32xf32>, vector<2x32xf32> -> vector<22x32xf32>
    %459 = tpu.concatenate %457, %458 in 0 : vector<42x32xf32>, vector<22x32xf32> -> vector<64x32xf32>
    %460 = arith.addf %249, %459 : vector<64x32xf32>
    %c1_117 = arith.constant 1 : index
    %c0_118 = arith.constant 0 : index
    %461 = vector.load %arg7[%c1_117, %c0_118] : memref<2x32xf32, #tpu.memory_space<vmem>>, vector<1x32xf32>
    %462 = vector.shape_cast %461 : vector<1x32xf32> to vector<32xf32>
    %463 = vector.shape_cast %462 : vector<32xf32> to vector<1x32xf32>
    %464 = vector.broadcast %463 : vector<1x32xf32> to vector<64x32xf32>
    %465 = arith.addf %460, %464 : vector<64x32xf32>
    %cst_119 = arith.constant dense<0.000000e+00> : vector<64xf32>
    %466 = vector.multi_reduction <add>, %465, %cst_119 [1] : vector<64x32xf32> to vector<64xf32>
    %467 = vector.shape_cast %466 : vector<64xf32> to vector<64x1xf32>
    %cst_120 = arith.constant 3.200000e+01 : f32
    %468 = vector.broadcast %cst_120 : f32 to vector<64x1xf32>
    %469 = arith.divf %467, %468 : vector<64x1xf32>
    %470 = vector.broadcast %469 : vector<64x1xf32> to vector<64x32xf32>
    %471 = arith.subf %465, %470 : vector<64x32xf32>
    %472 = arith.mulf %471, %471 : vector<64x32xf32>
    %cst_121 = arith.constant dense<0.000000e+00> : vector<64xf32>
    %473 = vector.multi_reduction <add>, %472, %cst_121 [1] : vector<64x32xf32> to vector<64xf32>
    %474 = vector.shape_cast %473 : vector<64xf32> to vector<64x1xf32>
    %cst_122 = arith.constant 3.200000e+01 : f32
    %475 = vector.broadcast %cst_122 : f32 to vector<64x1xf32>
    %476 = arith.divf %474, %475 : vector<64x1xf32>
    %477 = vector.broadcast %469 : vector<64x1xf32> to vector<64x32xf32>
    %478 = arith.subf %465, %477 : vector<64x32xf32>
    %cst_123 = arith.constant 9.99999974E-6 : f32
    %479 = vector.broadcast %cst_123 : f32 to vector<64x1xf32>
    %480 = arith.addf %476, %479 : vector<64x1xf32>
    %481 = math.rsqrt %480 : vector<64x1xf32>
    %482 = vector.broadcast %481 : vector<64x1xf32> to vector<64x32xf32>
    %483 = arith.mulf %478, %482 : vector<64x32xf32>
    %c1_124 = arith.constant 1 : index
    %c0_125 = arith.constant 0 : index
    %484 = vector.load %arg8[%c1_124, %c0_125] : memref<2x32xf32, #tpu.memory_space<vmem>>, vector<1x32xf32>
    %485 = vector.shape_cast %484 : vector<1x32xf32> to vector<32xf32>
    %486 = vector.shape_cast %485 : vector<32xf32> to vector<1x32xf32>
    %487 = vector.broadcast %486 : vector<1x32xf32> to vector<64x32xf32>
    %488 = arith.mulf %483, %487 : vector<64x32xf32>
    %c1_126 = arith.constant 1 : index
    %c0_127 = arith.constant 0 : index
    %489 = vector.load %arg9[%c1_126, %c0_127] : memref<2x32xf32, #tpu.memory_space<vmem>>, vector<1x32xf32>
    %490 = vector.shape_cast %489 : vector<1x32xf32> to vector<32xf32>
    %491 = vector.shape_cast %490 : vector<32xf32> to vector<1x32xf32>
    %492 = vector.broadcast %491 : vector<1x32xf32> to vector<64x32xf32>
    %493 = arith.addf %488, %492 : vector<64x32xf32>
    %494 = arith.truncf %493 : vector<64x32xf32> to vector<64x32xbf16>
    %c1_128 = arith.constant 1 : index
    %c0_129 = arith.constant 0 : index
    %c0_130 = arith.constant 0 : index
    %495 = vector.load %arg10[%c1_128, %c0_129, %c0_130] : memref<2x32x128xbf16, #tpu.memory_space<vmem>>, vector<1x32x128xbf16>
    %496 = vector.shape_cast %495 : vector<1x32x128xbf16> to vector<32x128xbf16>
    %cst_131 = arith.constant dense<0.000000e+00> : vector<64x128xf32>
    %497 = tpu.matmul %494, %496, %cst_131 {dimension_numbers = #tpu.dot_dimension_numbers<[1], [0], [0], [1], [0, 0, 1, 1], [], []>} : vector<64x32xbf16>, vector<32x128xbf16>, vector<64x128xf32> -> vector<64x128xf32>
    %c1_132 = arith.constant 1 : index
    %c0_133 = arith.constant 0 : index
    %498 = vector.load %arg11[%c1_132, %c0_133] : memref<2x128xf32, #tpu.memory_space<vmem>>, vector<1x128xf32>
    %499 = vector.shape_cast %498 : vector<1x128xf32> to vector<128xf32>
    %500 = vector.shape_cast %499 : vector<128xf32> to vector<1x128xf32>
    %501 = vector.broadcast %500 : vector<1x128xf32> to vector<64x128xf32>
    %502 = arith.addf %497, %501 : vector<64x128xf32>
    %cst_134 = arith.constant 5.000000e-01 : f32
    %503 = vector.broadcast %cst_134 : f32 to vector<64x128xf32>
    %504 = arith.mulf %503, %502 : vector<64x128xf32>
    %cst_135 = arith.constant 4.471500e-02 : f32
    %505 = vector.broadcast %cst_135 : f32 to vector<64x128xf32>
    %506 = arith.mulf %505, %502 : vector<64x128xf32>
    %507 = arith.mulf %506, %502 : vector<64x128xf32>
    %508 = arith.mulf %507, %502 : vector<64x128xf32>
    %509 = arith.addf %502, %508 : vector<64x128xf32>
    %cst_136 = arith.constant 0.797884583 : f32
    %510 = vector.broadcast %cst_136 : f32 to vector<64x128xf32>
    %511 = arith.mulf %510, %509 : vector<64x128xf32>
    %512 = math.tanh %511 : vector<64x128xf32>
    %cst_137 = arith.constant 1.000000e+00 : f32
    %513 = vector.broadcast %cst_137 : f32 to vector<64x128xf32>
    %514 = arith.addf %513, %512 : vector<64x128xf32>
    %515 = arith.mulf %504, %514 : vector<64x128xf32>
    %516 = arith.truncf %515 : vector<64x128xf32> to vector<64x128xbf16>
    %c1_138 = arith.constant 1 : index
    %c0_139 = arith.constant 0 : index
    %c0_140 = arith.constant 0 : index
    %517 = vector.load %arg12[%c1_138, %c0_139, %c0_140] : memref<2x128x32xbf16, #tpu.memory_space<vmem>>, vector<1x128x32xbf16>
    %518 = vector.shape_cast %517 : vector<1x128x32xbf16> to vector<128x32xbf16>
    %cst_141 = arith.constant dense<0.000000e+00> : vector<64x32xf32>
    %519 = tpu.matmul %516, %518, %cst_141 {dimension_numbers = #tpu.dot_dimension_numbers<[1], [0], [0], [1], [0, 0, 1, 1], [], []>} : vector<64x128xbf16>, vector<128x32xbf16>, vector<64x32xf32> -> vector<64x32xf32>
    %520 = arith.addf %465, %519 : vector<64x32xf32>
    %c1_142 = arith.constant 1 : index
    %c0_143 = arith.constant 0 : index
    %521 = vector.load %arg13[%c1_142, %c0_143] : memref<2x32xf32, #tpu.memory_space<vmem>>, vector<1x32xf32>
    %522 = vector.shape_cast %521 : vector<1x32xf32> to vector<32xf32>
    %523 = vector.shape_cast %522 : vector<32xf32> to vector<1x32xf32>
    %524 = vector.broadcast %523 : vector<1x32xf32> to vector<64x32xf32>
    %525 = arith.addf %520, %524 : vector<64x32xf32>
    %c0_144 = arith.constant 0 : index
    %c0_145 = arith.constant 0 : index
    %c0_146 = arith.constant 0 : index
    %526 = vector.load %arg16[%c0_144, %c0_145, %c0_146] : memref<1x64x32xf32, #tpu.memory_space<vmem>>, vector<1x64x32xf32>
    %527 = vector.shape_cast %526 : vector<1x64x32xf32> to vector<64x32xf32>
    %528 = vector.shape_cast %525 : vector<64x32xf32> to vector<1x64x32xf32>
    tpu.vector_store %arg16[%c0_144, %c0_145, %c0_146], %528 {strides = array<i32>} : memref<1x64x32xf32, #tpu.memory_space<vmem>>, vector<1x64x32xf32>,
    return
  }
  func.func @transform_0(%arg0: i32) -> (i32, i32, i32) {
    %c0_i32 = arith.constant 0 : i32
    %c0_i32_0 = arith.constant 0 : i32
    %c0_i32_1 = arith.constant 0 : i32
    return %arg0, %c0_i32, %c0_i32_0 : i32, i32, i32
  }
  func.func @transform_1(%arg0: i32) -> (i32, i32) {
    %c0_i32 = arith.constant 0 : i32
    %c0_i32_0 = arith.constant 0 : i32
    %c0_i32_1 = arith.constant 0 : i32
    return %c0_i32, %c0_i32_0 : i32, i32
  }
  func.func @transform_2(%arg0: i32) -> (i32, i32) {
    %c0_i32 = arith.constant 0 : i32
    %c0_i32_0 = arith.constant 0 : i32
    %c0_i32_1 = arith.constant 0 : i32
    return %c0_i32, %c0_i32_0 : i32, i32
  }
  func.func @transform_3(%arg0: i32) -> (i32, i32, i32) {
    %c0_i32 = arith.constant 0 : i32
    %c0_i32_0 = arith.constant 0 : i32
    %c0_i32_1 = arith.constant 0 : i32
    %c0_i32_2 = arith.constant 0 : i32
    return %c0_i32, %c0_i32_0, %c0_i32_1 : i32, i32, i32
  }
  func.func @transform_4(%arg0: i32) -> (i32, i32) {
    %c0_i32 = arith.constant 0 : i32
    %c0_i32_0 = arith.constant 0 : i32
    %c0_i32_1 = arith.constant 0 : i32
    return %c0_i32, %c0_i32_0 : i32, i32
  }
  func.func @transform_5(%arg0: i32) -> (i32, i32, i32) {
    %c0_i32 = arith.constant 0 : i32
    %c0_i32_0 = arith.constant 0 : i32
    %c0_i32_1 = arith.constant 0 : i32
    %c0_i32_2 = arith.constant 0 : i32
    return %c0_i32, %c0_i32_0, %c0_i32_1 : i32, i32, i32
  }
  func.func @transform_6(%arg0: i32) -> (i32, i32) {
    %c0_i32 = arith.constant 0 : i32
    %c0_i32_0 = arith.constant 0 : i32
    %c0_i32_1 = arith.constant 0 : i32
    return %c0_i32, %c0_i32_0 : i32, i32
  }
  func.func @transform_7(%arg0: i32) -> (i32, i32) {
    %c0_i32 = arith.constant 0 : i32
    %c0_i32_0 = arith.constant 0 : i32
    %c0_i32_1 = arith.constant 0 : i32
    return %c0_i32, %c0_i32_0 : i32, i32
  }
  func.func @transform_8(%arg0: i32) -> (i32, i32) {
    %c0_i32 = arith.constant 0 : i32
    %c0_i32_0 = arith.constant 0 : i32
    %c0_i32_1 = arith.constant 0 : i32
    return %c0_i32, %c0_i32_0 : i32, i32
  }
  func.func @transform_9(%arg0: i32) -> (i32, i32, i32) {
    %c0_i32 = arith.constant 0 : i32
    %c0_i32_0 = arith.constant 0 : i32
    %c0_i32_1 = arith.constant 0 : i32
    %c0_i32_2 = arith.constant 0 : i32
    return %c0_i32, %c0_i32_0, %c0_i32_1 : i32, i32, i32
  }
  func.func @transform_10(%arg0: i32) -> (i32, i32) {
    %c0_i32 = arith.constant 0 : i32
    %c0_i32_0 = arith.constant 0 : i32
    %c0_i32_1 = arith.constant 0 : i32
    return %c0_i32, %c0_i32_0 : i32, i32
  }
  func.func @transform_11(%arg0: i32) -> (i32, i32, i32) {
    %c0_i32 = arith.constant 0 : i32
    %c0_i32_0 = arith.constant 0 : i32
    %c0_i32_1 = arith.constant 0 : i32
    %c0_i32_2 = arith.constant 0 : i32
    return %c0_i32, %c0_i32_0, %c0_i32_1 : i32, i32, i32
  }
  func.func @transform_12(%arg0: i32) -> (i32, i32) {
    %c0_i32 = arith.constant 0 : i32
    %c0_i32_0 = arith.constant 0 : i32
    %c0_i32_1 = arith.constant 0 : i32
    return %c0_i32, %c0_i32_0 : i32, i32
  }
  func.func @transform_13(%arg0: i32) -> (i32, i32, i32, i32) {
    %c0_i32 = arith.constant 0 : i32
    %c0_i32_0 = arith.constant 0 : i32
    %c0_i32_1 = arith.constant 0 : i32
    %c0_i32_2 = arith.constant 0 : i32
    %c0_i32_3 = arith.constant 0 : i32
    return %c0_i32, %c0_i32_0, %c0_i32_1, %c0_i32_2 : i32, i32, i32, i32
  }
  func.func @transform_14(%arg0: i32) -> (i32, i32, i32) {
    %c0_i32 = arith.constant 0 : i32
    %c0_i32_0 = arith.constant 0 : i32
    %c0_i32_1 = arith.constant 0 : i32
    %c0_i32_2 = arith.constant 0 : i32
    return %c0_i32, %c0_i32_0, %c0_i32_1 : i32, i32, i32
  }
  func.func @transform_15(%arg0: i32) -> (i32, i32, i32) {
    %c0_i32 = arith.constant 0 : i32
    %c0_i32_0 = arith.constant 0 : i32
    %c0_i32_1 = arith.constant 0 : i32
    return %arg0, %c0_i32, %c0_i32_0 : i32, i32, i32
  }
}

</mosaic_0001>

<bundles_post_ra>
// kernel: forward.1
= control target key start
LH: loop header
LB: loop body
LE: loop exit
PB: predicated region body
PF: predicated region fallthrough
CT: control target
= control target key end

     0   :  { %20 = vsyncpa [#allocation3], 0  ;;  %s9922_s0 = inlined_call_operand.vmem [shape: f32[2,64,32], index: 0, kind: input, shape index: {}]   ;;  %s9923_s1 = inlined_call_operand.vmem [shape: f32[2,32], index: 1, kind: input, shape index: {}]   ;;  %s9924_s2 = inlined_call_operand.vmem [shape: f32[2,32], index: 2, kind: input, shape index: {}]   ;;  %s9925_s3 = inlined_call_operand.hbm [shape: bf16[2,32,96], index: 3, kind: input, shape index: {}]   ;;  %s9926_s4 = inlined_call_operand.vmem [shape: f32[2,96], index: 4, kind: input, shape index: {}]   ;;  %s9927_s5 = inlined_call_operand.hbm [shape: bf16[2,32,32], index: 5, kind: input, shape index: {}]   ;;  %s9928_s6 = inlined_call_operand.vmem [shape: f32[2,32], index: 6, kind: input, shape index: {}]   ;;  %s9929_s7 = inlined_call_operand.vmem [shape: f32[2,32], index: 7, kind: input, shape index: {}]   ;;  %s9930_s8 = inlined_call_operand.vmem [shape: f32[2,32], index: 8, kind: input, shape index: {}]   ;;  %s9931_s9 = inlined_call_operand.hbm [shape: bf16[2,32,128], index: 9, kind: input, shape index: {}]   ;;  %s9932_s10 = inlined_call_operand.vmem [shape: f32[2,128], index: 10, kind: input, shape index: {}]   ;;  %s9933_s11 = inlined_call_operand.hbm [shape: bf16[2,128,32], index: 11, kind: input, shape index: {}]   ;;  %s9934_s12 = inlined_call_operand.vmem [shape: f32[2,32], index: 12, kind: input, shape index: {}]   ;;  %s9935_s13 = inlined_call_operand.vmem [shape: f32[2,4,16,16], index: 13, kind: input, shape index: {}]   ;;  %s9936_s14 = inlined_call_operand.vmem [shape: f32[4,16,16], index: 14, kind: input, shape index: {}]   ;;  %s9937_s15 = inlined_call_operand.vmem [shape: f32[2,64,32], index: 15, kind: output, shape index: {}]  }
   0x1   :  { %21 = vsyncpa [#allocation5], 0 }
   0x2   :  { %22 = vsyncpa [#allocation8], 0  ;;  %s8109_s18 = smov 0  }
   0x3 LB: > { %s8115_s19 = sadd.s32 4294967295, %s8005_s18   ;;  %p6577_p0 = scmp.ge.s32.totalorder %s8005_s18, 1  ;;  %s8005_s18 = sphi %s8109_s18, %s28_s18  }
   0x4   : > { %p379_p1 = scmp.lt.s32.totalorder %s8005_s18, 3  ;;  %p7457_p2 = scmp.eq.s32.totalorder %s8115_s19, 0 }
   0x5   : > { %s8007_s21 = smov [#allocation4]   ;;  %s8008_s23 = smov [#allocation2]  }
   0x6   : > { %p8120_p3 = pnand %p6577_p0, %p379_p1  ;;  %s413_s22 = sshll.u32 %s8007_s21, 4  ;;  %s414_s22 = int_to_ptr.vmem [resolvable:$true] %s413_s22 }
   0x7   : > { %s397_s24 = sshll.u32 %s8008_s23, 4  ;;  %s8009_s26 = smov [#allocation6]   ;;  %s8126_s24 = int_to_ptr.vmem [resolvable:$true] %s397_s24 }
   0x8   : > { %p7444_p4 = pneg %p8120_p3  ;;  %s435_s27 = sshll.u32 %s8009_s26, 4  ;;  %s8134_s27 = int_to_ptr.vmem [resolvable:$true] %s435_s27 }
   0x9   : > { %s8010_s28 = smov [#allocation7]   ;;  %s7894_s30 = scalar_lea.vmem %s414_s22, 512 }
   0xa   : > { %p8130_p5 = pnand %p7457_p2, %p7444_p4  ;;  %s8136_s29 = sshll.u32 %s8010_s28, 4  ;;  %s452_s29 = int_to_ptr.vmem [resolvable:$true] %s8136_s29 }
   0xb   : > { %p7895_p7 = scmp.ne.s32.totalorder %s414_s22, %s7894_s30  ;;  %p7902_p10 = scmp.lt.s32.totalorder %s414_s22, %s414_s22 }
   0xc   : > { %p7885_p6 = pneg %p8130_p5  ;;  %p7903_p11 = scmp.lt.s32.totalorder %s7894_s30, %s7894_s30 }
   0xe   : > { %p7897_p8 = pnand %p7895_p7, %p7885_p6  ;;  %p7904_p12 = por %p7903_p11, %p7902_p10 }
  0x10   : > { %p7898_p9 = pneg %p7897_p8 }
  0x12   : > { %p7905_p13 = pnand %p7904_p12, %p7898_p9 }
  0x14   : > { %7908 = shalt.err (!%p7905_p13)
}
  0x15   : > { %s8011_s16 = smov 64   ;;  %s8012_s17 = smov 4  }
  0x16   : > { %7450 = dma.hbm_to_vmem [thread:$0]  (!%p8130_p5), %s9927_s5, 512, %s414_s22, [#allocation5], %s8011_s16, %s8011_s16, %s8012_s17  }
  0x17   : > { %s7920_s26 = scalar_lea.vmem %s8126_s24, 512  ;;  %p7928_p7 = scmp.lt.s32.totalorder %s8126_s24, %s8126_s24 }
  0x18   : > { %p7921_p0 = scmp.ne.s32.totalorder %s8126_s24, %s7920_s26  ;;  %p7929_p8 = scmp.lt.s32.totalorder %s7920_s26, %s7920_s26 }
  0x1a   : > { %p7923_p1 = pnand %p7921_p0, %p7885_p6  ;;  %p7930_p9 = por %p7929_p8, %p7928_p7 }
  0x1c   : > { %p7924_p4 = pneg %p7923_p1 }
  0x1e   : > { %p7931_p10 = pnand %p7930_p9, %p7924_p4 }
  0x20   : > { %7934 = shalt.err (!%p7931_p10)
}
  0x21   : > { %7447 = dma.hbm_to_vmem [thread:$0]  (!%p8130_p5), %s9925_s3, 512, %s8126_s24, [#allocation3], %s8011_s16, %s8011_s16, %s8012_s17  }
  0x22   : > { %s7946_s30 = scalar_lea.vmem %s8134_s27, 512  ;;  %p7954_p0 = scmp.lt.s32.totalorder %s8134_s27, %s8134_s27 }
  0x23   : > { %p7947_p11 = scmp.ne.s32.totalorder %s8134_s27, %s7946_s30  ;;  %p7955_p1 = scmp.lt.s32.totalorder %s7946_s30, %s7946_s30 }
  0x25   : > { %p7949_p12 = pnand %p7947_p11, %p7885_p6  ;;  %p7956_p4 = por %p7955_p1, %p7954_p0 }
  0x27   : > { %p7950_p13 = pneg %p7949_p12 }
  0x29   : > { %p7957_p7 = pnand %p7956_p4, %p7950_p13 }
  0x2b   : > { %7960 = shalt.err (!%p7957_p7)
}
  0x2c   : > { %7453 = dma.hbm_to_vmem [thread:$0]  (!%p8130_p5), %s9931_s9, 512, %s8134_s27, [#allocation5], %s8011_s16, %s8011_s16, %s8012_s17  }
  0x2d   : > { %s7972_s23 = scalar_lea.vmem %s452_s29, 2048  ;;  %p7980_p11 = scmp.lt.s32.totalorder %s452_s29, %s452_s29 }
  0x2e   : > { %p7973_p8 = scmp.ne.s32.totalorder %s452_s29, %s7972_s23  ;;  %p7981_p12 = scmp.lt.s32.totalorder %s7972_s23, %s7972_s23 }
  0x30   : > { %p7975_p9 = pnand %p7973_p8, %p7885_p6  ;;  %p7982_p13 = por %p7981_p12, %p7980_p11 }
  0x32   : > { %p7976_p10 = pneg %p7975_p9 }
  0x34   : > { %p7983_p0 = pnand %p7982_p13, %p7976_p10 }
  0x36   : > { %7986 = shalt.err (!%p7983_p0)
}
  0x37   : > { %7456 = dma.hbm_to_vmem [thread:$0]  (!%p8130_p5), %s9933_s11, 2048, %s452_s29, [#allocation8], %s8011_s16, %s8011_s16, %s8012_s17  }
  0x38   : > { %484 = sbr.rel (%p8120_p3) target bundleno = 8552 (0x2168), region = 80 }
  0x3d   : > { %7992 = dma.done.wait (%p7457_p2), [#allocation3], 512  }
  0x3e   : > { %7994 = vsyncadd (%p7457_p2), [#allocation3], 4294966784 }
  0x3f   : > { %7996 = dma.done.wait (%p7457_p2), [#allocation5], 1024  }
  0x40   : > { %7998 = vsyncadd (%p7457_p2), [#allocation5], 4294966272 }
  0x41   : > { %8000 = dma.done.wait (%p7457_p2), [#allocation8], 2048  }
  0x42   : > { %8002 = vsyncadd (%p7457_p2), [#allocation8], 4294965248  ;;  %p544_p3 = scmp.lt.s32.totalorder %s8115_s19, 1  ;;  %vm563_vm0 = vcmask 261120   ;;  %v7495_v56 = vld [vmem:[#allocation2 + $0x8] sm:$0xff]   ;;  %v7496_v57 = vld [vmem:[#allocation2] sm:$0xff]  }
  0x43   : > { %6924 = vmatprep.subr.bf16.mxu1 %v7495_v56  ;;  %vm719_vm1 = vcmask 1043456   ;;  %vm8014_vm2 = vmmov 0   ;;  %s8015_s23 = smov 96   ;;  %vm845_vm3 = vcmask 64512   ;;  %vm1043_vm4 = vcmask 130048   ;;  %s8016_s16 = smov 64  }
  0x44   : > { %s9979_s19 = smov (!%p544_p3, %s8115_s19), 1  ;;  %6925 = vmatpush3.bf16.msra.mxu1 %v7495_v56  ;;  %s8017_s17 = smov 88   ;;  %vm2848_vm5 = vcmask 195584   ;;  %vm3624_vm6 = vcmask 1045504   ;;  %vm3621_vm7 = vcmask 1041408  }
  0x45   : > { %s9938_s20 = sshll.u32 %s9979_s19, 6  ;;  %6926 = vmatprep.subr.bf16.mxu1 %v7496_v57  ;;  %s8018_s22 = smov 120  }
  0x46   : > { %s8219_s29 = scalar_lea.vmem %s9922_s0, %s9938_s20  ;;  %s8019_s28 = smov 56  }
  0x47   : > { %v556_v0 = vld [vmem:[%s8219_s29 + $0x8] sm:$0xff]  ;;  %v558_v1 = vld [vmem:[%s8219_s29 + $0x18] sm:$0xff]  ;;  %v555_v2 = vld [vmem:[%s8219_s29] sm:$0xff]  ;;  %s8020_s25 = smov 80   ;;  %s9953_s27 = smov 112  }
  0x48   : > { %v567_v3 = vsel %vm563_vm0, %v556_v0, 0.0  ;;  %v564_v4 = vsel %vm563_vm0, %v555_v2, 0.0  ;;  %v560_v5 = vld [vmem:[%s8219_s29 + $0x28] sm:$0xff]  ;;  %v557_v6 = vld [vmem:[%s8219_s29 + $0x10] sm:$0xff]  ;;  %v559_v7 = vld [vmem:[%s8219_s29 + $0x20] sm:$0xff]  ;;  %v573_v8 = vsel %vm563_vm0, %v558_v1, 0.0  ;;  %6927 = vmatpush3.bf16.msra.mxu1 %v7496_v57 }
  0x49   : > { %568 = vadd.xlane.f32.xlu0 %v567_v3  ;;  %565 = vadd.xlane.f32.xlu1 %v564_v4  ;;  %v579_v9 = vsel %vm563_vm0, %v560_v5, 0.0  ;;  %v570_v10 = vsel %vm563_vm0, %v557_v6, 0.0  ;;  %v576_v11 = vsel %vm563_vm0, %v559_v7, 0.0  ;;  %v562_v12 = vld [vmem:[%s8219_s29 + $0x38] sm:$0xff]  ;;  %v561_v13 = vld [vmem:[%s8219_s29 + $0x30] sm:$0xff]  ;;  %s9951_s30 = smov 48  }
  0x4a   : > { %v585_v14 = vsel %vm563_vm0, %v562_v12, 0.0  ;;  %v582_v15 = vsel %vm563_vm0, %v561_v13, 0.0  ;;  %s9941_s21 = smov 72   ;;  %s9939_s24 = smov 104  }
  0x4b   : > { %s9949_s20 = smov 40   ;;  %s9943_s26 = smov 24  }
  0x4d   : > { %574 = vadd.xlane.f32.xlu0 %v573_v8  ;;  %571 = vadd.xlane.f32.xlu1 %v570_v10 }
  0x51   : > { %580 = vadd.xlane.f32.xlu0 %v579_v9  ;;  %586 = vadd.xlane.f32.xlu1 %v585_v14 }
  0x55   : > { %577 = vadd.xlane.f32.xlu0 %v576_v11  ;;  %583 = vadd.xlane.f32.xlu1 %v582_v15 }
  0xd2   : > { %v569_v16 = vpop.xlane.xlu0 %568  ;;  %v566_v17 = vpop.xlane.xlu1 %565 }
  0xd3   : > { %v590_v18 = vmul.f32 0.03125, %v569_v16  ;;  %v589_v19 = vmul.f32 0.03125, %v566_v17 }
  0xd5   : > { %v8237_v20 = vsub.f32 %v556_v0, %v590_v18  ;;  %v8239_v21 = vsub.f32 %v555_v2, %v589_v19 }
  0xd6   : > { %v575_v22 = vpop.xlane.xlu0 %574  ;;  %v572_v23 = vpop.xlane.xlu1 %571 }
  0xd7   : > { %v592_v24 = vmul.f32 0.03125, %v575_v22  ;;  %v606_v25 = vmul.f32 %v8237_v20, %v8237_v20  ;;  %v591_v26 = vmul.f32 0.03125, %v572_v23  ;;  %v605_v27 = vmul.f32 %v8239_v21, %v8239_v21  ;;  %v6592_v22 = vld [vmem:[%s9923_s1] ss:$0 sm:$0xff] }
  0xd9   : > { %v8245_v28 = vsub.f32 %v558_v1, %v592_v24  ;;  %v616_v29 = vsel %vm563_vm0, %v606_v25, 0.0  ;;  %v8248_v30 = vsub.f32 %v557_v6, %v591_v26  ;;  %v613_v32 = vsel %vm563_vm0, %v605_v27, 0.0 }
  0xda   : > { %617 = vadd.xlane.f32.xlu0 %v616_v29  ;;  %v581_v31 = vpop.xlane.xlu0 %580  ;;  %v587_v33 = vpop.xlane.xlu1 %586  ;;  %v6593_v29 = vld [vmem:[%s9924_s2] ss:$0 sm:$0xff] }
  0xdb   : > { %v594_v34 = vmul.f32 0.03125, %v581_v31  ;;  %v608_v35 = vmul.f32 %v8245_v28, %v8245_v28  ;;  %v596_v36 = vmul.f32 0.03125, %v587_v33  ;;  %v607_v37 = vmul.f32 %v8248_v30, %v8248_v30 }
  0xdd   : > { %v8255_v38 = vsub.f32 %v560_v5, %v594_v34  ;;  %v622_v39 = vsel %vm563_vm0, %v608_v35, 0.0  ;;  %v8258_v40 = vsub.f32 %v562_v12, %v596_v36  ;;  %v619_v42 = vsel %vm563_vm0, %v607_v37, 0.0 }
  0xde   : > { %v578_v41 = vpop.xlane.xlu0 %577  ;;  %623 = vadd.xlane.f32.xlu1 %v622_v39  ;;  %614 = vadd.xlane.f32.xlu0 %v613_v32  ;;  %v584_v43 = vpop.xlane.xlu1 %583 }
  0xdf   : > { %v593_v44 = vmul.f32 0.03125, %v578_v41  ;;  %v610_v45 = vmul.f32 %v8255_v38, %v8255_v38  ;;  %v595_v46 = vmul.f32 0.03125, %v584_v43  ;;  %v612_v47 = vmul.f32 %v8258_v40, %v8258_v40 }
  0xe1   : > { %v8265_v48 = vsub.f32 %v559_v7, %v593_v44  ;;  %v628_v49 = vsel %vm563_vm0, %v610_v45, 0.0  ;;  %v8268_v50 = vsub.f32 %v561_v13, %v595_v46  ;;  %v634_v52 = vsel %vm563_vm0, %v612_v47, 0.0 }
  0xe2   : > { %629 = vadd.xlane.f32.xlu0 %v628_v49  ;;  %620 = vadd.xlane.f32.xlu1 %v619_v42 }
  0xe3   : > { %v609_v51 = vmul.f32 %v8265_v48, %v8265_v48  ;;  %v611_v53 = vmul.f32 %v8268_v50, %v8268_v50 }
  0xe5   : > { %v625_v54 = vsel %vm563_vm0, %v609_v51, 0.0  ;;  %v631_v55 = vsel %vm563_vm0, %v611_v53, 0.0 }
  0xe6   : > { %626 = vadd.xlane.f32.xlu0 %v625_v54  ;;  %635 = vadd.xlane.f32.xlu1 %v634_v52 }
  0xea   : > { %632 = vadd.xlane.f32.xlu1 %v631_v55 }
 0x163   : > { %v618_v58 = vpop.xlane.xlu0 %617 }
 0x164   : > { %v638_v59 = vmul.f32 0.03125, %v618_v58 }
 0x166   : > { %v646_v60 = vadd.f32 1e-05, %v638_v59 }
 0x167   : > { %v615_v61 = vpop.xlane.xlu0 %614  ;;  %v624_v62 = vpop.xlane.xlu1 %623 }
 0x168   : > { %7523 = vrsqrt.f32 %v646_v60  ;;  %v637_v63 = vmul.f32 0.03125, %v615_v61  ;;  %v640_v0 = vmul.f32 0.03125, %v624_v62 }
 0x16a   : > { %v645_v1 = vadd.f32 1e-05, %v637_v63  ;;  %v648_v2 = vadd.f32 1e-05, %v640_v0 }
 0x16b   : > { %v630_v3 = vpop.xlane.xlu0 %629  ;;  %v621_v4 = vpop.xlane.xlu1 %620 }
 0x16c   : > { %7525 = vrsqrt.f32 %v645_v1  ;;  %v642_v5 = vmul.f32 0.03125, %v630_v3  ;;  %v639_v6 = vmul.f32 0.03125, %v621_v4 }
 0x16d   : > { %7527 = vrsqrt.f32 %v648_v2 }
 0x16e   : > { %v650_v7 = vadd.f32 1e-05, %v642_v5  ;;  %v647_v8 = vadd.f32 1e-05, %v639_v6 }
 0x16f   : > { %v627_v9 = vpop.xlane.xlu0 %626  ;;  %v636_v10 = vpop.xlane.xlu1 %635 }
 0x170   : > { %7529 = vrsqrt.f32 %v650_v7  ;;  %v641_v11 = vmul.f32 0.03125, %v627_v9  ;;  %v644_v12 = vmul.f32 0.03125, %v636_v10  ;;  %v6594_v10 = vld [vmem:[%s9926_s4] ss:$0 sm:$0xff] }
 0x171   : > { %7531 = vrsqrt.f32 %v647_v8  ;;  %v9955_v8 = vmov 0.0  }
 0x172   : > { %v649_v13 = vadd.f32 1e-05, %v641_v11  ;;  %v652_v14 = vadd.f32 1e-05, %v644_v12  ;;  %6936 = vmatprep.subr.bf16.mxu1 %v9955_v8  ;;  %6948 = vmatprep.subr.bf16.mxu0 %v9955_v8 }
 0x173   : > { %v633_v15 = vpop.xlane.xlu1 %632  ;;  %6950 = vmatprep.mubr.msk.bf16.mxu0 %vm8014_vm2, %v9955_v8 }
 0x174   : > { %7533 = vrsqrt.f32 %v649_v13  ;;  %v643_v16 = vmul.f32 0.03125, %v633_v15 }
 0x175   : > { %v7524_v17 = vpop.eup %7523  ;;  %7535 = vrsqrt.f32 %v652_v14 }
 0x176   : > { %v651_v18 = vadd.f32 1e-05, %v643_v16  ;;  %v662_v19 = vmul.f32 %v7524_v17, %v8237_v20 }
 0x178   : > { %7537 = vrsqrt.f32 %v651_v18  ;;  %v675_v26 = vmul.f32 %v6592_v22, %v662_v19 }
 0x179   : > { %v7526_v23 = vpop.eup %7525 }
 0x17a   : > { %v7528_v24 = vpop.eup %7527  ;;  %v661_v25 = vmul.f32 %v7526_v23, %v8239_v21  ;;  %v688_v35 = vadd.f32 %v6593_v29, %v675_v26 }
 0x17b   : > { %v664_v27 = vmul.f32 %v7528_v24, %v8245_v28 }
 0x17c   : > { %v674_v31 = vmul.f32 %v6592_v22, %v661_v25  ;;  %v696_v43 = vrot.slane %v688_v35, 4 }
 0x17d   : > { %v7530_v32 = vpop.eup %7529  ;;  %v677_v33 = vmul.f32 %v6592_v22, %v664_v27 }
 0x17e   : > { %v7532_v20 = vpop.eup %7531  ;;  %v666_v34 = vmul.f32 %v7530_v32, %v8255_v38  ;;  %v687_v37 = vadd.f32 %v6593_v29, %v674_v31 }
 0x17f   : > { %v663_v36 = vmul.f32 %v7532_v20, %v8248_v30  ;;  %v690_v39 = vadd.f32 %v6593_v29, %v677_v33 }
 0x180   : > { %v679_v44 = vmul.f32 %v6592_v22, %v666_v34  ;;  %v702_v49 = vrot.slane %v687_v37, 4  ;;  %v720_v30 = vsel %vm719_vm1, %v687_v37, %v696_v43 }
 0x181   : > { %v7534_v41 = vpop.eup %7533  ;;  %v676_v21 = vmul.f32 %v6592_v22, %v663_v36  ;;  %v699_v47 = vrot.slane %v690_v39, 4 }
 0x182   : > { %v7536_v42 = vpop.eup %7535  ;;  %v665_v28 = vmul.f32 %v7534_v41, %v8265_v48  ;;  %v692_v57 = vadd.f32 %v6593_v29, %v679_v44  ;;  %v722_v58 = vsel %vm719_vm1, %v702_v49, %v688_v35 }
 0x183   : > { %v668_v45 = vmul.f32 %v7536_v42, %v8258_v40  ;;  %v689_v46 = vadd.f32 %v6593_v29, %v676_v21  ;;  %v834_v42 = vld [vmem:[%s9935_s13] sm:$0xff] }
 0x184   : > { %v678_v51 = vmul.f32 %v6592_v22, %v665_v28  ;;  %v708_v63 = vrot.slane %v692_v57, 4 }
 0x185   : > { %v7538_v38 = vpop.eup %7537  ;;  %v705_v52 = vrot.slane %v689_v46, 4  ;;  %v721_v53 = vsel %vm719_vm1, %v689_v46, %v699_v47  ;;  %v681_v54 = vmul.f32 %v6592_v22, %v668_v45  ;;  %v835_v45 = vld [vmem:[%s9935_s13 + $0x8] sm:$0xff] }
 0x186   : > { %v667_v55 = vmul.f32 %v7538_v38, %v8268_v50  ;;  %v728_v56 = vpack.c.bf16 %v721_v53, %v720_v30  ;;  %v691_v48 = vadd.f32 %v6593_v29, %v678_v51 }
 0x187   : > { %v723_v40 = vsel %vm719_vm1, %v705_v52, %v690_v39  ;;  %v694_v59 = vadd.f32 %v6593_v29, %v681_v54 }
 0x188   : > { %6928 = vmatprep.mubr.msk.bf16.mxu1 %vm563_vm0, %v728_v56  ;;  %v729_v60 = vpack.c.bf16 %v723_v40, %v722_v58  ;;  %v680_v61 = vmul.f32 %v6592_v22, %v667_v55  ;;  %v714_v1 = vrot.slane %v691_v48, 4  ;;  %v724_v50 = vsel %vm719_vm1, %v691_v48, %v708_v63 }
 0x189   : > { %v711_v0 = vrot.slane %v694_v59, 4 }
 0x18a   : > { %6929 = vmatmul.mubr.msk.bf16.vlgmr.msra.gmra.mxu1 %vm563_vm0, %v729_v60  ;;  %v693_v62 = vadd.f32 %v6593_v29, %v680_v61  ;;  %v726_v5 = vsel %vm719_vm1, %v714_v1, %v692_v57 }
 0x18c   : > { %v725_v2 = vsel %vm719_vm1, %v693_v62, %v711_v0  ;;  %v717_v3 = vrot.slane %v693_v62, 4 }
 0x18d   : > { %v730_v4 = vpack.c.bf16 %v725_v2, %v724_v50 }
 0x18e   : > { %v727_v6 = vsel %vm719_vm1, %v717_v3, %v694_v59 }
 0x18f   : > { %6932 = vmatprep.mubr.msk.bf16.mxu1 %vm563_vm0, %v730_v4  ;;  %v731_v7 = vpack.c.bf16 %v727_v6, %v726_v5 }
 0x192   : > { %6933 = vmatmul.mubr.msk.bf16.gmra.mxu1 %vm563_vm0, %v731_v7 }
 0x193   : > { %6938 = vmatprep.mubr.msk.bf16.mxu1 %vm8014_vm2, %v9955_v8 }
 0x24a   : > { %v6930_v9 = vpop.f32.mrf.mxu1 }
 0x24b   : > { %v808_v13 = vadd.f32 %v6930_v9, %v6594_v10 }
 0x24c   : > { %v799_v11 = vpop.f32.mrf.mxu1 }
 0x24d   : > { %v800_v16 = vadd.f32 %v6594_v10, %v799_v11 }
 0x24e   : > { %v6931_v12 = vpop.f32.mrf.mxu1 }
 0x24f   : > { %v811_v14 = vadd.f32 %v6931_v12, %v6594_v10 }
 0x250   : > { %v802_v15 = vpop.f32.mrf.mxu1 }
 0x251   : > { %v8312_v17 = vpack.c.bf16 %v811_v14, %v808_v13  ;;  %v803_v18 = vadd.f32 %v6594_v10, %v802_v15 }
 0x252   : > { %v6934_v19 = vpop.f32.mrf.mxu1 }
 0x253   : > { %v8314_v22 = vpack.c.bf16 %v803_v18, %v800_v16  ;;  %894 = vrot.lane.b32.xlu1 %v8312_v17, %s8015_s23  ;;  %v824_v32 = vadd.f32 %v6934_v19, %v6594_v10 }
 0x254   : > { %v815_v23 = vpop.f32.mrf.mxu1 }
 0x255   : > { %843 = vrot.lane.b32.xlu0 %v8314_v22, %s8015_s23  ;;  %v816_v26 = vadd.f32 %v6594_v10, %v815_v23 }
 0x256   : > { %v6935_v24 = vpop.f32.mrf.mxu1 }
 0x257   : > { %v827_v29 = vadd.f32 %v6935_v24, %v6594_v10 }
 0x258   : > { %v818_v25 = vpop.f32.mrf.mxu1 }
 0x259   : > { %v819_v27 = vadd.f32 %v6594_v10, %v818_v25  ;;  %v8324_v33 = vpack.c.bf16 %v827_v29, %v824_v32 }
 0x25b   : > { %v8320_v31 = vpack.c.bf16 %v819_v27, %v816_v26 }
 0x25d   : > { %944 = vrot.lane.b32.xlu1 %v8320_v31, %s8015_s23 }
 0x261   : > { %994 = vrot.lane.b32.xlu1 %v8324_v33, %s8015_s23 }
 0x2c5   : > { %v895_v35 = vpop.permute.xlu1 %894 }
 0x2c6   : > { %v900_v37 = vsel %vm845_vm3, %v895_v35, 0 }
 0x2c7   : > { %v844_v20 = vpop.permute.xlu0 %843 }
 0x2c8   : > { %v850_v34 = vsel %vm845_vm3, %v844_v20, 0 }
 0x2c9   : > { %6937 = vmatpush3.bf16.xpose.msra.mxu1 %v850_v34 }
 0x2ca   : > { %6942 = vmatprep.subr.bf16.mxu1 %v9955_v8 }
 0x2cf   : > { %v945_v36 = vpop.permute.xlu1 %944 }
 0x2d0   : > { %6939 = vmatmul.mubr.msk.bf16.vlgmr.msra.gmra.mxu1 %vm845_vm3, %v8314_v22  ;;  %v950_v39 = vsel %vm845_vm3, %v945_v36, 0 }
 0x2d1   : > { %6943 = vmatpush3.bf16.xpose.msra.mxu1 %v900_v37  ;;  %6949 = vmatpush3.bf16.xpose.msra.mxu0 %v950_v39 }
 0x2d2   : > { %6944 = vmatprep.mubr.msk.bf16.mxu1 %vm8014_vm2, %v9955_v8  ;;  %6954 = vmatprep.subr.bf16.mxu1 %v9955_v8 }
 0x2d3   : > { %6960 = vmatprep.subr.bf16.mxu0 %v9955_v8  ;;  %v995_v41 = vpop.permute.xlu1 %994 }
 0x2d4   : > { %v1000_v21 = vsel %vm845_vm3, %v995_v41, 0 }
 0x2d8   : > { %6945 = vmatmul.mubr.msk.bf16.vlgmr.msra.gmra.mxu1 %vm845_vm3, %v8312_v17  ;;  %6951 = vmatmul.mubr.msk.bf16.vlgmr.msra.gmra.mxu0 %vm845_vm3, %v8320_v31 }
 0x2d9   : > { %6955 = vmatpush3.bf16.xpose.msra.mxu1 %v1000_v21  ;;  %6956 = vmatprep.mubr.msk.bf16.mxu1 %vm8014_vm2, %v9955_v8 }
 0x2da   : > { %6966 = vmatprep.subr.bf16.mxu1 %v9955_v8  ;;  %6962 = vmatprep.mubr.msk.bf16.mxu0 %vm8014_vm2, %v9955_v8 }
 0x2e0   : > { %6957 = vmatmul.mubr.msk.bf16.vlgmr.msra.gmra.mxu1 %vm845_vm3, %v8324_v33 }
 0x2e1   : > { %6968 = vmatprep.mubr.msk.bf16.mxu1 %vm8014_vm2, %v9955_v8 }
 0x390   : > { %v886_v28 = vpop.f32.mrf.mxu1 }
 0x391   : > { %v887_v43 = vadd.f32 %v886_v28, %v834_v42 }
 0x392   : > { %v6940_v44 = vpop.f32.mrf.mxu1 }
 0x393   : > { %v1044_v46 = vsel %vm1043_vm4, %v887_v43, -inf }
 0x394   : > { %1045 = vmax.xlane.f32.xlu0 %v1044_v46  ;;  %v889_v47 = vpop.f32.mrf.mxu1 }
 0x395   : > { %v890_v49 = vadd.f32 %v889_v47, %v835_v45 }
 0x396   : > { %v6941_v51 = vpop.f32.mrf.mxu1 }
 0x397   : > { %v1047_v38 = vsel %vm1043_vm4, %v890_v49, -inf }
 0x398   : > { %1048 = vmax.xlane.f32.xlu1 %v1047_v38  ;;  %v936_v52 = vpop.f32.mrf.mxu1  ;;  %v986_v30 = vpop.f32.mrf.mxu0 }
 0x399   : > { %v937_v53 = vadd.f32 %v936_v52, %v834_v42  ;;  %v987_v61 = vadd.f32 %v986_v30, %v834_v42 }
 0x39a   : > { %v6946_v54 = vpop.f32.mrf.mxu1  ;;  %v6952_v55 = vpop.f32.mrf.mxu0 }
 0x39b   : > { %v1050_v56 = vsel %vm1043_vm4, %v937_v53, -inf  ;;  %v1056_v2 = vsel %vm1043_vm4, %v987_v61, -inf }
 0x39c   : > { %1051 = vmax.xlane.f32.xlu0 %v1050_v56  ;;  %v939_v48 = vpop.f32.mrf.mxu1  ;;  %v989_v57 = vpop.f32.mrf.mxu0 }
 0x39d   : > { %v940_v58 = vadd.f32 %v939_v48, %v835_v45  ;;  %v990_v40 = vadd.f32 %v989_v57, %v835_v45 }
 0x39e   : > { %v6947_v59 = vpop.f32.mrf.mxu1  ;;  %v6953_v60 = vpop.f32.mrf.mxu0 }
 0x39f   : > { %v1053_v62 = vsel %vm1043_vm4, %v940_v58, -inf  ;;  %v1059_v63 = vsel %vm1043_vm4, %v990_v40, -inf }
 0x3a0   : > { %1054 = vmax.xlane.f32.xlu0 %v1053_v62  ;;  %1060 = vmax.xlane.f32.xlu1 %v1059_v63  ;;  %v1036_v0 = vpop.f32.mrf.mxu1 }
 0x3a1   : > { %v1037_v50 = vadd.f32 %v1036_v0, %v834_v42 }
 0x3a2   : > { %v6958_v1 = vpop.f32.mrf.mxu1 }
 0x3a3   : > { %v1062_v5 = vsel %vm1043_vm4, %v1037_v50, -inf }
 0x3a4   : > { %1057 = vmax.xlane.f32.xlu0 %v1056_v2  ;;  %v1039_v3 = vpop.f32.mrf.mxu1 }
 0x3a5   : > { %v8371_v6 = vadd.f32 %v1039_v3, %v835_v45 }
 0x3a6   : > { %v6959_v4 = vpop.f32.mrf.mxu1 }
 0x3a7   : > { %v1065_v7 = vsel %vm1043_vm4, %v8371_v6, -inf }
 0x3a8   : > { %1063 = vmax.xlane.f32.xlu0 %v1062_v5 }
 0x3b1   : > { %1183 = vrot.lane.b32.xlu1 %v8312_v17, %s8016_s16 }
 0x3b5   : > { %1230 = vrot.lane.b32.xlu1 %v8320_v31, %s8016_s16 }
 0x3be   : > { %1136 = vrot.lane.b32.xlu0 %v8314_v22, %s8016_s16 }
 0x3d9   : > { %1066 = vmax.xlane.f32.xlu1 %v1065_v7 }
 0x3ea   : > { %1277 = vrot.lane.b32.xlu1 %v8324_v33, %s8016_s16 }
 0x41d   : > { %v1046_v9 = vpop.xlane.xlu0 %1045 }
 0x41e   : > { %v1068_v10 = vsub.f32 %v887_v43, %v1046_v9 }
 0x420   : > { %v1076_v11 = vmul.f32 1.442695, %v1068_v10 }
 0x421   : > { %v1049_v12 = vpop.xlane.xlu1 %1048 }
 0x422   : > { %7539 = vpow2.f32 %v1076_v11  ;;  %v1069_v13 = vsub.f32 %v890_v49, %v1049_v12 }
 0x424   : > { %v1078_v14 = vmul.f32 1.442695, %v1069_v13 }
 0x425   : > { %v1052_v15 = vpop.xlane.xlu0 %1051 }
 0x426   : > { %7541 = vpow2.f32 %v1078_v14  ;;  %v1070_v16 = vsub.f32 %v937_v53, %v1052_v15 }
 0x428   : > { %v1080_v18 = vmul.f32 1.442695, %v1070_v16 }
 0x429   : > { %v1055_v19 = vpop.xlane.xlu0 %1054  ;;  %v1061_v23 = vpop.xlane.xlu1 %1060 }
 0x42a   : > { %7543 = vpow2.f32 %v1080_v18  ;;  %v1071_v24 = vsub.f32 %v940_v58, %v1055_v19  ;;  %v1073_v25 = vsub.f32 %v990_v40, %v1061_v23 }
 0x42c   : > { %v1082_v26 = vmul.f32 1.442695, %v1071_v24  ;;  %v1086_v27 = vmul.f32 1.442695, %v1073_v25 }
 0x42d   : > { %v1058_v29 = vpop.xlane.xlu0 %1057  ;;  %v1184_v32 = vpop.permute.xlu1 %1183 }
 0x42e   : > { %7545 = vpow2.f32 %v1082_v26  ;;  %v1072_v20 = vsub.f32 %v987_v61, %v1058_v29  ;;  %6967 = vmatpush3.bf16.msra.mxu1 %v1184_v32 }
 0x42f   : > { %v8377_v34 = vpop.eup %7539  ;;  %6978 = vmatprep.subr.bf16.mxu1 %v9955_v8  ;;  %7547 = vpow2.f32 %v1086_v27 }
 0x430   : > { %v1084_v35 = vmul.f32 1.442695, %v1072_v20  ;;  %v1092_v36 = vsel %vm1043_vm4, %v8377_v34, 0.0 }
 0x431   : > { %1093 = vadd.xlane.f32.xlu0 %v1092_v36  ;;  %v1064_v37 = vpop.xlane.xlu0 %1063  ;;  %v1231_v53 = vpop.permute.xlu1 %1230 }
 0x432   : > { %7549 = vpow2.f32 %v1084_v35  ;;  %v1074_v39 = vsub.f32 %v1037_v50, %v1064_v37 }
 0x433   : > { %v7542_v41 = vpop.eup %7541 }
 0x434   : > { %v1088_v21 = vmul.f32 1.442695, %v1074_v39  ;;  %v1095_v42 = vsel %vm1043_vm4, %v7542_v41, 0.0 }
 0x435   : > { %v1137_v28 = vpop.permute.xlu0 %1136  ;;  %1096 = vadd.xlane.f32.xlu1 %v1095_v42 }
 0x436   : > { %7551 = vpow2.f32 %v1088_v21  ;;  %6961 = vmatpush3.bf16.msra.mxu0 %v1137_v28 }
 0x437   : > { %v7544_v43 = vpop.eup %7543  ;;  %6972 = vmatprep.subr.bf16.mxu0 %v9955_v8 }
 0x438   : > { %v1098_v44 = vsel %vm1043_vm4, %v7544_v43, 0.0 }
 0x439   : > { %1099 = vadd.xlane.f32.xlu0 %v1098_v44 }
 0x43b   : > { %v7546_v45 = vpop.eup %7545 }
 0x43c   : > { %v1101_v46 = vsel %vm1043_vm4, %v7546_v45, 0.0  ;;  %v7548_v47 = vpop.eup %7547 }
 0x43d   : > { %1102 = vadd.xlane.f32.xlu1 %v1101_v46  ;;  %v1107_v38 = vsel %vm1043_vm4, %v7548_v47, 0.0 }
 0x43f   : > { %v7550_v49 = vpop.eup %7549 }
 0x440   : > { %v1104_v51 = vsel %vm1043_vm4, %v7550_v49, 0.0 }
 0x441   : > { %1105 = vadd.xlane.f32.xlu0 %v1104_v51  ;;  %1108 = vadd.xlane.f32.xlu1 %v1107_v38 }
 0x443   : > { %v8388_v52 = vpop.eup %7551 }
 0x444   : > { %v1110_v30 = vsel %vm1043_vm4, %v8388_v52, 0.0 }
 0x445   : > { %1111 = vadd.xlane.f32.xlu0 %v1110_v30 }
 0x452   : > { %1381 = vrot.lane.b32.xlu1 %v8312_v17, %s8017_s17 }
 0x45b   : > { %1330 = vrot.lane.b32.xlu0 %v8314_v22, %s8017_s17 }
 0x45f   : > { %1328 = vrot.lane.b32.xlu0 %v8314_v22, %s8018_s22 }
 0x462   : > { %v1067_v54 = vpop.xlane.xlu1 %1066 }
 0x463   : > { %v1075_v55 = vsub.f32 %v8371_v6, %v1067_v54  ;;  %1379 = vrot.lane.b32.xlu0 %v8312_v17, %s8018_s22 }
 0x465   : > { %v1090_v56 = vmul.f32 1.442695, %v1075_v55 }
 0x466   : > { %v1278_v58 = vpop.permute.xlu1 %1277 }
 0x467   : > { %7553 = vpow2.f32 %v1090_v56  ;;  %1430 = vrot.lane.b32.xlu0 %v8320_v31, %s8018_s22  ;;  %v836_v56 = vld [vmem:[%s9935_s13 + $0x10] sm:$0xff] }
 0x474   : > { %v8403_v48 = vpop.eup %7553 }
 0x475   : > { %v1113_v57 = vsel %vm1043_vm4, %v8403_v48, 0.0 }
 0x476   : > { %1114 = vadd.xlane.f32.xlu1 %v1113_v57 }
 0x487   : > { %1432 = vrot.lane.b32.xlu1 %v8320_v31, %s8017_s17 }
 0x48b   : > { %1483 = vrot.lane.b32.xlu1 %v8324_v33, %s8017_s17 }
 0x48f   : > { %1481 = vrot.lane.b32.xlu1 %v8324_v33, %s8018_s22 }
 0x4ba   : > { %v1094_v40 = vpop.xlane.xlu0 %1093 }
 0x4bb   : > { %7555 = vrcp.f32 %v1094_v40  ;;  %v837_v40 = vld [vmem:[%s9935_s13 + $0x18] sm:$0xff] }
 0x4be   : > { %v1097_v59 = vpop.xlane.xlu1 %1096 }
 0x4bf   : > { %7557 = vrcp.f32 %v1097_v59 }
 0x4c2   : > { %v1100_v60 = vpop.xlane.xlu0 %1099 }
 0x4c3   : > { %7559 = vrcp.f32 %v1100_v60 }
 0x4c6   : > { %v1103_v61 = vpop.xlane.xlu1 %1102 }
 0x4c7   : > { %7561 = vrcp.f32 %v1103_v61 }
 0x4c8   : > { %v7556_v62 = vpop.eup %7555 }
 0x4c9   : > { %v1124_v50 = vmul.f32 %v7556_v62, %v8377_v34 }
 0x4ca   : > { %v1106_v63 = vpop.xlane.xlu0 %1105  ;;  %v1109_v0 = vpop.xlane.xlu1 %1108 }
 0x4cb   : > { %7563 = vrcp.f32 %v1106_v63 }
 0x4cc   : > { %v7558_v1 = vpop.eup %7557  ;;  %7565 = vrcp.f32 %v1109_v0 }
 0x4cd   : > { %v1125_v2 = vmul.f32 %v7558_v1, %v7542_v41 }
 0x4ce   : > { %v1112_v6 = vpop.xlane.xlu0 %1111  ;;  %v1382_v23 = vpop.permute.xlu1 %1381 }
 0x4cf   : > { %v1132_v3 = vpack.c.bf16 %v1125_v2, %v1124_v50  ;;  %7567 = vrcp.f32 %v1112_v6  ;;  %v1387_v37 = vsel %vm845_vm3, %v1382_v23, 0 }
 0x4d0   : > { %v7560_v4 = vpop.eup %7559 }
 0x4d1   : > { %6963 = vmatmul.mubr.msk.bf16.vlgmr.msra.gmra.mxu0 %vm1043_vm4, %v1132_v3  ;;  %v1126_v7 = vmul.f32 %v7560_v4, %v7544_v43 }
 0x4d2   : > { %6973 = vmatpush3.bf16.msra.mxu0 %v1231_v53  ;;  %6974 = vmatprep.mubr.msk.bf16.mxu0 %vm8014_vm2, %v9955_v8  ;;  %v1331_v15 = vpop.permute.xlu0 %1330 }
 0x4d3   : > { %6984 = vmatprep.subr.bf16.mxu0 %v9955_v8  ;;  %v1336_v18 = vsel %vm845_vm3, %v1331_v15, 0 }
 0x4d4   : > { %v7562_v5 = vpop.eup %7561 }
 0x4d5   : > { %v1127_v9 = vmul.f32 %v7562_v5, %v7546_v45 }
 0x4d6   : > { %v1329_v19 = vpop.permute.xlu0 %1328 }
 0x4d7   : > { %v1133_v10 = vpack.c.bf16 %v1127_v9, %v1126_v7 }
 0x4d8   : > { %v7564_v11 = vpop.eup %7563 }
 0x4d9   : > { %v7566_v12 = vpop.eup %7565  ;;  %6969 = vmatmul.mubr.msk.bf16.vlgmr.msra.gmra.mxu1 %vm1043_vm4, %v1133_v10  ;;  %v1128_v13 = vmul.f32 %v7564_v11, %v7550_v49 }
 0x4da   : > { %6979 = vmatpush3.bf16.msra.mxu1 %v1278_v58  ;;  %v1129_v14 = vmul.f32 %v7566_v12, %v7548_v47  ;;  %6980 = vmatprep.mubr.msk.bf16.mxu1 %vm8014_vm2, %v9955_v8  ;;  %v1380_v27 = vpop.permute.xlu0 %1379 }
 0x4db   : > { %6990 = vmatprep.subr.bf16.mxu1 %v9955_v8 }
 0x4dc   : > { %v1134_v16 = vpack.c.bf16 %v1129_v14, %v1128_v13  ;;  %v7568_v29 = vpop.eup %7567 }
 0x4dd   : > { %v1130_v34 = vmul.f32 %v7568_v29, %v8388_v52 }
 0x4de   : > { %6975 = vmatmul.mubr.msk.bf16.vlgmr.msra.gmra.mxu0 %vm1043_vm4, %v1134_v16  ;;  %v1431_v32 = vpop.permute.xlu0 %1430 }
 0x4df   : > { %6985 = vmatpush3.bf16.xpose.msra.mxu0 %v1336_v18  ;;  %6986 = vmatprep.mubr.msk.bf16.mxu0 %vm8014_vm2, %v9955_v8 }
 0x4e0   : > { %6996 = vmatprep.subr.bf16.mxu0 %v9955_v8 }
 0x4e6   : > { %6987 = vmatmul.mubr.msk.bf16.vlgmr.msra.gmra.mxu0 %vm845_vm3, %v1329_v19 }
 0x4e7   : > { %6998 = vmatprep.mubr.msk.bf16.mxu0 %vm8014_vm2, %v9955_v8 }
 0x4ff   : > { %v1115_v24 = vpop.xlane.xlu1 %1114 }
 0x500   : > { %7569 = vrcp.f32 %v1115_v24 }
 0x503   : > { %v1433_v25 = vpop.permute.xlu1 %1432 }
 0x504   : > { %v1438_v26 = vsel %vm845_vm3, %v1433_v25, 0 }
 0x505   : > { %6997 = vmatpush3.bf16.xpose.msra.mxu0 %v1438_v26 }
 0x506   : > { %7008 = vmatprep.subr.bf16.mxu0 %v9955_v8 }
 0x507   : > { %v1484_v39 = vpop.permute.xlu1 %1483 }
 0x508   : > { %v1489_v41 = vsel %vm845_vm3, %v1484_v39, 0 }
 0x50b   : > { %v1482_v21 = vpop.permute.xlu1 %1481 }
 0x50c   : > { %6999 = vmatmul.mubr.msk.bf16.vlgmr.msra.gmra.mxu0 %vm845_vm3, %v1431_v32 }
 0x50d   : > { %v7570_v20 = vpop.eup %7569  ;;  %7010 = vmatprep.mubr.msk.bf16.mxu0 %vm8014_vm2, %v9955_v8 }
 0x50e   : > { %v1131_v35 = vmul.f32 %v7570_v20, %v8403_v48 }
 0x510   : > { %v1135_v36 = vpack.c.bf16 %v1131_v35, %v1130_v34 }
 0x512   : > { %6981 = vmatmul.mubr.msk.bf16.vlgmr.msra.gmra.mxu1 %vm1043_vm4, %v1135_v36 }
 0x513   : > { %6991 = vmatpush3.bf16.xpose.msra.mxu1 %v1387_v37  ;;  %6992 = vmatprep.mubr.msk.bf16.mxu1 %vm8014_vm2, %v9955_v8 }
 0x514   : > { %7002 = vmatprep.subr.bf16.mxu1 %v9955_v8 }
 0x51a   : > { %6993 = vmatmul.mubr.msk.bf16.vlgmr.msra.gmra.mxu1 %vm845_vm3, %v1380_v27 }
 0x51b   : > { %7003 = vmatpush3.bf16.xpose.msra.mxu1 %v1489_v41  ;;  %7004 = vmatprep.mubr.msk.bf16.mxu1 %vm8014_vm2, %v9955_v8 }
 0x51c   : > { %7014 = vmatprep.subr.bf16.mxu1 %v9955_v8 }
 0x522   : > { %7005 = vmatmul.mubr.msk.bf16.vlgmr.msra.gmra.mxu1 %vm845_vm3, %v1482_v21 }
 0x523   : > { %7016 = vmatprep.mubr.msk.bf16.mxu1 %vm8014_vm2, %v9955_v8 }
 0x591   : > { %v8450_v42 = vpop.f32.mrf.mxu0 }
 0x593   : > { %v6964_v28 = vpop.f32.mrf.mxu0 }
 0x595   : > { %v8452_v43 = vpop.f32.mrf.mxu0 }
 0x596   : > { %v1324_v44 = vpack.c.bf16 %v8452_v43, %v8450_v42 }
 0x597   : > { %v6965_v45 = vpop.f32.mrf.mxu0 }
 0x599   : > { %v8456_v46 = vpop.f32.mrf.mxu1 }
 0x59b   : > { %v6970_v47 = vpop.f32.mrf.mxu1 }
 0x59d   : > { %v8458_v49 = vpop.f32.mrf.mxu1 }
 0x59e   : > { %v1325_v51 = vpack.c.bf16 %v8458_v49, %v8456_v46  ;;  %v8462_v38 = vpop.f32.mrf.mxu0 }
 0x59f   : > { %v6971_v52 = vpop.f32.mrf.mxu1 }
 0x5a0   : > { %v6976_v30 = vpop.f32.mrf.mxu0 }
 0x5a2   : > { %v8464_v53 = vpop.f32.mrf.mxu0 }
 0x5a3   : > { %v1326_v54 = vpack.c.bf16 %v8464_v53, %v8462_v38 }
 0x5a4   : > { %v6977_v55 = vpop.f32.mrf.mxu0 }
 0x5a6   : > { %v1372_v48 = vpop.f32.mrf.mxu0 }
 0x5a7   : > { %v1373_v57 = vadd.f32 %v1372_v48, %v836_v56 }
 0x5a8   : > { %v6988_v58 = vpop.f32.mrf.mxu0 }
 0x5a9   : > { %v1532_v59 = vsel %vm1043_vm4, %v1373_v57, -inf }
 0x5aa   : > { %1533 = vmax.xlane.f32.xlu0 %v1532_v59  ;;  %v1375_v60 = vpop.f32.mrf.mxu0 }
 0x5ab   : > { %v1376_v61 = vadd.f32 %v1375_v60, %v837_v40 }
 0x5ac   : > { %v6989_v62 = vpop.f32.mrf.mxu0 }
 0x5ad   : > { %v1535_v63 = vsel %vm1043_vm4, %v1376_v61, -inf }
 0x5ae   : > { %1536 = vmax.xlane.f32.xlu1 %v1535_v63 }
 0x5cc   : > { %v1474_v0 = vpop.f32.mrf.mxu0 }
 0x5cd   : > { %v1475_v19 = vadd.f32 %v1474_v0, %v836_v56 }
 0x5ce   : > { %v7000_v1 = vpop.f32.mrf.mxu0 }
 0x5cf   : > { %v1544_v27 = vsel %vm1043_vm4, %v1475_v19, -inf }
 0x5d0   : > { %v1477_v50 = vpop.f32.mrf.mxu0 }
 0x5d1   : > { %v1478_v2 = vadd.f32 %v1477_v50, %v837_v40 }
 0x5d2   : > { %v8476_v3 = vpop.f32.mrf.mxu1  ;;  %v7001_v4 = vpop.f32.mrf.mxu0 }
 0x5d3   : > { %v1547_v5 = vsel %vm1043_vm4, %v1478_v2, -inf }
 0x5d4   : > { %v6982_v6 = vpop.f32.mrf.mxu1  ;;  %1548 = vmax.xlane.f32.xlu1 %v1547_v5 }
 0x5d6   : > { %v8479_v7 = vpop.f32.mrf.mxu1 }
 0x5d8   : > { %v6983_v10 = vpop.f32.mrf.mxu1 }
 0x5da   : > { %v1423_v11 = vpop.f32.mrf.mxu1 }
 0x5db   : > { %v1424_v12 = vadd.f32 %v1423_v11, %v836_v56 }
 0x5dc   : > { %v6994_v13 = vpop.f32.mrf.mxu1 }
 0x5dd   : > { %v1538_v14 = vsel %vm1043_vm4, %v1424_v12, -inf }
 0x5de   : > { %1539 = vmax.xlane.f32.xlu0 %v1538_v14  ;;  %v1426_v15 = vpop.f32.mrf.mxu1 }
 0x5df   : > { %v1427_v16 = vadd.f32 %v1426_v15, %v837_v40 }
 0x5e0   : > { %v6995_v18 = vpop.f32.mrf.mxu1 }
 0x5e1   : > { %v1541_v23 = vsel %vm1043_vm4, %v1427_v16, -inf }
 0x5e2   : > { %1542 = vmax.xlane.f32.xlu0 %v1541_v23  ;;  %v1525_v24 = vpop.f32.mrf.mxu1 }
 0x5e3   : > { %v1526_v26 = vadd.f32 %v1525_v24, %v836_v56 }
 0x5e4   : > { %v7006_v25 = vpop.f32.mrf.mxu1 }
 0x5e5   : > { %1671 = vrot.lane.b32.xlu1 %v8312_v17, %s8019_s28  ;;  %v1550_v20 = vsel %vm1043_vm4, %v1526_v26, -inf }
 0x5e6   : > { %1545 = vmax.xlane.f32.xlu0 %v1544_v27  ;;  %v1528_v29 = vpop.f32.mrf.mxu1 }
 0x5e7   : > { %v8493_v34 = vadd.f32 %v1528_v29, %v837_v40 }
 0x5e8   : > { %v7007_v32 = vpop.f32.mrf.mxu1 }
 0x5e9   : > { %1718 = vrot.lane.b32.xlu1 %v8320_v31, %s8019_s28  ;;  %v1553_v35 = vsel %vm1043_vm4, %v8493_v34, -inf }
 0x5ea   : > { %1551 = vmax.xlane.f32.xlu0 %v1550_v20 }
 0x600   : > { %1624 = vrot.lane.b32.xlu0 %v8314_v22, %s8019_s28 }
 0x60d   : > { %1554 = vmax.xlane.f32.xlu1 %v1553_v35 }
 0x61e   : > { %1765 = vrot.lane.b32.xlu1 %v8324_v33, %s8019_s28 }
 0x633   : > { %v1534_v36 = vpop.xlane.xlu0 %1533 }
 0x634   : > { %v1556_v37 = vsub.f32 %v1373_v57, %v1534_v36 }
 0x636   : > { %v1564_v39 = vmul.f32 1.442695, %v1556_v37 }
 0x637   : > { %v1537_v41 = vpop.xlane.xlu1 %1536 }
 0x638   : > { %7571 = vpow2.f32 %v1564_v39  ;;  %v1557_v21 = vsub.f32 %v1376_v61, %v1537_v41 }
 0x63a   : > { %v1566_v28 = vmul.f32 1.442695, %v1557_v21 }
 0x63c   : > { %7573 = vpow2.f32 %v1566_v28 }
 0x645   : > { %v8499_v45 = vpop.eup %7571 }
 0x646   : > { %v1580_v47 = vsel %vm1043_vm4, %v8499_v45, 0.0 }
 0x647   : > { %1581 = vadd.xlane.f32.xlu0 %v1580_v47 }
 0x649   : > { %v8503_v52 = vpop.eup %7573 }
 0x64a   : > { %v1583_v30 = vsel %vm1043_vm4, %v8503_v52, 0.0 }
 0x64b   : > { %1584 = vadd.xlane.f32.xlu1 %v1583_v30 }
 0x65d   : > { %v1549_v55 = vpop.xlane.xlu1 %1548 }
 0x65e   : > { %v1561_v58 = vsub.f32 %v1478_v2, %v1549_v55 }
 0x660   : > { %v1574_v61 = vmul.f32 1.442695, %v1561_v58 }
 0x661   : > { %v1672_v56 = vpop.permute.xlu1 %1671 }
 0x662   : > { %7015 = vmatpush3.bf16.msra.mxu1 %v1672_v56 }
 0x663   : > { %7026 = vmatprep.subr.bf16.mxu1 %v9955_v8 }
 0x665   : > { %v1719_v23 = vpop.permute.xlu1 %1718 }
 0x667   : > { %v1540_v48 = vpop.xlane.xlu0 %1539 }
 0x668   : > { %v1558_v57 = vsub.f32 %v1424_v12, %v1540_v48 }
 0x66a   : > { %v1568_v40 = vmul.f32 1.442695, %v1558_v57 }
 0x66b   : > { %v1543_v59 = vpop.xlane.xlu0 %1542 }
 0x66c   : > { %7575 = vpow2.f32 %v1568_v40  ;;  %v1559_v60 = vsub.f32 %v1427_v16, %v1543_v59 }
 0x66e   : > { %v1570_v62 = vmul.f32 1.442695, %v1559_v60 }
 0x66f   : > { %v1546_v63 = vpop.xlane.xlu0 %1545 }
 0x670   : > { %7577 = vpow2.f32 %v1570_v62  ;;  %v1560_v0 = vsub.f32 %v1475_v19, %v1546_v63 }
 0x671   : > { %7579 = vpow2.f32 %v1574_v61 }
 0x672   : > { %v1572_v1 = vmul.f32 1.442695, %v1560_v0 }
 0x673   : > { %v1552_v50 = vpop.xlane.xlu0 %1551 }
 0x674   : > { %7581 = vpow2.f32 %v1572_v1  ;;  %v1562_v4 = vsub.f32 %v1526_v26, %v1552_v50 }
 0x676   : > { %v1576_v5 = vmul.f32 1.442695, %v1562_v4 }
 0x677   : > { %v1625_v6 = vpop.permute.xlu0 %1624 }
 0x678   : > { %7583 = vpow2.f32 %v1576_v5  ;;  %7009 = vmatpush3.bf16.msra.mxu0 %v1625_v6 }
 0x679   : > { %v7576_v10 = vpop.eup %7575  ;;  %7020 = vmatprep.subr.bf16.mxu0 %v9955_v8 }
 0x67a   : > { %v1586_v2 = vsel %vm1043_vm4, %v7576_v10, 0.0 }
 0x67b   : > { %1587 = vadd.xlane.f32.xlu0 %v1586_v2 }
 0x67d   : > { %v7578_v11 = vpop.eup %7577 }
 0x67e   : > { %v1589_v12 = vsel %vm1043_vm4, %v7578_v11, 0.0  ;;  %v7580_v13 = vpop.eup %7579 }
 0x67f   : > { %1590 = vadd.xlane.f32.xlu1 %v1589_v12  ;;  %v1595_v16 = vsel %vm1043_vm4, %v7580_v13, 0.0 }
 0x681   : > { %v7582_v14 = vpop.eup %7581 }
 0x682   : > { %v1592_v15 = vsel %vm1043_vm4, %v7582_v14, 0.0 }
 0x683   : > { %1593 = vadd.xlane.f32.xlu0 %v1592_v15  ;;  %1596 = vadd.xlane.f32.xlu1 %v1595_v16 }
 0x685   : > { %v8513_v18 = vpop.eup %7583 }
 0x686   : > { %v1598_v19 = vsel %vm1043_vm4, %v8513_v18, 0.0 }
 0x687   : > { %1599 = vadd.xlane.f32.xlu0 %v1598_v19 }
 0x694   : > { %1869 = vrot.lane.b32.xlu1 %v8312_v17, %s8020_s25 }
 0x696   : > { %v1555_v24 = vpop.xlane.xlu1 %1554 }
 0x697   : > { %v1563_v25 = vsub.f32 %v8493_v34, %v1555_v24 }
 0x699   : > { %v1578_v26 = vmul.f32 1.442695, %v1563_v25 }
 0x69a   : > { %v1766_v32 = vpop.permute.xlu1 %1765 }
 0x69b   : > { %7585 = vpow2.f32 %v1578_v26 }
 0x69d   : > { %1818 = vrot.lane.b32.xlu0 %v8314_v22, %s8020_s25 }
 0x6a1   : > { %1816 = vrot.lane.b32.xlu0 %v8314_v22, %s9953_s27 }
 0x6a5   : > { %1867 = vrot.lane.b32.xlu0 %v8312_v17, %s9953_s27 }
 0x6a8   : > { %v8528_v27 = vpop.eup %7585 }
 0x6a9   : > { %1918 = vrot.lane.b32.xlu0 %v8320_v31, %s9953_s27  ;;  %v1601_v29 = vsel %vm1043_vm4, %v8528_v27, 0.0 }
 0x6b8   : > { %1602 = vadd.xlane.f32.xlu1 %v1601_v29 }
 0x6c9   : > { %1920 = vrot.lane.b32.xlu1 %v8320_v31, %s8020_s25 }
 0x6cd   : > { %1971 = vrot.lane.b32.xlu1 %v8324_v33, %s8020_s25 }
 0x6d0   : > { %v1582_v20 = vpop.xlane.xlu0 %1581 }
 0x6d1   : > { %1969 = vrot.lane.b32.xlu1 %v8324_v33, %s9953_s27  ;;  %7587 = vrcp.f32 %v1582_v20  ;;  %s9963_s27 = smov 104  }
 0x6d4   : > { %v1585_v34 = vpop.xlane.xlu1 %1584 }
 0x6d5   : > { %7589 = vrcp.f32 %v1585_v34 }
 0x6de   : > { %v7588_v35 = vpop.eup %7587 }
 0x6df   : > { %v1612_v37 = vmul.f32 %v7588_v35, %v8499_v45 }
 0x6e2   : > { %v7590_v36 = vpop.eup %7589 }
 0x6e3   : > { %v1613_v39 = vmul.f32 %v7590_v36, %v8503_v52 }
 0x6e5   : > { %v1620_v41 = vpack.c.bf16 %v1613_v39, %v1612_v37 }
 0x6e7   : > { %7011 = vmatmul.mubr.msk.bf16.vlgmr.msra.gmra.mxu0 %vm1043_vm4, %v1620_v41 }
 0x6e8   : > { %7021 = vmatpush3.bf16.msra.mxu0 %v1719_v23  ;;  %7022 = vmatprep.mubr.msk.bf16.mxu0 %vm8014_vm2, %v9955_v8 }
 0x6e9   : > { %7032 = vmatprep.subr.bf16.mxu0 %v9955_v8 }
 0x704   : > { %v1588_v21 = vpop.xlane.xlu0 %1587 }
 0x705   : > { %7591 = vrcp.f32 %v1588_v21 }
 0x708   : > { %v1591_v28 = vpop.xlane.xlu1 %1590 }
 0x709   : > { %7593 = vrcp.f32 %v1591_v28  ;;  %v838_v28 = vld [vmem:[%s9935_s13 + $0x20] sm:$0xff] }
 0x70c   : > { %v1594_v47 = vpop.xlane.xlu0 %1593  ;;  %v1597_v30 = vpop.xlane.xlu1 %1596 }
 0x70d   : > { %7595 = vrcp.f32 %v1594_v47 }
 0x70e   : > { %7597 = vrcp.f32 %v1597_v30 }
 0x710   : > { %v1600_v52 = vpop.xlane.xlu0 %1599  ;;  %v1870_v1 = vpop.permute.xlu1 %1869 }
 0x711   : > { %7599 = vrcp.f32 %v1600_v52  ;;  %v1875_v15 = vsel %vm845_vm3, %v1870_v1, 0 }
 0x712   : > { %v7592_v45 = vpop.eup %7591 }
 0x713   : > { %v1614_v56 = vmul.f32 %v7592_v45, %v7576_v10 }
 0x714   : > { %v1819_v61 = vpop.permute.xlu0 %1818 }
 0x715   : > { %v1824_v63 = vsel %vm845_vm3, %v1819_v61, 0 }
 0x716   : > { %v7594_v55 = vpop.eup %7593 }
 0x717   : > { %v1615_v48 = vmul.f32 %v7594_v55, %v7578_v11  ;;  %v839_v55 = vld [vmem:[%s9935_s13 + $0x28] sm:$0xff] }
 0x718   : > { %v1817_v0 = vpop.permute.xlu0 %1816 }
 0x719   : > { %v1621_v57 = vpack.c.bf16 %v1615_v48, %v1614_v56 }
 0x71a   : > { %v7596_v58 = vpop.eup %7595 }
 0x71b   : > { %v7598_v40 = vpop.eup %7597  ;;  %7017 = vmatmul.mubr.msk.bf16.vlgmr.msra.gmra.mxu1 %vm1043_vm4, %v1621_v57  ;;  %v1616_v59 = vmul.f32 %v7596_v58, %v7582_v14 }
 0x71c   : > { %7027 = vmatpush3.bf16.msra.mxu1 %v1766_v32  ;;  %v1617_v60 = vmul.f32 %v7598_v40, %v7580_v13  ;;  %7028 = vmatprep.mubr.msk.bf16.mxu1 %vm8014_vm2, %v9955_v8  ;;  %v1868_v6 = vpop.permute.xlu0 %1867 }
 0x71d   : > { %7038 = vmatprep.subr.bf16.mxu1 %v9955_v8 }
 0x71e   : > { %v1622_v62 = vpack.c.bf16 %v1617_v60, %v1616_v59  ;;  %v7600_v10 = vpop.eup %7599 }
 0x71f   : > { %v1618_v12 = vmul.f32 %v7600_v10, %v8513_v18 }
 0x720   : > { %7023 = vmatmul.mubr.msk.bf16.vlgmr.msra.gmra.mxu0 %vm1043_vm4, %v1622_v62  ;;  %v1919_v2 = vpop.permute.xlu0 %1918 }
 0x721   : > { %7033 = vmatpush3.bf16.xpose.msra.mxu0 %v1824_v63  ;;  %7034 = vmatprep.mubr.msk.bf16.mxu0 %vm8014_vm2, %v9955_v8 }
 0x722   : > { %7044 = vmatprep.subr.bf16.mxu0 %v9955_v8 }
 0x728   : > { %7035 = vmatmul.mubr.msk.bf16.vlgmr.msra.gmra.mxu0 %vm845_vm3, %v1817_v0 }
 0x729   : > { %7046 = vmatprep.mubr.msk.bf16.mxu0 %vm8014_vm2, %v9955_v8 }
 0x741   : > { %v1603_v50 = vpop.xlane.xlu1 %1602 }
 0x742   : > { %7601 = vrcp.f32 %v1603_v50 }
 0x745   : > { %v1921_v4 = vpop.permute.xlu1 %1920 }
 0x746   : > { %v1926_v5 = vsel %vm845_vm3, %v1921_v4, 0 }
 0x747   : > { %7045 = vmatpush3.bf16.xpose.msra.mxu0 %v1926_v5 }
 0x748   : > { %7056 = vmatprep.subr.bf16.mxu0 %v9955_v8 }
 0x749   : > { %v1972_v16 = vpop.permute.xlu1 %1971 }
 0x74a   : > { %v1977_v19 = vsel %vm845_vm3, %v1972_v16, 0 }
 0x74d   : > { %v1970_v18 = vpop.permute.xlu1 %1969 }
 0x74e   : > { %7047 = vmatmul.mubr.msk.bf16.vlgmr.msra.gmra.mxu0 %vm845_vm3, %v1919_v2 }
 0x74f   : > { %v7602_v11 = vpop.eup %7601  ;;  %7058 = vmatprep.mubr.msk.bf16.mxu0 %vm8014_vm2, %v9955_v8 }
 0x750   : > { %v1619_v13 = vmul.f32 %v7602_v11, %v8528_v27 }
 0x752   : > { %v1623_v14 = vpack.c.bf16 %v1619_v13, %v1618_v12 }
 0x754   : > { %7029 = vmatmul.mubr.msk.bf16.vlgmr.msra.gmra.mxu1 %vm1043_vm4, %v1623_v14 }
 0x755   : > { %7039 = vmatpush3.bf16.xpose.msra.mxu1 %v1875_v15  ;;  %7040 = vmatprep.mubr.msk.bf16.mxu1 %vm8014_vm2, %v9955_v8 }
 0x756   : > { %7050 = vmatprep.subr.bf16.mxu1 %v9955_v8 }
 0x75c   : > { %7041 = vmatmul.mubr.msk.bf16.vlgmr.msra.gmra.mxu1 %vm845_vm3, %v1868_v6 }
 0x75d   : > { %7051 = vmatpush3.bf16.xpose.msra.mxu1 %v1977_v19  ;;  %7052 = vmatprep.mubr.msk.bf16.mxu1 %vm8014_vm2, %v9955_v8 }
 0x75e   : > { %7062 = vmatprep.subr.bf16.mxu1 %v9955_v8 }
 0x764   : > { %7053 = vmatmul.mubr.msk.bf16.vlgmr.msra.gmra.mxu1 %vm845_vm3, %v1970_v18 }
 0x765   : > { %7064 = vmatprep.mubr.msk.bf16.mxu1 %vm8014_vm2, %v9955_v8 }
 0x7a7   : > { %v8576_v23 = vpop.f32.mrf.mxu0 }
 0x7a9   : > { %v7012_v24 = vpop.f32.mrf.mxu0 }
 0x7ab   : > { %v8578_v25 = vpop.f32.mrf.mxu0 }
 0x7ac   : > { %v1812_v26 = vpack.c.bf16 %v8578_v25, %v8576_v23 }
 0x7ad   : > { %v7013_v27 = vpop.f32.mrf.mxu0 }
 0x7db   : > { %v8582_v29 = vpop.f32.mrf.mxu1 }
 0x7dd   : > { %v7018_v32 = vpop.f32.mrf.mxu1 }
 0x7df   : > { %v8584_v20 = vpop.f32.mrf.mxu1 }
 0x7e0   : > { %v1813_v34 = vpack.c.bf16 %v8584_v20, %v8582_v29  ;;  %v8588_v35 = vpop.f32.mrf.mxu0 }
 0x7e1   : > { %v7019_v36 = vpop.f32.mrf.mxu1 }
 0x7e2   : > { %v7024_v37 = vpop.f32.mrf.mxu0 }
 0x7e4   : > { %v8590_v39 = vpop.f32.mrf.mxu0 }
 0x7e5   : > { %v1814_v41 = vpack.c.bf16 %v8590_v39, %v8588_v35 }
 0x7e6   : > { %v7025_v21 = vpop.f32.mrf.mxu0 }
 0x7e8   : > { %v1860_v47 = vpop.f32.mrf.mxu0 }
 0x7e9   : > { %v1861_v30 = vadd.f32 %v1860_v47, %v838_v28 }
 0x7ea   : > { %v7036_v45 = vpop.f32.mrf.mxu0 }
 0x7eb   : > { %v2020_v52 = vsel %vm1043_vm4, %v1861_v30, -inf }
 0x7ec   : > { %2021 = vmax.xlane.f32.xlu0 %v2020_v52  ;;  %v1863_v56 = vpop.f32.mrf.mxu0 }
 0x7ed   : > { %v1864_v48 = vadd.f32 %v1863_v56, %v839_v55 }
 0x7ee   : > { %v7037_v57 = vpop.f32.mrf.mxu0 }
 0x7ef   : > { %v2023_v58 = vsel %vm1043_vm4, %v1864_v48, -inf }
 0x7f0   : > { %2024 = vmax.xlane.f32.xlu1 %v2023_v58 }
 0x80e   : > { %v1962_v40 = vpop.f32.mrf.mxu0 }
 0x80f   : > { %v1963_v15 = vadd.f32 %v1962_v40, %v838_v28 }
 0x810   : > { %v7048_v59 = vpop.f32.mrf.mxu0 }
 0x811   : > { %v2032_v27 = vsel %vm1043_vm4, %v1963_v15, -inf }
 0x812   : > { %v1965_v60 = vpop.f32.mrf.mxu0 }
 0x813   : > { %v1966_v61 = vadd.f32 %v1965_v60, %v839_v55 }
 0x814   : > { %v8602_v62 = vpop.f32.mrf.mxu1  ;;  %v7049_v63 = vpop.f32.mrf.mxu0 }
 0x815   : > { %v2035_v0 = vsel %vm1043_vm4, %v1966_v61, -inf }
 0x816   : > { %v7030_v1 = vpop.f32.mrf.mxu1  ;;  %2036 = vmax.xlane.f32.xlu1 %v2035_v0 }
 0x818   : > { %v8605_v50 = vpop.f32.mrf.mxu1 }
 0x819   : > { %v1815_v4 = vpack.c.bf16 %v8605_v50, %v8602_v62 }
 0x81a   : > { %v7031_v5 = vpop.f32.mrf.mxu1 }
 0x81c   : > { %v1911_v6 = vpop.f32.mrf.mxu1 }
 0x81d   : > { %v1912_v10 = vadd.f32 %v1911_v6, %v838_v28 }
 0x81e   : > { %v7042_v2 = vpop.f32.mrf.mxu1 }
 0x81f   : > { %v2026_v11 = vsel %vm1043_vm4, %v1912_v10, -inf }
 0x820   : > { %2027 = vmax.xlane.f32.xlu0 %v2026_v11  ;;  %v1914_v12 = vpop.f32.mrf.mxu1 }
 0x821   : > { %v1915_v13 = vadd.f32 %v1914_v12, %v839_v55 }
 0x822   : > { %v7043_v14 = vpop.f32.mrf.mxu1 }
 0x823   : > { %v2029_v16 = vsel %vm1043_vm4, %v1915_v13, -inf }
 0x824   : > { %2030 = vmax.xlane.f32.xlu0 %v2029_v16  ;;  %v2013_v19 = vpop.f32.mrf.mxu1 }
 0x825   : > { %v2014_v24 = vadd.f32 %v2013_v19, %v838_v28 }
 0x826   : > { %v7054_v18 = vpop.f32.mrf.mxu1 }
 0x827   : > { %2159 = vrot.lane.b32.xlu1 %v8312_v17, %s9951_s30  ;;  %v2038_v37 = vsel %vm1043_vm4, %v2014_v24, -inf }
 0x828   : > { %2033 = vmax.xlane.f32.xlu0 %v2032_v27  ;;  %v2016_v32 = vpop.f32.mrf.mxu1 }
 0x829   : > { %v8619_v21 = vadd.f32 %v2016_v32, %v839_v55 }
 0x82a   : > { %v7055_v36 = vpop.f32.mrf.mxu1 }
 0x82b   : > { %2206 = vrot.lane.b32.xlu1 %v8320_v31, %s9951_s30  ;;  %v2041_v28 = vsel %vm1043_vm4, %v8619_v21, -inf }
 0x82c   : > { %2039 = vmax.xlane.f32.xlu0 %v2038_v37 }
 0x842   : > { %2112 = vrot.lane.b32.xlu0 %v8314_v22, %s9951_s30 }
 0x84f   : > { %2042 = vmax.xlane.f32.xlu1 %v2041_v28 }
 0x860   : > { %2253 = vrot.lane.b32.xlu1 %v8324_v33, %s9951_s30 }
 0x875   : > { %v2022_v47 = vpop.xlane.xlu0 %2021 }
 0x876   : > { %v2044_v45 = vsub.f32 %v1861_v30, %v2022_v47 }
 0x878   : > { %v2052_v52 = vmul.f32 1.442695, %v2044_v45 }
 0x879   : > { %v2025_v56 = vpop.xlane.xlu1 %2024 }
 0x87a   : > { %7603 = vpow2.f32 %v2052_v52  ;;  %v2045_v57 = vsub.f32 %v1864_v48, %v2025_v56 }
 0x87c   : > { %v2054_v58 = vmul.f32 1.442695, %v2045_v57 }
 0x87e   : > { %7605 = vpow2.f32 %v2054_v58 }
 0x887   : > { %v8625_v40 = vpop.eup %7603 }
 0x888   : > { %v2068_v55 = vsel %vm1043_vm4, %v8625_v40, 0.0 }
 0x889   : > { %2069 = vadd.xlane.f32.xlu0 %v2068_v55 }
 0x88b   : > { %v8629_v59 = vpop.eup %7605 }
 0x88c   : > { %v2071_v60 = vsel %vm1043_vm4, %v8629_v59, 0.0 }
 0x88d   : > { %2072 = vadd.xlane.f32.xlu1 %v2071_v60 }
 0x89f   : > { %v2037_v63 = vpop.xlane.xlu1 %2036 }
 0x8a0   : > { %v2049_v1 = vsub.f32 %v1966_v61, %v2037_v63 }
 0x8a2   : > { %v2062_v11 = vmul.f32 1.442695, %v2049_v1 }
 0x8a3   : > { %v2160_v30 = vpop.permute.xlu1 %2159 }
 0x8a4   : > { %7063 = vmatpush3.bf16.msra.mxu1 %v2160_v30 }
 0x8a5   : > { %7074 = vmatprep.subr.bf16.mxu1 %v9955_v8 }
 0x8a7   : > { %v2207_v56 = vpop.permute.xlu1 %2206 }
 0x8a9   : > { %v2028_v48 = vpop.xlane.xlu0 %2027 }
 0x8aa   : > { %v2046_v0 = vsub.f32 %v1912_v10, %v2028_v48 }
 0x8ac   : > { %v2056_v5 = vmul.f32 1.442695, %v2046_v0 }
 0x8ad   : > { %v2031_v6 = vpop.xlane.xlu0 %2030 }
 0x8ae   : > { %7607 = vpow2.f32 %v2056_v5  ;;  %v2047_v2 = vsub.f32 %v1915_v13, %v2031_v6 }
 0x8b0   : > { %v2058_v12 = vmul.f32 1.442695, %v2047_v2 }
 0x8b1   : > { %v2034_v14 = vpop.xlane.xlu0 %2033 }
 0x8b2   : > { %7609 = vpow2.f32 %v2058_v12  ;;  %v2048_v16 = vsub.f32 %v1963_v15, %v2034_v14 }
 0x8b3   : > { %7611 = vpow2.f32 %v2062_v11 }
 0x8b4   : > { %v2060_v19 = vmul.f32 1.442695, %v2048_v16 }
 0x8b5   : > { %v2040_v18 = vpop.xlane.xlu0 %2039 }
 0x8b6   : > { %7613 = vpow2.f32 %v2060_v19  ;;  %v2050_v27 = vsub.f32 %v2014_v24, %v2040_v18 }
 0x8b8   : > { %v2064_v32 = vmul.f32 1.442695, %v2050_v27 }
 0x8b9   : > { %v2113_v36 = vpop.permute.xlu0 %2112 }
 0x8ba   : > { %7615 = vpow2.f32 %v2064_v32  ;;  %7057 = vmatpush3.bf16.msra.mxu0 %v2113_v36 }
 0x8bb   : > { %v7608_v10 = vpop.eup %7607  ;;  %7068 = vmatprep.subr.bf16.mxu0 %v9955_v8 }
 0x8bc   : > { %v2074_v61 = vsel %vm1043_vm4, %v7608_v10, 0.0 }
 0x8bd   : > { %2075 = vadd.xlane.f32.xlu0 %v2074_v61 }
 0x8bf   : > { %v7610_v13 = vpop.eup %7609 }
 0x8c0   : > { %v2077_v37 = vsel %vm1043_vm4, %v7610_v13, 0.0  ;;  %v7612_v28 = vpop.eup %7611 }
 0x8c1   : > { %2078 = vadd.xlane.f32.xlu1 %v2077_v37  ;;  %v2083_v24 = vsel %vm1043_vm4, %v7612_v28, 0.0 }
 0x8c3   : > { %v7614_v15 = vpop.eup %7613 }
 0x8c4   : > { %v2080_v47 = vsel %vm1043_vm4, %v7614_v15, 0.0 }
 0x8c5   : > { %2081 = vadd.xlane.f32.xlu0 %v2080_v47  ;;  %2084 = vadd.xlane.f32.xlu1 %v2083_v24 }
 0x8c7   : > { %v8639_v45 = vpop.eup %7615 }
 0x8c8   : > { %v2086_v52 = vsel %vm1043_vm4, %v8639_v45, 0.0 }
 0x8c9   : > { %2087 = vadd.xlane.f32.xlu0 %v2086_v52 }
 0x8d6   : > { %2357 = vrot.lane.b32.xlu1 %v8312_v17, %s9941_s21 }
 0x8d8   : > { %v2043_v57 = vpop.xlane.xlu1 %2042 }
 0x8d9   : > { %v2051_v58 = vsub.f32 %v8619_v21, %v2043_v57 }
 0x8db   : > { %v2066_v55 = vmul.f32 1.442695, %v2051_v58 }
 0x8dc   : > { %v2254_v21 = vpop.permute.xlu1 %2253 }
 0x8dd   : > { %7617 = vpow2.f32 %v2066_v55 }
 0x8df   : > { %2306 = vrot.lane.b32.xlu0 %v8314_v22, %s9941_s21 }
 0x8e3   : > { %2304 = vrot.lane.b32.xlu0 %v8314_v22, %s9939_s24 }
 0x8e7   : > { %2355 = vrot.lane.b32.xlu0 %v8312_v17, %s9939_s24 }
 0x8ea   : > { %v8654_v60 = vpop.eup %7617 }
 0x8eb   : > { %2406 = vrot.lane.b32.xlu0 %v8320_v31, %s9939_s24  ;;  %v2089_v63 = vsel %vm1043_vm4, %v8654_v60, 0.0 }
 0x8fa   : > { %2090 = vadd.xlane.f32.xlu1 %v2089_v63 }
 0x90b   : > { %2408 = vrot.lane.b32.xlu1 %v8320_v31, %s9941_s21 }
 0x90f   : > { %2459 = vrot.lane.b32.xlu1 %v8324_v33, %s9941_s21  ;;  %s9947_s21 = smov 8  }
 0x912   : > { %v2070_v30 = vpop.xlane.xlu0 %2069 }
 0x913   : > { %2457 = vrot.lane.b32.xlu1 %v8324_v33, %s9939_s24  ;;  %7619 = vrcp.f32 %v2070_v30  ;;  %s9945_s24 = smov 16  }
 0x916   : > { %v2073_v48 = vpop.xlane.xlu1 %2072 }
 0x917   : > { %7621 = vrcp.f32 %v2073_v48 }
 0x920   : > { %v7620_v0 = vpop.eup %7619 }
 0x921   : > { %v2100_v5 = vmul.f32 %v7620_v0, %v8625_v40 }
 0x924   : > { %v7622_v1 = vpop.eup %7621 }
 0x925   : > { %v2101_v6 = vmul.f32 %v7622_v1, %v8629_v59 }
 0x927   : > { %v2108_v2 = vpack.c.bf16 %v2101_v6, %v2100_v5 }
 0x929   : > { %7059 = vmatmul.mubr.msk.bf16.vlgmr.msra.gmra.mxu0 %vm1043_vm4, %v2108_v2 }
 0x92a   : > { %7069 = vmatpush3.bf16.msra.mxu0 %v2207_v56  ;;  %7070 = vmatprep.mubr.msk.bf16.mxu0 %vm8014_vm2, %v9955_v8 }
 0x92b   : > { %7080 = vmatprep.subr.bf16.mxu0 %v9955_v8 }
 0x946   : > { %v2076_v11 = vpop.xlane.xlu0 %2075 }
 0x947   : > { %7623 = vrcp.f32 %v2076_v11 }
 0x94a   : > { %v2079_v12 = vpop.xlane.xlu1 %2078 }
 0x94b   : > { %7625 = vrcp.f32 %v2079_v12 }
 0x94e   : > { %v2082_v14 = vpop.xlane.xlu0 %2081  ;;  %v2085_v16 = vpop.xlane.xlu1 %2084 }
 0x94f   : > { %7627 = vrcp.f32 %v2082_v14 }
 0x950   : > { %7629 = vrcp.f32 %v2085_v16 }
 0x952   : > { %v2088_v59 = vpop.xlane.xlu0 %2087 }
 0x953   : > { %7631 = vrcp.f32 %v2088_v59 }
 0x954   : > { %v7624_v40 = vpop.eup %7623 }
 0x955   : > { %v2102_v18 = vmul.f32 %v7624_v40, %v7608_v10 }
 0x956   : > { %v2307_v24 = vpop.permute.xlu0 %2306 }
 0x957   : > { %v2312_v56 = vsel %vm845_vm3, %v2307_v24, 0 }
 0x958   : > { %v7626_v19 = vpop.eup %7625 }
 0x959   : > { %v2103_v27 = vmul.f32 %v7626_v19, %v7610_v13  ;;  %v2358_v13 = vpop.permute.xlu1 %2357 }
 0x95a   : > { %v2305_v10 = vpop.permute.xlu0 %2304  ;;  %v2363_v1 = vsel %vm845_vm3, %v2358_v13, 0 }
 0x95b   : > { %v2109_v32 = vpack.c.bf16 %v2103_v27, %v2102_v18 }
 0x95c   : > { %v7628_v36 = vpop.eup %7627 }
 0x95d   : > { %v7630_v61 = vpop.eup %7629  ;;  %7065 = vmatmul.mubr.msk.bf16.vlgmr.msra.gmra.mxu1 %vm1043_vm4, %v2109_v32  ;;  %v2104_v37 = vmul.f32 %v7628_v36, %v7614_v15 }
 0x95e   : > { %7075 = vmatpush3.bf16.msra.mxu1 %v2254_v21  ;;  %v2105_v47 = vmul.f32 %v7630_v61, %v7612_v28  ;;  %7076 = vmatprep.mubr.msk.bf16.mxu1 %vm8014_vm2, %v9955_v8  ;;  %v2356_v58 = vpop.permute.xlu0 %2355 }
 0x95f   : > { %7086 = vmatprep.subr.bf16.mxu1 %v9955_v8 }
 0x960   : > { %v2110_v52 = vpack.c.bf16 %v2105_v47, %v2104_v37  ;;  %v7632_v55 = vpop.eup %7631  ;;  %v840_v47 = vld [vmem:[%s9935_s13 + $0x30] sm:$0xff] }
 0x961   : > { %v2106_v30 = vmul.f32 %v7632_v55, %v8639_v45 }
 0x962   : > { %7071 = vmatmul.mubr.msk.bf16.vlgmr.msra.gmra.mxu0 %vm1043_vm4, %v2110_v52  ;;  %v2407_v63 = vpop.permute.xlu0 %2406 }
 0x963   : > { %7081 = vmatpush3.bf16.xpose.msra.mxu0 %v2312_v56  ;;  %7082 = vmatprep.mubr.msk.bf16.mxu0 %vm8014_vm2, %v9955_v8 }
 0x964   : > { %7092 = vmatprep.subr.bf16.mxu0 %v9955_v8 }
 0x96a   : > { %7083 = vmatmul.mubr.msk.bf16.vlgmr.msra.gmra.mxu0 %vm845_vm3, %v2305_v10  ;;  %v841_v10 = vld [vmem:[%s9935_s13 + $0x38] sm:$0xff] }
 0x96b   : > { %7094 = vmatprep.mubr.msk.bf16.mxu0 %vm8014_vm2, %v9955_v8 }
 0x983   : > { %v2091_v28 = vpop.xlane.xlu1 %2090 }
 0x984   : > { %7633 = vrcp.f32 %v2091_v28 }
 0x987   : > { %v2409_v15 = vpop.permute.xlu1 %2408 }
 0x988   : > { %v2414_v57 = vsel %vm845_vm3, %v2409_v15, 0 }
 0x989   : > { %7093 = vmatpush3.bf16.xpose.msra.mxu0 %v2414_v57 }
 0x98a   : > { %7104 = vmatprep.subr.bf16.mxu0 %v9955_v8 }
 0x98b   : > { %v2460_v5 = vpop.permute.xlu1 %2459 }
 0x98c   : > { %v2465_v6 = vsel %vm845_vm3, %v2460_v5, 0 }
 0x98f   : > { %v2458_v45 = vpop.permute.xlu1 %2457 }
 0x990   : > { %7095 = vmatmul.mubr.msk.bf16.vlgmr.msra.gmra.mxu0 %vm845_vm3, %v2407_v63 }
 0x991   : > { %v7634_v21 = vpop.eup %7633  ;;  %7106 = vmatprep.mubr.msk.bf16.mxu0 %vm8014_vm2, %v9955_v8 }
 0x992   : > { %v2107_v48 = vmul.f32 %v7634_v21, %v8654_v60 }
 0x994   : > { %v2111_v0 = vpack.c.bf16 %v2107_v48, %v2106_v30 }
 0x996   : > { %7077 = vmatmul.mubr.msk.bf16.vlgmr.msra.gmra.mxu1 %vm1043_vm4, %v2111_v0 }
 0x997   : > { %7087 = vmatpush3.bf16.xpose.msra.mxu1 %v2363_v1  ;;  %7088 = vmatprep.mubr.msk.bf16.mxu1 %vm8014_vm2, %v9955_v8 }
 0x998   : > { %7098 = vmatprep.subr.bf16.mxu1 %v9955_v8 }
 0x99e   : > { %7089 = vmatmul.mubr.msk.bf16.vlgmr.msra.gmra.mxu1 %vm845_vm3, %v2356_v58 }
 0x99f   : > { %7099 = vmatpush3.bf16.xpose.msra.mxu1 %v2465_v6  ;;  %7100 = vmatprep.mubr.msk.bf16.mxu1 %vm8014_vm2, %v9955_v8 }
 0x9a0   : > { %7110 = vmatprep.subr.bf16.mxu1 %v9955_v8 }
 0x9a6   : > { %7101 = vmatmul.mubr.msk.bf16.vlgmr.msra.gmra.mxu1 %vm845_vm3, %v2458_v45 }
 0x9a7   : > { %7112 = vmatprep.mubr.msk.bf16.mxu1 %vm8014_vm2, %v9955_v8 }
 0x9e9   : > { %v8702_v60 = vpop.f32.mrf.mxu0 }
 0x9eb   : > { %v7060_v2 = vpop.f32.mrf.mxu0 }
 0x9ed   : > { %v8704_v11 = vpop.f32.mrf.mxu0 }
 0x9ee   : > { %v2300_v12 = vpack.c.bf16 %v8704_v11, %v8702_v60 }
 0x9ef   : > { %v7061_v14 = vpop.f32.mrf.mxu0 }
 0xa1d   : > { %v8708_v16 = vpop.f32.mrf.mxu1 }
 0xa1f   : > { %v7066_v40 = vpop.f32.mrf.mxu1 }
 0xa21   : > { %v8710_v19 = vpop.f32.mrf.mxu1 }
 0xa22   : > { %v2301_v59 = vpack.c.bf16 %v8710_v19, %v8708_v16  ;;  %v8714_v18 = vpop.f32.mrf.mxu0 }
 0xa23   : > { %v7067_v27 = vpop.f32.mrf.mxu1 }
 0xa24   : > { %v7072_v32 = vpop.f32.mrf.mxu0 }
 0xa26   : > { %v8716_v36 = vpop.f32.mrf.mxu0 }
 0xa27   : > { %v2302_v61 = vpack.c.bf16 %v8716_v36, %v8714_v18 }
 0xa28   : > { %v7073_v37 = vpop.f32.mrf.mxu0 }
 0xa2a   : > { %v2348_v24 = vpop.f32.mrf.mxu0 }
 0xa2b   : > { %v2349_v52 = vadd.f32 %v2348_v24, %v840_v47 }
 0xa2c   : > { %v7084_v56 = vpop.f32.mrf.mxu0 }
 0xa2d   : > { %v2508_v13 = vsel %vm1043_vm4, %v2349_v52, -inf }
 0xa2e   : > { %2509 = vmax.xlane.f32.xlu0 %v2508_v13  ;;  %v2351_v28 = vpop.f32.mrf.mxu0 }
 0xa2f   : > { %v2352_v15 = vadd.f32 %v2351_v28, %v841_v10 }
 0xa30   : > { %v7085_v57 = vpop.f32.mrf.mxu0 }
 0xa31   : > { %v2511_v58 = vsel %vm1043_vm4, %v2352_v15, -inf }
 0xa32   : > { %2512 = vmax.xlane.f32.xlu1 %v2511_v58 }
 0xa50   : > { %v2450_v55 = vpop.f32.mrf.mxu0 }
 0xa51   : > { %v2451_v13 = vadd.f32 %v2450_v55, %v840_v47 }
 0xa52   : > { %v7096_v63 = vpop.f32.mrf.mxu0 }
 0xa54   : > { %v2453_v21 = vpop.f32.mrf.mxu0 }
 0xa55   : > { %v2454_v30 = vadd.f32 %v2453_v21, %v841_v10  ;;  %v2520_v21 = vsel %vm1043_vm4, %v2451_v13, -inf }
 0xa56   : > { %v8728_v48 = vpop.f32.mrf.mxu1  ;;  %v7097_v0 = vpop.f32.mrf.mxu0 }
 0xa57   : > { %v2523_v1 = vsel %vm1043_vm4, %v2454_v30, -inf }
 0xa58   : > { %v7078_v5 = vpop.f32.mrf.mxu1  ;;  %2524 = vmax.xlane.f32.xlu1 %v2523_v1 }
 0xa5a   : > { %v8731_v6 = vpop.f32.mrf.mxu1 }
 0xa5b   : > { %v2303_v45 = vpack.c.bf16 %v8731_v6, %v8728_v48 }
 0xa5c   : > { %v7079_v2 = vpop.f32.mrf.mxu1 }
 0xa5e   : > { %v2399_v14 = vpop.f32.mrf.mxu1 }
 0xa5f   : > { %v2400_v40 = vadd.f32 %v2399_v14, %v840_v47 }
 0xa60   : > { %v7090_v27 = vpop.f32.mrf.mxu1 }
 0xa61   : > { %v2514_v32 = vsel %vm1043_vm4, %v2400_v40, -inf }
 0xa62   : > { %2515 = vmax.xlane.f32.xlu0 %v2514_v32  ;;  %v2402_v37 = vpop.f32.mrf.mxu1 }
 0xa63   : > { %v2403_v24 = vadd.f32 %v2402_v37, %v841_v10 }
 0xa64   : > { %v7091_v56 = vpop.f32.mrf.mxu1 }
 0xa65   : > { %v2517_v28 = vsel %vm1043_vm4, %v2403_v24, -inf }
 0xa66   : > { %2518 = vmax.xlane.f32.xlu0 %v2517_v28  ;;  %v2501_v57 = vpop.f32.mrf.mxu1 }
 0xa67   : > { %v2502_v63 = vadd.f32 %v2501_v57, %v840_v47 }
 0xa68   : > { %v7102_v58 = vpop.f32.mrf.mxu1 }
 0xa69   : > { %v2526_v2 = vsel %vm1043_vm4, %v2502_v63, -inf }
 0xa6a   : > { %2521 = vmax.xlane.f32.xlu0 %v2520_v21  ;;  %v2504_v0 = vpop.f32.mrf.mxu1 }
 0xa6b   : > { %v8738_v1 = vadd.f32 %v2504_v0, %v841_v10 }
 0xa6c   : > { %v7103_v5 = vpop.f32.mrf.mxu1 }
 0xa6d   : > { %v2529_v14 = vsel %vm1043_vm4, %v8738_v1, -inf }
 0xa6e   : > { %2527 = vmax.xlane.f32.xlu0 %v2526_v2  ;;  %2530 = vmax.xlane.f32.xlu1 %v2529_v14 }
 0xab7   : > { %v2510_v55 = vpop.xlane.xlu0 %2509 }
 0xab8   : > { %v2532_v27 = vsub.f32 %v2349_v52, %v2510_v55 }
 0xaba   : > { %v2540_v32 = vmul.f32 1.442695, %v2532_v27 }
 0xabb   : > { %v2513_v37 = vpop.xlane.xlu1 %2512 }
 0xabc   : > { %7635 = vpow2.f32 %v2540_v32  ;;  %v2533_v47 = vsub.f32 %v2352_v15, %v2513_v37 }
 0xabe   : > { %v2542_v56 = vmul.f32 1.442695, %v2533_v47 }
 0xac0   : > { %7637 = vpow2.f32 %v2542_v56 }
 0xac9   : > { %v8743_v28 = vpop.eup %7635 }
 0xaca   : > { %v2556_v10 = vsel %vm1043_vm4, %v8743_v28, 0.0 }
 0xacb   : > { %2557 = vadd.xlane.f32.xlu0 %v2556_v10 }
 0xacd   : > { %v8747_v57 = vpop.eup %7637 }
 0xace   : > { %v2559_v58 = vsel %vm1043_vm4, %v8747_v57, 0.0 }
 0xacf   : > { %2560 = vadd.xlane.f32.xlu1 %v2559_v58 }
 0xae1   : > { %v2525_v21 = vpop.xlane.xlu1 %2524 }
 0xae2   : > { %v2537_v5 = vsub.f32 %v2454_v30, %v2525_v21 }
 0xae4   : > { %v2550_v55 = vmul.f32 1.442695, %v2537_v5 }
 0xaeb   : > { %v2516_v52 = vpop.xlane.xlu0 %2515 }
 0xaec   : > { %v2534_v0 = vsub.f32 %v2400_v40, %v2516_v52 }
 0xaee   : > { %v2544_v2 = vmul.f32 1.442695, %v2534_v0 }
 0xaef   : > { %v2519_v15 = vpop.xlane.xlu0 %2518 }
 0xaf0   : > { %7639 = vpow2.f32 %v2544_v2  ;;  %v2535_v14 = vsub.f32 %v2403_v24, %v2519_v15 }
 0xaf2   : > { %v2546_v27 = vmul.f32 1.442695, %v2535_v14 }
 0xaf3   : > { %v2522_v32 = vpop.xlane.xlu0 %2521 }
 0xaf4   : > { %7641 = vpow2.f32 %v2546_v27  ;;  %v2536_v37 = vsub.f32 %v2451_v13, %v2522_v32 }
 0xaf5   : > { %7643 = vpow2.f32 %v2550_v55 }
 0xaf6   : > { %v2548_v47 = vmul.f32 1.442695, %v2536_v37 }
 0xaf7   : > { %v2528_v56 = vpop.xlane.xlu0 %2527  ;;  %v2531_v5 = vpop.xlane.xlu1 %2530 }
 0xaf8   : > { %7645 = vpow2.f32 %v2548_v47  ;;  %v2538_v10 = vsub.f32 %v2502_v63, %v2528_v56  ;;  %v2539_v2 = vsub.f32 %v8738_v1, %v2531_v5 }
 0xafa   : > { %v2552_v9 = vmul.f32 1.442695, %v2538_v10 }
 0xafc   : > { %7647 = vpow2.f32 %v2552_v9 }
 0xafd   : > { %v7640_v58 = vpop.eup %7639 }
 0xafe   : > { %v2562_v40 = vsel %vm1043_vm4, %v7640_v58, 0.0 }
 0xaff   : > { %2563 = vadd.xlane.f32.xlu0 %v2562_v40  ;;  %v7497_v40 = vld [vmem:[#allocation4 + $0x8] sm:$0xff]  }
 0xb01   : > { %v7642_v30 = vpop.eup %7641 }
 0xb02   : > { %v2565_v21 = vsel %vm1043_vm4, %v7642_v30, 0.0  ;;  %v8753_v24 = vpop.eup %7643 }
 0xb03   : > { %2566 = vadd.xlane.f32.xlu1 %v2565_v21  ;;  %v2571_v63 = vsel %vm1043_vm4, %v8753_v24, 0.0 }
 0xb05   : > { %v8755_v52 = vpop.eup %7645 }
 0xb06   : > { %v2568_v13 = vsel %vm1043_vm4, %v8755_v52, 0.0 }
 0xb07   : > { %2569 = vadd.xlane.f32.xlu0 %v2568_v13  ;;  %2572 = vadd.xlane.f32.xlu1 %v2571_v63 }
 0xb09   : > { %v8761_v9 = vpop.eup %7647 }
 0xb0a   : > { %v2574_v0 = vsel %vm1043_vm4, %v8761_v9, 0.0 }
 0xb0b   : > { %2575 = vadd.xlane.f32.xlu0 %v2574_v0 }
 0xb18   : > { %2647 = vrot.lane.b32.xlu1 %v8312_v17, %s9949_s20  ;;  %v2554_v17 = vmul.f32 1.442695, %v2539_v2 }
 0xb1a   : > { %7649 = vpow2.f32 %v2554_v17 }
 0xb1c   : > { %2694 = vrot.lane.b32.xlu1 %v8320_v31, %s9949_s20 }
 0xb21   : > { %2600 = vrot.lane.b32.xlu0 %v8314_v22, %s9949_s20 }
 0xb25   : > { %2796 = vrot.lane.b32.xlu0 %v1812_v26, %s9947_s21 }
 0xb27   : > { %v7650_v22 = vpop.eup %7649 }
 0xb28   : > { %v2577_v31 = vsel %vm1043_vm4, %v7650_v22, 0.0 }
 0xb29   : > { %2808 = vrot.lane.b32.xlu0 %v2300_v12, %s9945_s24 }
 0xb2d   : > { %2800 = vrot.lane.b32.xlu0 %v1814_v41, %s9947_s21 }
 0xb40   : > { %2578 = vadd.xlane.f32.xlu1 %v2577_v31 }
 0xb51   : > { %2741 = vrot.lane.b32.xlu1 %v8324_v33, %s9949_s20 }
 0xb54   : > { %v2558_v25 = vpop.xlane.xlu0 %2557 }
 0xb55   : > { %2798 = vrot.lane.b32.xlu1 %v1813_v34, %s9947_s21 }
 0xb58   : > { %v2561_v23 = vpop.xlane.xlu1 %2560 }
 0xb59   : > { %2810 = vrot.lane.b32.xlu1 %v2301_v59, %s9945_s24  ;;  %7651 = vrcp.f32 %v2561_v23 }
 0xb5a   : > { %7653 = vrcp.f32 %v2558_v25 }
 0xb5d   : > { %2802 = vrot.lane.b32.xlu1 %v1815_v4, %s9947_s21  ;;  %s9965_s21 = smov 8  }
 0xb66   : > { %v7652_v34 = vpop.eup %7651 }
 0xb67   : > { %v7654_v41 = vpop.eup %7653  ;;  %v2589_v62 = vmul.f32 %v7652_v34, %v8747_v57 }
 0xb68   : > { %v2588_v60 = vmul.f32 %v7654_v41, %v8743_v28 }
 0xb6a   : > { %v2596_v12 = vpack.c.bf16 %v2589_v62, %v2588_v60 }
 0xb88   : > { %v2564_v33 = vpop.xlane.xlu0 %2563 }
 0xb89   : > { %7655 = vrcp.f32 %v2564_v33 }
 0xb8c   : > { %v2567_v26 = vpop.xlane.xlu1 %2566 }
 0xb8d   : > { %7657 = vrcp.f32 %v2567_v26 }
 0xb90   : > { %v2570_v29 = vpop.xlane.xlu0 %2569  ;;  %v2573_v20 = vpop.xlane.xlu1 %2572 }
 0xb91   : > { %7659 = vrcp.f32 %v2570_v29 }
 0xb92   : > { %7661 = vrcp.f32 %v2573_v20 }
 0xb94   : > { %v2576_v35 = vpop.xlane.xlu0 %2575  ;;  %v2648_v39 = vpop.permute.xlu1 %2647 }
 0xb95   : > { %7111 = vmatpush3.bf16.msra.mxu1 %v2648_v39  ;;  %7663 = vrcp.f32 %v2576_v35 }
 0xb96   : > { %7122 = vmatprep.subr.bf16.mxu1 %v9955_v8  ;;  %v7656_v50 = vpop.eup %7655 }
 0xb97   : > { %v2590_v16 = vmul.f32 %v7656_v50, %v7640_v58 }
 0xb98   : > { %v2601_v4 = vpop.permute.xlu0 %2600  ;;  %v2695_v59 = vpop.permute.xlu1 %2694 }
 0xb99   : > { %7105 = vmatpush3.bf16.msra.mxu0 %v2601_v4 }
 0xb9a   : > { %v7658_v11 = vpop.eup %7657  ;;  %7116 = vmatprep.subr.bf16.mxu0 %v9955_v8 }
 0xb9b   : > { %v2591_v19 = vmul.f32 %v7658_v11, %v7642_v30  ;;  %v7498_v30 = vld [vmem:[#allocation4] sm:$0xff]  }
 0xb9c   : > { %7107 = vmatmul.mubr.msk.bf16.vlgmr.msra.gmra.mxu0 %vm1043_vm4, %v2596_v12  ;;  %v2797_v39 = vpop.permute.xlu0 %2796 }
 0xb9d   : > { %7117 = vmatpush3.bf16.msra.mxu0 %v2695_v59  ;;  %v2597_v1 = vpack.c.bf16 %v2591_v19, %v2590_v16  ;;  %7118 = vmatprep.mubr.msk.bf16.mxu0 %vm8014_vm2, %v9955_v8  ;;  %v2830_v48 = vsel %vm845_vm3, %v1324_v44, %v2797_v39  ;;  %v9959_v16 = vpack.c.bf16 %v8479_v7, %v8476_v3  ;;  %v6639_v3 = vld [vmem:[%s9928_s6] ss:$0 sm:$0xff] }
 0xb9e   : > { %v7660_v57 = vpop.eup %7659  ;;  %7128 = vmatprep.subr.bf16.mxu0 %v7497_v40  ;;  %v7875_v7 = vld [vmem:[%s8219_s29] sm:$0xff] }
 0xb9f   : > { %v7662_v15 = vpop.eup %7661  ;;  %7113 = vmatmul.mubr.msk.bf16.vlgmr.msra.gmra.mxu1 %vm1043_vm4, %v2597_v1  ;;  %v2592_v28 = vmul.f32 %v7660_v57, %v8755_v52 }
 0xba0   : > { %v2593_v14 = vmul.f32 %v7662_v15, %v8753_v24  ;;  %7124 = vmatprep.mubr.msk.bf16.mxu1 %vm8014_vm2, %v9955_v8  ;;  %v2809_v36 = vpop.permute.xlu0 %2808 }
 0xba2   : > { %v2598_v55 = vpack.c.bf16 %v2593_v14, %v2592_v28  ;;  %v7664_v37 = vpop.eup %7663 }
 0xba3   : > { %v2594_v56 = vmul.f32 %v7664_v37, %v8761_v9  ;;  %v7876_v37 = vld [vmem:[%s8219_s29 + $0x8] sm:$0xff] }
 0xba4   : > { %7119 = vmatmul.mubr.msk.bf16.vlgmr.msra.gmra.mxu0 %vm1043_vm4, %v2598_v55  ;;  %v2801_v41 = vpop.permute.xlu0 %2800 }
 0xba5   : > { %7129 = vmatpush3.bf16.msra.mxu0 %v7497_v40  ;;  %v2836_v44 = vsel %vm845_vm3, %v1326_v54, %v2801_v41 }
 0xba6   : > { %7130 = vmatprep.subr.bf16.mxu0 %v7498_v30 }
 0xba9   : > { %7131 = vmatpush3.bf16.msra.mxu0 %v7498_v30  ;;  %v7877_v30 = vld [vmem:[%s8219_s29 + $0x10] sm:$0xff] }
 0xbc9   : > { %v2579_v27 = vpop.xlane.xlu1 %2578 }
 0xbca   : > { %7665 = vrcp.f32 %v2579_v27 }
 0xbcd   : > { %v2742_v32 = vpop.permute.xlu1 %2741 }
 0xbce   : > { %7123 = vmatpush3.bf16.msra.mxu1 %v2742_v32 }
 0xbd1   : > { %v2799_v18 = vpop.permute.xlu1 %2798 }
 0xbd2   : > { %v2833_v4 = vsel %vm845_vm3, %v1325_v51, %v2799_v18  ;;  %v7880_v18 = vld [vmem:[%s8219_s29 + $0x28] sm:$0xff] }
 0xbd7   : > { %v7666_v47 = vpop.eup %7665 }
 0xbd8   : > { %v2595_v10 = vmul.f32 %v7666_v47, %v7650_v22 }
 0xbda   : > { %v2599_v58 = vpack.c.bf16 %v2595_v10, %v2594_v56 }
 0xbdc   : > { %7125 = vmatmul.mubr.msk.bf16.vlgmr.msra.gmra.mxu1 %vm1043_vm4, %v2599_v58 }
 0xc5c   : > { %v2640_v21 = vpop.f32.mrf.mxu0 }
 0xc5e   : > { %v7108_v24 = vpop.f32.mrf.mxu0 }
 0xc5f   : > { %v2687_v52 = vpop.f32.mrf.mxu1 }
 0xc60   : > { %v2643_v13 = vpop.f32.mrf.mxu0 }
 0xc61   : > { %v2788_v63 = vpack.c.bf16 %v2643_v13, %v2640_v21  ;;  %v7114_v0 = vpop.f32.mrf.mxu1 }
 0xc62   : > { %v7109_v5 = vpop.f32.mrf.mxu0 }
 0xc63   : > { %2820 = vrot.lane.b32.xlu0 %v2788_v63, %s9943_s26  ;;  %v2690_v9 = vpop.f32.mrf.mxu1  ;;  %v7878_v63 = vld [vmem:[%s8219_s29 + $0x18] sm:$0xff] }
 0xc64   : > { %v2789_v2 = vpack.c.bf16 %v2690_v9, %v2687_v52  ;;  %v2734_v17 = vpop.f32.mrf.mxu0 }
 0xc65   : > { %v7115_v22 = vpop.f32.mrf.mxu1 }
 0xc66   : > { %2822 = vrot.lane.b32.xlu1 %v2789_v2, %s9943_s26  ;;  %v7120_v31 = vpop.f32.mrf.mxu0 }
 0xc67   : > { %2812 = vrot.lane.b32.xlu0 %v2302_v61, %s9945_s24  ;;  %v2811_v61 = vpop.permute.xlu1 %2810 }
 0xc68   : > { %v2737_v23 = vpop.f32.mrf.mxu0  ;;  %v2843_v60 = vsel %vm1043_vm4, %v2833_v4, %v2811_v61 }
 0xc69   : > { %v2790_v25 = vpack.c.bf16 %v2737_v23, %v2734_v17 }
 0xc6a   : > { %2814 = vrot.lane.b32.xlu1 %v2303_v45, %s9945_s24  ;;  %v7121_v33 = vpop.f32.mrf.mxu0  ;;  %v2841_v45 = vsel %vm1043_vm4, %v2830_v48, %v2809_v36  ;;  %s9962_s24 = smov 72  }
 0xc6b   : > { %2824 = vrot.lane.b32.xlu0 %v2790_v25, %s9943_s26  ;;  %v2803_v6 = vpop.permute.xlu1 %2802 }
 0xc6c   : > { %v2839_v19 = vsel %vm845_vm3, %v9959_v16, %v2803_v6 }
 0xc9c   : > { %v2781_v26 = vpop.f32.mrf.mxu1 }
 0xc9e   : > { %v7126_v29 = vpop.f32.mrf.mxu1 }
 0xc9f   : > { %v7879_v29 = vld [vmem:[%s8219_s29 + $0x20] sm:$0xff] }
 0xca0   : > { %v2784_v20 = vpop.f32.mrf.mxu1 }
 0xca1   : > { %v2791_v34 = vpack.c.bf16 %v2784_v20, %v2781_v26 }
 0xca2   : > { %v7127_v35 = vpop.f32.mrf.mxu1 }
 0xca3   : > { %2826 = vrot.lane.b32.xlu1 %v2791_v34, %s9943_s26  ;;  %s9964_s26 = smov 40  }
 0xcd5   : > { %v2821_v62 = vpop.permute.xlu0 %2820 }
 0xcd6   : > { %v2850_v50 = vsel %vm2848_vm5, %v2841_v45, %v2821_v62  ;;  %v7881_v45 = vld [vmem:[%s8219_s29 + $0x30] sm:$0xff] }
 0xcd7   : > { %7132 = vmatprep.mubr.msk.bf16.mxu0 %vm563_vm0, %v2850_v50 }
 0xcd8   : > { %v2823_v11 = vpop.permute.xlu1 %2822 }
 0xcd9   : > { %v2852_v42 = vsel %vm2848_vm5, %v2843_v60, %v2823_v11  ;;  %v2813_v43 = vpop.permute.xlu0 %2812  ;;  %v7882_v11 = vld [vmem:[%s8219_s29 + $0x38] sm:$0xff]  ;;  %s9966_s29 = smov 16  }
 0xcda   : > { %7133 = vmatmul.mubr.msk.bf16.vlgmr.msra.gmra.mxu0 %vm563_vm0, %v2852_v42  ;;  %v2845_v12 = vsel %vm1043_vm4, %v2836_v44, %v2813_v43 }
 0xcdc   : > { %v2815_v51 = vpop.permute.xlu1 %2814 }
 0xcdd   : > { %v2825_v46 = vpop.permute.xlu0 %2824  ;;  %v2847_v59 = vsel %vm1043_vm4, %v2839_v19, %v2815_v51 }
 0xcde   : > { %v2854_v49 = vsel %vm2848_vm5, %v2845_v12, %v2825_v46 }
 0xcdf   : > { %7136 = vmatprep.mubr.msk.bf16.mxu0 %vm563_vm0, %v2854_v49 }
 0xd15   : > { %v2827_v38 = vpop.permute.xlu1 %2826 }
 0xd16   : > { %v2856_v53 = vsel %vm2848_vm5, %v2847_v59, %v2827_v38 }
 0xd17   : > { %7137 = vmatmul.mubr.msk.bf16.gmra.mxu0 %vm563_vm0, %v2856_v53 }
 0xd9a   : > { %v7134_v54 = vpop.f32.mrf.mxu0 }
 0xd9b   : > { %v2947_v1 = vrot.slane %v7134_v54, 4 }
 0xd9c   : > { %v2915_v57 = vpop.f32.mrf.mxu0 }
 0xd9d   : > { %v2950_v15 = vrot.slane %v2915_v57, 4  ;;  %v2970_v28 = vsel %vm719_vm1, %v2915_v57, %v2947_v1 }
 0xd9e   : > { %v2978_v14 = vadd.f32 %v7875_v7, %v2970_v28  ;;  %v7135_v55 = vpop.f32.mrf.mxu0 }
 0xd9f   : > { %v2971_v27 = vsel %vm719_vm1, %v2950_v15, %v7134_v54  ;;  %v2953_v32 = vrot.slane %v7135_v55, 4 }
 0xda0   : > { %v2979_v47 = vadd.f32 %v7876_v37, %v2971_v27  ;;  %v8861_v56 = vadd.f32 %v6639_v3, %v2978_v14  ;;  %v2918_v10 = vpop.f32.mrf.mxu0 }
 0xda1   : > { %v2956_v58 = vrot.slane %v2918_v10, 4  ;;  %v2972_v40 = vsel %vm719_vm1, %v2918_v10, %v2953_v32 }
 0xda2   : > { %v2980_v21 = vadd.f32 %v7877_v30, %v2972_v40  ;;  %v2999_v24 = vsel %vm563_vm0, %v8861_v56, 0.0  ;;  %v8867_v52 = vadd.f32 %v6639_v3, %v2979_v47  ;;  %v7500_v40 = vld [vmem:[#allocation6] sm:$0xff]  }
 0xda3   : > { %v2973_v13 = vsel %vm719_vm1, %v2956_v58, %v7135_v55  ;;  %3000 = vadd.xlane.f32.xlu0 %v2999_v24  ;;  %v7499_v58 = vld [vmem:[#allocation6 + $0x8] sm:$0xff]  }
 0xda4   : > { %v2981_v0 = vadd.f32 %v7878_v63, %v2973_v13  ;;  %v8871_v5 = vadd.f32 %v6639_v3, %v2980_v21  ;;  %v3002_v9 = vsel %vm563_vm0, %v8867_v52, 0.0  ;;  %7140 = vmatprep.subr.bf16.mxu1 %v7499_v58 }
 0xda5   : > { %3003 = vadd.xlane.f32.xlu1 %v3002_v9  ;;  %7141 = vmatpush3.bf16.msra.mxu1 %v7499_v58 }
 0xda6   : > { %v3005_v2 = vsel %vm563_vm0, %v8871_v5, 0.0  ;;  %v8877_v17 = vadd.f32 %v6639_v3, %v2981_v0  ;;  %7142 = vmatprep.subr.bf16.mxu1 %v7500_v40 }
 0xda7   : > { %3006 = vadd.xlane.f32.xlu0 %v3005_v2 }
 0xda8   : > { %v3008_v22 = vsel %vm563_vm0, %v8877_v17, 0.0 }
 0xda9   : > { %7143 = vmatpush3.bf16.msra.mxu1 %v7500_v40 }
 0xdab   : > { %3009 = vadd.xlane.f32.xlu0 %v3008_v22 }
 0xdd7   : > { %v7138_v31 = vpop.f32.mrf.mxu0 }
 0xdd8   : > { %v2959_v23 = vrot.slane %v7138_v31, 4 }
 0xdd9   : > { %v2931_v25 = vpop.f32.mrf.mxu0 }
 0xdda   : > { %v2962_v33 = vrot.slane %v2931_v25, 4  ;;  %v2974_v26 = vsel %vm719_vm1, %v2931_v25, %v2959_v23 }
 0xddb   : > { %v2982_v20 = vadd.f32 %v7879_v29, %v2974_v26  ;;  %v7139_v34 = vpop.f32.mrf.mxu0 }
 0xddc   : > { %v2975_v35 = vsel %vm719_vm1, %v2962_v33, %v7138_v31  ;;  %v2965_v39 = vrot.slane %v7139_v34, 4 }
 0xddd   : > { %v2983_v36 = vadd.f32 %v7880_v18, %v2975_v35  ;;  %v8885_v61 = vadd.f32 %v6639_v3, %v2982_v20  ;;  %v2934_v41 = vpop.f32.mrf.mxu0 }
 0xdde   : > { %v2968_v48 = vrot.slane %v2934_v41, 4  ;;  %v2976_v6 = vsel %vm719_vm1, %v2934_v41, %v2965_v39 }
 0xddf   : > { %v2984_v62 = vadd.f32 %v7881_v45, %v2976_v6  ;;  %v3011_v50 = vsel %vm563_vm0, %v8885_v61, 0.0  ;;  %v8891_v4 = vadd.f32 %v6639_v3, %v2983_v36 }
 0xde0   : > { %v2977_v60 = vsel %vm719_vm1, %v2968_v48, %v7139_v34  ;;  %3012 = vadd.xlane.f32.xlu0 %v3011_v50 }
 0xde1   : > { %v2985_v42 = vadd.f32 %v7882_v11, %v2977_v60  ;;  %v8895_v43 = vadd.f32 %v6639_v3, %v2984_v62  ;;  %v3014_v44 = vsel %vm563_vm0, %v8891_v4, 0.0 }
 0xde2   : > { %3015 = vadd.xlane.f32.xlu1 %v3014_v44 }
 0xde3   : > { %v3017_v12 = vsel %vm563_vm0, %v8895_v43, 0.0  ;;  %v8901_v46 = vadd.f32 %v6639_v3, %v2985_v42 }
 0xde4   : > { %3018 = vadd.xlane.f32.xlu0 %v3017_v12 }
 0xde5   : > { %v3020_v49 = vsel %vm563_vm0, %v8901_v46, 0.0 }
 0xde6   : > { %3021 = vadd.xlane.f32.xlu1 %v3020_v49 }
 0xe2c   : > { %v3001_v51 = vpop.xlane.xlu0 %3000 }
 0xe2d   : > { %v3023_v16 = vmul.f32 0.03125, %v3001_v51  ;;  %v6640_v51 = vld [vmem:[%s9929_s7] ss:$0 sm:$0xff] }
 0xe2e   : > { %v3004_v19 = vpop.xlane.xlu1 %3003 }
 0xe2f   : > { %v8906_v59 = vsub.f32 %v8861_v56, %v3023_v16  ;;  %v3024_v38 = vmul.f32 0.03125, %v3004_v19 }
 0xe30   : > { %v3007_v53 = vpop.xlane.xlu0 %3006 }
 0xe31   : > { %v8909_v54 = vsub.f32 %v8867_v52, %v3024_v38  ;;  %v3025_v1 = vmul.f32 0.03125, %v3007_v53  ;;  %v3039_v57 = vmul.f32 %v8906_v59, %v8906_v59 }
 0xe33   : > { %v8914_v15 = vsub.f32 %v8871_v5, %v3025_v1  ;;  %v3047_v28 = vsel %vm563_vm0, %v3039_v57, 0.0  ;;  %v3040_v3 = vmul.f32 %v8909_v54, %v8909_v54  ;;  %v6641_v57 = vld [vmem:[%s9930_s8] ss:$0 sm:$0xff] }
 0xe34   : > { %v3010_v7 = vpop.xlane.xlu0 %3009  ;;  %3048 = vadd.xlane.f32.xlu0 %v3047_v28 }
 0xe35   : > { %v3026_v14 = vmul.f32 0.03125, %v3010_v7  ;;  %v3050_v55 = vsel %vm563_vm0, %v3040_v3, 0.0  ;;  %v3041_v27 = vmul.f32 %v8914_v15, %v8914_v15 }
 0xe36   : > { %3051 = vadd.xlane.f32.xlu1 %v3050_v55 }
 0xe37   : > { %v8923_v32 = vsub.f32 %v8877_v17, %v3026_v14  ;;  %v3053_v37 = vsel %vm563_vm0, %v3041_v27, 0.0 }
 0xe38   : > { %3054 = vadd.xlane.f32.xlu0 %v3053_v37 }
 0xe39   : > { %v3042_v47 = vmul.f32 %v8923_v32, %v8923_v32 }
 0xe3b   : > { %v3056_v10 = vsel %vm563_vm0, %v3042_v47, 0.0 }
 0xe3c   : > { %3057 = vadd.xlane.f32.xlu1 %v3056_v10 }
 0xe69   : > { %v3013_v30 = vpop.xlane.xlu0 %3012 }
 0xe6a   : > { %v3027_v21 = vmul.f32 0.03125, %v3013_v30 }
 0xe6b   : > { %v3016_v24 = vpop.xlane.xlu1 %3015 }
 0xe6c   : > { %v8930_v13 = vsub.f32 %v8885_v61, %v3027_v21  ;;  %v3028_v63 = vmul.f32 0.03125, %v3016_v24 }
 0xe6d   : > { %v3019_v0 = vpop.xlane.xlu0 %3018 }
 0xe6e   : > { %v8933_v9 = vsub.f32 %v8891_v4, %v3028_v63  ;;  %v3029_v2 = vmul.f32 0.03125, %v3019_v0  ;;  %v3043_v22 = vmul.f32 %v8930_v13, %v8930_v13 }
 0xe6f   : > { %v3022_v31 = vpop.xlane.xlu1 %3021 }
 0xe70   : > { %v8938_v23 = vsub.f32 %v8895_v43, %v3029_v2  ;;  %v3030_v25 = vmul.f32 0.03125, %v3022_v31  ;;  %v3059_v33 = vsel %vm563_vm0, %v3043_v22, 0.0  ;;  %v3044_v26 = vmul.f32 %v8933_v9, %v8933_v9 }
 0xe71   : > { %3060 = vadd.xlane.f32.xlu0 %v3059_v33 }
 0xe72   : > { %v8944_v29 = vsub.f32 %v8901_v46, %v3030_v25  ;;  %v3062_v20 = vsel %vm563_vm0, %v3044_v26, 0.0  ;;  %v3045_v34 = vmul.f32 %v8938_v23, %v8938_v23 }
 0xe73   : > { %3063 = vadd.xlane.f32.xlu1 %v3062_v20 }
 0xe74   : > { %v3065_v35 = vsel %vm563_vm0, %v3045_v34, 0.0  ;;  %v3046_v39 = vmul.f32 %v8944_v29, %v8944_v29 }
 0xe75   : > { %3066 = vadd.xlane.f32.xlu0 %v3065_v35 }
 0xe76   : > { %v3068_v18 = vsel %vm563_vm0, %v3046_v39, 0.0 }
 0xe77   : > { %3069 = vadd.xlane.f32.xlu1 %v3068_v18 }
 0xebd   : > { %v3049_v36 = vpop.xlane.xlu0 %3048 }
 0xebe   : > { %v3071_v41 = vmul.f32 0.03125, %v3049_v36 }
 0xebf   : > { %v3052_v48 = vpop.xlane.xlu1 %3051 }
 0xec0   : > { %v3079_v6 = vadd.f32 1e-05, %v3071_v41  ;;  %v3072_v45 = vmul.f32 0.03125, %v3052_v48 }
 0xec1   : > { %v3055_v62 = vpop.xlane.xlu0 %3054 }
 0xec2   : > { %7667 = vrsqrt.f32 %v3079_v6  ;;  %v3080_v50 = vadd.f32 1e-05, %v3072_v45  ;;  %v3073_v60 = vmul.f32 0.03125, %v3055_v62 }
 0xec4   : > { %7669 = vrsqrt.f32 %v3080_v50  ;;  %v3081_v11 = vadd.f32 1e-05, %v3073_v60 }
 0xec5   : > { %v3058_v42 = vpop.xlane.xlu1 %3057 }
 0xec6   : > { %7671 = vrsqrt.f32 %v3081_v11  ;;  %v3074_v44 = vmul.f32 0.03125, %v3058_v42 }
 0xec8   : > { %v3082_v12 = vadd.f32 1e-05, %v3074_v44  ;;  %v7502_v44 = vld [vmem:[#allocation7 + $0x30] sm:$0xff]  }
 0xeca   : > { %7673 = vrsqrt.f32 %v3082_v12  ;;  %v7504_v12 = vld [vmem:[#allocation7 + $0x20] sm:$0xff]  }
 0xecf   : > { %v7668_v49 = vpop.eup %7667 }
 0xed0   : > { %v3095_v16 = vmul.f32 %v7668_v49, %v8906_v59  ;;  %v7506_v49 = vld [vmem:[#allocation7 + $0x10] sm:$0xff]  }
 0xed1   : > { %v7670_v19 = vpop.eup %7669 }
 0xed2   : > { %v3096_v38 = vmul.f32 %v7670_v19, %v8909_v54  ;;  %v3108_v53 = vmul.f32 %v6640_v51, %v3095_v16  ;;  %v7508_v16 = vld [vmem:[#allocation7] sm:$0xff]  }
 0xed3   : > { %v7672_v1 = vpop.eup %7671  ;;  %v8975_v19 = vld [vmem:[%s9932_s10] ss:$0 sm:$0xff] }
 0xed4   : > { %v3097_v28 = vmul.f32 %v7672_v1, %v8914_v15  ;;  %v3109_v3 = vmul.f32 %v6640_v51, %v3096_v38  ;;  %v3121_v7 = vadd.f32 %v6641_v57, %v3108_v53 }
 0xed6   : > { %v3122_v14 = vadd.f32 %v6641_v57, %v3109_v3  ;;  %v3110_v47 = vmul.f32 %v6640_v51, %v3097_v28 }
 0xed7   : > { %v7674_v55 = vpop.eup %7673 }
 0xed8   : > { %v3098_v27 = vmul.f32 %v7674_v55, %v8923_v32  ;;  %v3129_v37 = vpack.c.bf16 %v3122_v14, %v3121_v7  ;;  %v3123_v54 = vadd.f32 %v6641_v57, %v3110_v47 }
 0xeda   : > { %7144 = vmatprep.mubr.msk.bf16.mxu1 %vm563_vm0, %v3129_v37  ;;  %v3111_v59 = vmul.f32 %v6640_v51, %v3098_v27 }
 0xedc   : > { %v3124_v10 = vadd.f32 %v6641_v57, %v3111_v59 }
 0xede   : > { %v3130_v58 = vpack.c.bf16 %v3124_v10, %v3123_v54 }
 0xee0   : > { %7145 = vmatmul.mubr.msk.bf16.vlgmr.msra.gmra.mxu1 %vm563_vm0, %v3130_v58 }
 0xefa   : > { %v3061_v40 = vpop.xlane.xlu0 %3060 }
 0xefb   : > { %v3075_v30 = vmul.f32 0.03125, %v3061_v40 }
 0xefc   : > { %v3064_v21 = vpop.xlane.xlu1 %3063 }
 0xefd   : > { %v3083_v15 = vadd.f32 1e-05, %v3075_v30  ;;  %v3076_v24 = vmul.f32 0.03125, %v3064_v21 }
 0xefe   : > { %v3067_v63 = vpop.xlane.xlu0 %3066 }
 0xeff   : > { %7675 = vrsqrt.f32 %v3083_v15  ;;  %v3084_v0 = vadd.f32 1e-05, %v3076_v24  ;;  %v3077_v2 = vmul.f32 0.03125, %v3067_v63 }
 0xf00   : > { %v3070_v32 = vpop.xlane.xlu1 %3069 }
 0xf01   : > { %7677 = vrsqrt.f32 %v3084_v0  ;;  %v3085_v22 = vadd.f32 1e-05, %v3077_v2  ;;  %v3078_v31 = vmul.f32 0.03125, %v3070_v32 }
 0xf03   : > { %7679 = vrsqrt.f32 %v3085_v22  ;;  %v3086_v25 = vadd.f32 1e-05, %v3078_v31 }
 0xf05   : > { %7681 = vrsqrt.f32 %v3086_v25 }
 0xf0c   : > { %v7676_v33 = vpop.eup %7675 }
 0xf0d   : > { %v3099_v26 = vmul.f32 %v7676_v33, %v8930_v13 }
 0xf0e   : > { %v7678_v20 = vpop.eup %7677 }
 0xf0f   : > { %v3100_v34 = vmul.f32 %v7678_v20, %v8933_v9  ;;  %v3112_v35 = vmul.f32 %v6640_v51, %v3099_v26  ;;  %v7501_v9 = vld [vmem:[#allocation7 + $0x38] sm:$0xff]  }
 0xf10   : > { %v7680_v39 = vpop.eup %7679  ;;  %7152 = vmatprep.subr.bf16.mxu0 %v7501_v9 }
 0xf11   : > { %v3113_v18 = vmul.f32 %v6640_v51, %v3100_v34  ;;  %v3101_v36 = vmul.f32 %v7680_v39, %v8938_v23  ;;  %v3125_v48 = vadd.f32 %v6641_v57, %v3112_v35  ;;  %7153 = vmatpush3.bf16.msra.mxu0 %v7501_v9  ;;  %v7503_v23 = vld [vmem:[#allocation7 + $0x28] sm:$0xff]  }
 0xf12   : > { %v7682_v41 = vpop.eup %7681  ;;  %7154 = vmatprep.subr.bf16.mxu0 %v7502_v44 }
 0xf13   : > { %v3126_v6 = vadd.f32 %v6641_v57, %v3113_v18  ;;  %v3102_v45 = vmul.f32 %v7682_v41, %v8944_v29  ;;  %v3114_v62 = vmul.f32 %v6640_v51, %v3101_v36  ;;  %v7505_v29 = vld [vmem:[#allocation7 + $0x18] sm:$0xff]  }
 0xf15   : > { %v3131_v50 = vpack.c.bf16 %v3126_v6, %v3125_v48  ;;  %v3115_v60 = vmul.f32 %v6640_v51, %v3102_v45  ;;  %v3127_v11 = vadd.f32 %v6641_v57, %v3114_v62  ;;  %7155 = vmatpush3.bf16.msra.mxu0 %v7502_v44  ;;  %v7507_v51 = vld [vmem:[#allocation7 + $0x8] sm:$0xff]  }
 0xf16   : > { %7156 = vmatprep.subr.bf16.mxu0 %v7503_v23 }
 0xf17   : > { %7148 = vmatprep.mubr.msk.bf16.mxu1 %vm563_vm0, %v3131_v50  ;;  %v3128_v13 = vadd.f32 %v6641_v57, %v3115_v60 }
 0xf19   : > { %v3132_v42 = vpack.c.bf16 %v3128_v13, %v3127_v11  ;;  %7157 = vmatpush3.bf16.msra.mxu0 %v7503_v23 }
 0xf1a   : > { %7158 = vmatprep.subr.bf16.mxu0 %v7504_v12 }
 0xf1b   : > { %7149 = vmatmul.mubr.msk.bf16.gmra.mxu1 %vm563_vm0, %v3132_v42 }
 0xf1d   : > { %7159 = vmatpush3.bf16.msra.mxu0 %v7504_v12 }
 0xf1e   : > { %7160 = vmatprep.subr.bf16.mxu0 %v7505_v29 }
 0xf21   : > { %7161 = vmatpush3.bf16.msra.mxu0 %v7505_v29 }
 0xf22   : > { %7162 = vmatprep.subr.bf16.mxu0 %v7506_v49 }
 0xf25   : > { %7163 = vmatpush3.bf16.msra.mxu0 %v7506_v49 }
 0xf26   : > { %7164 = vmatprep.subr.bf16.mxu0 %v7507_v51 }
 0xf29   : > { %7165 = vmatpush3.bf16.msra.mxu0 %v7507_v51 }
 0xf2a   : > { %7166 = vmatprep.subr.bf16.mxu0 %v7508_v16 }
 0xf2d   : > { %7167 = vmatpush3.bf16.msra.mxu0 %v7508_v16 }
 0xf2e   : > { %7200 = vmatprep.subr.bf16.mxu0 %v9955_v8 }
 0xfa0   : > { %v7146_v38 = vpop.f32.mrf.mxu1 }
 0xfa1   : > { %v3209_v53 = vadd.f32 %v7146_v38, %v8975_v19 }
 0xfa2   : > { %v3200_v1 = vpop.f32.mrf.mxu1 }
 0xfa3   : > { %v3241_v57 = vmul.f32 0.044715, %v3209_v53  ;;  %v3201_v28 = vadd.f32 %v8975_v19, %v3200_v1  ;;  %v3233_v45 = vmul.f32 0.5, %v3209_v53 }
 0xfa4   : > { %v7147_v3 = vpop.f32.mrf.mxu1 }
 0xfa5   : > { %v3249_v7 = vmul.f32 %v3241_v57, %v3209_v53  ;;  %v3239_v14 = vmul.f32 0.044715, %v3201_v28  ;;  %v3212_v55 = vadd.f32 %v7147_v3, %v8975_v19  ;;  %v3231_v41 = vmul.f32 0.5, %v3201_v28 }
 0xfa6   : > { %v3203_v27 = vpop.f32.mrf.mxu1 }
 0xfa7   : > { %v3257_v37 = vmul.f32 %v3249_v7, %v3209_v53  ;;  %v3247_v47 = vmul.f32 %v3239_v14, %v3201_v28  ;;  %v3242_v59 = vmul.f32 0.044715, %v3212_v55  ;;  %v3204_v54 = vadd.f32 %v8975_v19, %v3203_v27 }
 0xfa8   : > { %v3234_v18 = vmul.f32 0.5, %v3212_v55 }
 0xfa9   : > { %v3265_v10 = vadd.f32 %v3257_v37, %v3209_v53  ;;  %v3255_v58 = vmul.f32 %v3247_v47, %v3201_v28  ;;  %v3250_v40 = vmul.f32 %v3242_v59, %v3212_v55  ;;  %v3240_v30 = vmul.f32 0.044715, %v3204_v54 }
 0xfaa   : > { %v3232_v48 = vmul.f32 0.5, %v3204_v54 }
 0xfab   : > { %v3273_v21 = vmul.f32 0.7978846, %v3265_v10  ;;  %v3258_v15 = vmul.f32 %v3250_v40, %v3212_v55  ;;  %v3263_v24 = vadd.f32 %v3255_v58, %v3201_v28  ;;  %v3248_v63 = vmul.f32 %v3240_v30, %v3204_v54 }
 0xfad   : > { %v3266_v0 = vadd.f32 %v3258_v15, %v3212_v55  ;;  %v3271_v2 = vmul.f32 0.7978846, %v3263_v24  ;;  %v3256_v32 = vmul.f32 %v3248_v63, %v3204_v54  ;;  %7683 = vtanh.f32 %v3273_v21 }
 0xfaf   : > { %v3274_v22 = vmul.f32 0.7978846, %v3266_v0  ;;  %v3264_v31 = vadd.f32 %v3256_v32, %v3204_v54  ;;  %7685 = vtanh.f32 %v3271_v2 }
 0xfb1   : > { %7687 = vtanh.f32 %v3274_v22  ;;  %v3272_v25 = vmul.f32 0.7978846, %v3264_v31 }
 0xfb3   : > { %7689 = vtanh.f32 %v3272_v25 }
 0xfba   : > { %v7684_v33 = vpop.eup %7683 }
 0xfbb   : > { %v3289_v36 = vadd.f32 1.0, %v7684_v33 }
 0xfbc   : > { %v7686_v26 = vpop.eup %7685 }
 0xfbd   : > { %v3287_v35 = vadd.f32 1.0, %v7686_v26  ;;  %v3297_v11 = vmul.f32 %v3289_v36, %v3233_v45 }
 0xfbe   : > { %v7688_v20 = vpop.eup %7687 }
 0xfbf   : > { %v3290_v34 = vadd.f32 1.0, %v7688_v20  ;;  %v3295_v50 = vmul.f32 %v3287_v35, %v3231_v41 }
 0xfc0   : > { %v7690_v39 = vpop.eup %7689 }
 0xfc1   : > { %v3288_v6 = vadd.f32 1.0, %v7690_v39  ;;  %v3298_v62 = vmul.f32 %v3290_v34, %v3234_v18 }
 0xfc3   : > { %v3296_v60 = vmul.f32 %v3288_v6, %v3232_v48  ;;  %v3304_v42 = vpack.c.bf16 %v3298_v62, %v3297_v11  ;;  %v6657_v6 = vld [vmem:[%s9934_s12] ss:$0 sm:$0xff] }
 0xfc5   : > { %v3303_v13 = vpack.c.bf16 %v3296_v60, %v3295_v50 }
 0xfc7   : > { %7168 = vmatprep.mubr.bf16.mxu0 %v3303_v13 }
 0xfc8   : > { %7169 = vmatmul.mubr.bf16.vlgmr.msra.gmra.mxu0 %v3304_v42 }
 0xfdb   : > { %v7150_v9 = vpop.f32.mrf.mxu1 }
 0xfdc   : > { %v3225_v44 = vadd.f32 %v7150_v9, %v8975_v19 }
 0xfdd   : > { %v3216_v23 = vpop.f32.mrf.mxu1 }
 0xfde   : > { %v3245_v12 = vmul.f32 0.044715, %v3225_v44  ;;  %v3217_v29 = vadd.f32 %v8975_v19, %v3216_v23  ;;  %v3237_v20 = vmul.f32 0.5, %v3225_v44 }
 0xfdf   : > { %v7151_v49 = vpop.f32.mrf.mxu1 }
 0xfe0   : > { %v3253_v51 = vmul.f32 %v3245_v12, %v3225_v44  ;;  %v3243_v16 = vmul.f32 0.044715, %v3217_v29  ;;  %v3228_v38 = vadd.f32 %v7151_v49, %v8975_v19  ;;  %v3235_v25 = vmul.f32 0.5, %v3217_v29 }
 0xfe1   : > { %v3219_v53 = vpop.f32.mrf.mxu1 }
 0xfe2   : > { %v3261_v1 = vmul.f32 %v3253_v51, %v3225_v44  ;;  %v3251_v57 = vmul.f32 %v3243_v16, %v3217_v29  ;;  %v3246_v28 = vmul.f32 0.044715, %v3228_v38  ;;  %v3220_v3 = vadd.f32 %v8975_v19, %v3219_v53 }
 0xfe3   : > { %v3238_v22 = vmul.f32 0.5, %v3228_v38 }
 0xfe4   : > { %v3259_v7 = vmul.f32 %v3251_v57, %v3217_v29  ;;  %v3254_v14 = vmul.f32 %v3246_v28, %v3228_v38  ;;  %v3244_v55 = vmul.f32 0.044715, %v3220_v3  ;;  %v3269_v27 = vadd.f32 %v3261_v1, %v3225_v44 }
 0xfe5   : > { %v3236_v33 = vmul.f32 0.5, %v3220_v3 }
 0xfe6   : > { %v3262_v37 = vmul.f32 %v3254_v14, %v3228_v38  ;;  %v3252_v47 = vmul.f32 %v3244_v55, %v3220_v3  ;;  %v3267_v59 = vadd.f32 %v3259_v7, %v3217_v29  ;;  %v3277_v54 = vmul.f32 0.7978846, %v3269_v27 }
 0xfe8   : > { %v3260_v10 = vmul.f32 %v3252_v47, %v3220_v3  ;;  %v3275_v58 = vmul.f32 0.7978846, %v3267_v59  ;;  %v3270_v40 = vadd.f32 %v3262_v37, %v3228_v38 }
 0xfea   : > { %v3268_v30 = vadd.f32 %v3260_v10, %v3220_v3  ;;  %7691 = vtanh.f32 %v3275_v58  ;;  %v3278_v21 = vmul.f32 0.7978846, %v3270_v40 }
 0xfeb   : > { %7693 = vtanh.f32 %v3277_v54 }
 0xfec   : > { %v3276_v15 = vmul.f32 0.7978846, %v3268_v30  ;;  %7695 = vtanh.f32 %v3278_v21 }
 0xfee   : > { %7697 = vtanh.f32 %v3276_v15 }
 0xff7   : > { %v7692_v24 = vpop.eup %7691 }
 0xff8   : > { %v7694_v19 = vpop.eup %7693  ;;  %v3291_v0 = vadd.f32 1.0, %v7692_v24 }
 0xff9   : > { %v7696_v63 = vpop.eup %7695  ;;  %v3293_v31 = vadd.f32 1.0, %v7694_v19 }
 0xffa   : > { %v3294_v2 = vadd.f32 1.0, %v7696_v63  ;;  %v3299_v35 = vmul.f32 %v3291_v0, %v3235_v25 }
 0xffb   : > { %v7698_v32 = vpop.eup %7697  ;;  %v3301_v18 = vmul.f32 %v3293_v31, %v3237_v20 }
 0xffc   : > { %v3292_v26 = vadd.f32 1.0, %v7698_v32  ;;  %v3302_v34 = vmul.f32 %v3294_v2, %v3238_v22 }
 0xffe   : > { %v3300_v39 = vmul.f32 %v3292_v26, %v3236_v33  ;;  %v3306_v41 = vpack.c.bf16 %v3302_v34, %v3301_v18 }
0x1000   : > { %v3305_v36 = vpack.c.bf16 %v3300_v39, %v3299_v35 }
0x1002   : > { %7172 = vmatprep.mubr.bf16.mxu0 %v3305_v36 }
0x1003   : > { %7173 = vmatmul.mubr.bf16.gmra.mxu0 %v3306_v41 }
0x1004   : > { %7202 = vmatprep.mubr.msk.bf16.mxu0 %vm8014_vm2, %v9955_v8 }
0x1088   : > { %v7170_v48 = vpop.f32.mrf.mxu0 }
0x1089   : > { %v3438_v45 = vadd.f32 %v7170_v48, %v8871_v5 }
0x108a   : > { %v3405_v62 = vpop.f32.mrf.mxu0 }
0x108b   : > { %v8991_v50 = vadd.f32 %v6657_v6, %v3438_v45  ;;  %v3436_v5 = vadd.f32 %v3405_v62, %v8861_v56 }
0x108c   : > { %v7171_v60 = vpop.f32.mrf.mxu0 }
0x108d   : > { %v3439_v11 = vadd.f32 %v7171_v60, %v8877_v17  ;;  %v3463_v13 = vsel %vm563_vm0, %v8991_v50, 0.0  ;;  %v9004_v17 = vadd.f32 %v6657_v6, %v3436_v5  ;;  %v7509_v5 = vld [vmem:[#allocation2 + $0x18] sm:$0xff]  }
0x108e   : > { %3464 = vadd.xlane.f32.xlu0 %v3463_v13  ;;  %v3408_v44 = vpop.f32.mrf.mxu0  ;;  %7176 = vmatprep.subr.bf16.mxu1 %v7509_v5 }
0x108f   : > { %v8996_v42 = vadd.f32 %v6657_v6, %v3439_v11  ;;  %v3437_v38 = vadd.f32 %v3408_v44, %v8867_v52  ;;  %7177 = vmatpush3.bf16.msra.mxu1 %v7509_v5 }
0x1091   : > { %v3466_v9 = vsel %vm563_vm0, %v8996_v42, 0.0  ;;  %v9015_v28 = vadd.f32 %v6657_v6, %v3437_v38 }
0x1092   : > { %3467 = vadd.xlane.f32.xlu1 %v3466_v9 }
0x1093   : > { %v3460_v14 = vsel %vm563_vm0, %v9015_v28, 0.0 }
0x10c3   : > { %v7174_v23 = vpop.f32.mrf.mxu0 }
0x10c4   : > { %v3442_v53 = vadd.f32 %v7174_v23, %v8895_v43 }
0x10c5   : > { %v3421_v12 = vpop.f32.mrf.mxu0 }
0x10c6   : > { %v3440_v29 = vadd.f32 %v3421_v12, %v8885_v61  ;;  %v3457_v61 = vsel %vm563_vm0, %v9004_v17, 0.0  ;;  %v9017_v3 = vadd.f32 %v6657_v6, %v3442_v53  ;;  %v7510_v12 = vld [vmem:[#allocation2 + $0x10] sm:$0xff]  }
0x10c7   : > { %v7175_v49 = vpop.f32.mrf.mxu0  ;;  %7178 = vmatprep.subr.bf16.mxu1 %v7510_v12 }
0x10c8   : > { %v9002_v51 = vadd.f32 %v6657_v6, %v3440_v29  ;;  %v3443_v7 = vadd.f32 %v7175_v49, %v8901_v46  ;;  %v3475_v43 = vsel %vm563_vm0, %v9017_v3, 0.0  ;;  %7179 = vmatpush3.bf16.msra.mxu1 %v7510_v12 }
0x10c9   : > { %v3424_v16 = vpop.f32.mrf.mxu0  ;;  %7188 = vmatprep.subr.bf16.mxu1 %v9955_v8 }
0x10ca   : > { %v3441_v1 = vadd.f32 %v3424_v16, %v8891_v4  ;;  %v3469_v57 = vsel %vm563_vm0, %v9002_v51, 0.0  ;;  %v9022_v4 = vadd.f32 %v6657_v6, %v3443_v7 }
0x10cb   : > { %3470 = vadd.xlane.f32.xlu0 %v3469_v57 }
0x10cc   : > { %v9011_v56 = vadd.f32 %v6657_v6, %v3441_v1  ;;  %v3478_v55 = vsel %vm563_vm0, %v9022_v4, 0.0 }
0x10ce   : > { %v3472_v52 = vsel %vm563_vm0, %v9011_v56, 0.0 }
0x10cf   : > { %3458 = vadd.xlane.f32.xlu0 %v3457_v61  ;;  %3473 = vadd.xlane.f32.xlu1 %v3472_v52 }
0x10d3   : > { %3476 = vadd.xlane.f32.xlu0 %v3475_v43  ;;  %3461 = vadd.xlane.f32.xlu1 %v3460_v14 }
0x10d7   : > { %3479 = vadd.xlane.f32.xlu1 %v3478_v55 }
0x1117   : > { %v3465_v46 = vpop.xlane.xlu0 %3464 }
0x1118   : > { %v3483_v27 = vmul.f32 0.03125, %v3465_v46 }
0x111a   : > { %v9031_v37 = vsub.f32 %v8991_v50, %v3483_v27 }
0x111b   : > { %v3468_v47 = vpop.xlane.xlu1 %3467 }
0x111c   : > { %v3484_v59 = vmul.f32 0.03125, %v3468_v47  ;;  %v3499_v54 = vmul.f32 %v9031_v37, %v9031_v37 }
0x111e   : > { %v9036_v10 = vsub.f32 %v8996_v42, %v3484_v59  ;;  %v3511_v58 = vsel %vm563_vm0, %v3499_v54, 0.0 }
0x111f   : > { %3512 = vadd.xlane.f32.xlu0 %v3511_v58 }
0x1120   : > { %v3500_v40 = vmul.f32 %v9036_v10, %v9036_v10 }
0x1122   : > { %v3514_v30 = vsel %vm563_vm0, %v3500_v40, 0.0 }
0x1123   : > { %3515 = vadd.xlane.f32.xlu1 %v3514_v30 }
0x1154   : > { %v3471_v21 = vpop.xlane.xlu0 %3470 }
0x1155   : > { %v3485_v15 = vmul.f32 0.03125, %v3471_v21 }
0x1157   : > { %v9043_v24 = vsub.f32 %v9002_v51, %v3485_v15 }
0x1158   : > { %v3459_v19 = vpop.xlane.xlu0 %3458  ;;  %v3474_v63 = vpop.xlane.xlu1 %3473 }
0x1159   : > { %v3481_v0 = vmul.f32 0.03125, %v3459_v19  ;;  %v3486_v2 = vmul.f32 0.03125, %v3474_v63  ;;  %v3501_v32 = vmul.f32 %v9043_v24, %v9043_v24 }
0x115b   : > { %v9048_v22 = vsub.f32 %v9004_v17, %v3481_v0  ;;  %v9051_v31 = vsub.f32 %v9011_v56, %v3486_v2  ;;  %v3517_v25 = vsel %vm563_vm0, %v3501_v32, 0.0 }
0x115c   : > { %3518 = vadd.xlane.f32.xlu0 %v3517_v25  ;;  %v3477_v33 = vpop.xlane.xlu0 %3476  ;;  %v3462_v26 = vpop.xlane.xlu1 %3461  ;;  %v6658_v25 = vld [vmem:[%s9923_s1 + $0x1] ss:$0 sm:$0xff] }
0x115d   : > { %v3487_v20 = vmul.f32 0.03125, %v3477_v33  ;;  %v3482_v34 = vmul.f32 0.03125, %v3462_v26  ;;  %v3497_v35 = vmul.f32 %v9048_v22, %v9048_v22  ;;  %v3502_v39 = vmul.f32 %v9051_v31, %v9051_v31 }
0x115f   : > { %v9059_v18 = vsub.f32 %v9017_v3, %v3487_v20  ;;  %v9062_v36 = vsub.f32 %v9015_v28, %v3482_v34  ;;  %v3505_v41 = vsel %vm563_vm0, %v3497_v35, 0.0  ;;  %v3520_v48 = vsel %vm563_vm0, %v3502_v39, 0.0 }
0x1160   : > { %3506 = vadd.xlane.f32.xlu0 %v3505_v41  ;;  %3521 = vadd.xlane.f32.xlu1 %v3520_v48  ;;  %v3480_v6 = vpop.xlane.xlu1 %3479 }
0x1161   : > { %v3488_v45 = vmul.f32 0.03125, %v3480_v6  ;;  %v3503_v62 = vmul.f32 %v9059_v18, %v9059_v18  ;;  %v3498_v60 = vmul.f32 %v9062_v36, %v9062_v36 }
0x1163   : > { %v9071_v11 = vsub.f32 %v9022_v4, %v3488_v45  ;;  %v3523_v13 = vsel %vm563_vm0, %v3503_v62, 0.0  ;;  %v3508_v9 = vsel %vm563_vm0, %v3498_v60, 0.0 }
0x1164   : > { %3524 = vadd.xlane.f32.xlu0 %v3523_v13  ;;  %3509 = vadd.xlane.f32.xlu1 %v3508_v9 }
0x1165   : > { %v3504_v44 = vmul.f32 %v9071_v11, %v9071_v11 }
0x1167   : > { %v3526_v23 = vsel %vm563_vm0, %v3504_v44, 0.0 }
0x1168   : > { %3527 = vadd.xlane.f32.xlu1 %v3526_v23 }
0x11a8   : > { %v3513_v49 = vpop.xlane.xlu0 %3512 }
0x11a9   : > { %v3531_v38 = vmul.f32 0.03125, %v3513_v49 }
0x11ab   : > { %v3539_v1 = vadd.f32 1e-05, %v3531_v38 }
0x11ac   : > { %v3516_v29 = vpop.xlane.xlu1 %3515 }
0x11ad   : > { %v3532_v16 = vmul.f32 0.03125, %v3516_v29 }
0x11af   : > { %v3540_v53 = vadd.f32 1e-05, %v3532_v16 }
0x11b1   : > { %7699 = vrsqrt.f32 %v3540_v53 }
0x11b2   : > { %7701 = vrsqrt.f32 %v3539_v1 }
0x11be   : > { %v7700_v40 = vpop.eup %7699 }
0x11bf   : > { %v7702_v15 = vpop.eup %7701  ;;  %v3556_v63 = vmul.f32 %v7700_v40, %v9036_v10  ;;  %v6659_v10 = vld [vmem:[%s9924_s2 + $0x1] ss:$0 sm:$0xff] }
0x11c0   : > { %v3555_v2 = vmul.f32 %v7702_v15, %v9031_v37 }
0x11c1   : > { %v3569_v33 = vmul.f32 %v6658_v25, %v3556_v63 }
0x11c2   : > { %v3568_v34 = vmul.f32 %v6658_v25, %v3555_v2 }
0x11c3   : > { %v3582_v39 = vadd.f32 %v6659_v10, %v3569_v33 }
0x11c4   : > { %v3581_v6 = vadd.f32 %v6659_v10, %v3568_v34 }
0x11c5   : > { %v3601_v60 = vrot.slane %v3582_v39, 2  ;;  %v3591_v23 = vrot.slane %v3582_v39, 6 }
0x11c6   : > { %v3599_v5 = vrot.slane %v3581_v6, 6  ;;  %v3588_v16 = vrot.slane %v3581_v6, 2 }
0x11e5   : > { %v3519_v57 = vpop.xlane.xlu0 %3518 }
0x11e6   : > { %v3533_v61 = vmul.f32 0.03125, %v3519_v57 }
0x11e8   : > { %v3541_v7 = vadd.f32 1e-05, %v3533_v61 }
0x11e9   : > { %v3507_v52 = vpop.xlane.xlu0 %3506  ;;  %v3522_v43 = vpop.xlane.xlu1 %3521 }
0x11ea   : > { %7703 = vrsqrt.f32 %v3541_v7  ;;  %v3529_v14 = vmul.f32 0.03125, %v3507_v52  ;;  %v3534_v55 = vmul.f32 0.03125, %v3522_v43 }
0x11ec   : > { %v3537_v46 = vadd.f32 1e-05, %v3529_v14  ;;  %v3542_v27 = vadd.f32 1e-05, %v3534_v55 }
0x11ed   : > { %v3525_v47 = vpop.xlane.xlu0 %3524  ;;  %v3510_v59 = vpop.xlane.xlu1 %3509 }
0x11ee   : > { %7705 = vrsqrt.f32 %v3537_v46  ;;  %v3535_v54 = vmul.f32 0.03125, %v3525_v47  ;;  %v3530_v58 = vmul.f32 0.03125, %v3510_v59 }
0x11ef   : > { %7707 = vrsqrt.f32 %v3542_v27 }
0x11f0   : > { %v3543_v30 = vadd.f32 1e-05, %v3535_v54  ;;  %v3538_v21 = vadd.f32 1e-05, %v3530_v58 }
0x11f1   : > { %v3528_v19 = vpop.xlane.xlu1 %3527 }
0x11f2   : > { %7709 = vrsqrt.f32 %v3543_v30  ;;  %v3536_v0 = vmul.f32 0.03125, %v3528_v19 }
0x11f3   : > { %7711 = vrsqrt.f32 %v3538_v21 }
0x11f4   : > { %v3544_v32 = vadd.f32 1e-05, %v3536_v0 }
0x11f6   : > { %7713 = vrsqrt.f32 %v3544_v32 }
0x11f7   : > { %v7704_v26 = vpop.eup %7703 }
0x11f8   : > { %v3557_v20 = vmul.f32 %v7704_v26, %v9043_v24 }
0x11fa   : > { %v3570_v35 = vmul.f32 %v6658_v25, %v3557_v20 }
0x11fb   : > { %v7706_v41 = vpop.eup %7705 }
0x11fc   : > { %v7708_v48 = vpop.eup %7707  ;;  %v3553_v37 = vmul.f32 %v7706_v41, %v9048_v22  ;;  %v3583_v62 = vadd.f32 %v6659_v10, %v3570_v35  ;;  %v3623_v22 = vsel %vm719_vm1, %v3599_v5, %v3601_v60  ;;  %v6660_v41 = vld [vmem:[%s9926_s4 + $0x1] ss:$0 sm:$0xff] }
0x11fd   : > { %v3558_v45 = vmul.f32 %v7708_v48, %v9051_v31  ;;  %v3625_v47 = vsel %vm3624_vm6, %v3623_v22, %v3601_v60 }
0x11fe   : > { %v3566_v12 = vmul.f32 %v6658_v25, %v3553_v37  ;;  %v3594_v38 = vrot.slane %v3583_v62, 2  ;;  %v3603_v57 = vrot.slane %v3583_v62, 6 }
0x11ff   : > { %v7710_v13 = vpop.eup %7709  ;;  %v3571_v9 = vmul.f32 %v6658_v25, %v3558_v45 }
0x1200   : > { %v7712_v44 = vpop.eup %7711  ;;  %v3559_v24 = vmul.f32 %v7710_v13, %v9059_v18  ;;  %v3619_v18 = vsel %vm719_vm1, %v3588_v16, %v3591_v23  ;;  %v3579_v43 = vadd.f32 %v6659_v10, %v3566_v12 }
0x1201   : > { %v3554_v29 = vmul.f32 %v7712_v44, %v9062_v36  ;;  %v3584_v49 = vadd.f32 %v6659_v10, %v3571_v9 }
0x1202   : > { %v3572_v53 = vmul.f32 %v6658_v25, %v3559_v24  ;;  %v3635_v21 = vrot.slane %v3579_v43, 6  ;;  %v3614_v19 = vrot.slane %v3579_v43, 2 }
0x1203   : > { %v7714_v31 = vpop.eup %7713  ;;  %v3597_v1 = vrot.slane %v3584_v49, 6  ;;  %v3605_v61 = vrot.slane %v3584_v49, 2  ;;  %v3567_v7 = vmul.f32 %v6658_v25, %v3554_v29 }
0x1204   : > { %v3560_v52 = vmul.f32 %v7714_v31, %v9071_v11  ;;  %v3585_v46 = vadd.f32 %v6659_v10, %v3572_v53 }
0x1205   : > { %v3620_v14 = vsel %vm719_vm1, %v3594_v38, %v3597_v1  ;;  %v3627_v36 = vsel %vm719_vm1, %v3603_v57, %v3605_v61  ;;  %v3580_v55 = vadd.f32 %v6659_v10, %v3567_v7 }
0x1206   : > { %v3645_v27 = vpack.c.bf16 %v3620_v14, %v3619_v18  ;;  %v3628_v59 = vsel %vm3624_vm6, %v3627_v36, %v3605_v61  ;;  %v3573_v54 = vmul.f32 %v6658_v25, %v3560_v52  ;;  %v3608_v15 = vrot.slane %v3585_v46, 2  ;;  %v6667_v14 = vld [vmem:[%s9935_s13 + $0x40] sm:$0xff] }
0x1207   : > { %v3646_v58 = vpack.c.bf16 %v3628_v59, %v3625_v47  ;;  %v3637_v40 = vrot.slane %v3580_v55, 2  ;;  %v3617_v30 = vrot.slane %v3580_v55, 6  ;;  %v3631_v0 = vrot.slane %v3585_v46, 6  ;;  %v9160_v55 = vld [vmem:[%s9936_s14] sm:$0xff]  ;;  %v6668_v47 = vld [vmem:[%s9935_s13 + $0x48] sm:$0xff] }
0x1208   : > { %7180 = vmatprep.mubr.msk.bf16.mxu1 %vm563_vm0, %v3645_v27  ;;  %v3586_v11 = vadd.f32 %v6659_v10, %v3573_v54 }
0x1209   : > { %7181 = vmatmul.mubr.msk.bf16.vlgmr.msra.gmra.mxu1 %vm563_vm0, %v3646_v58  ;;  %v3643_v32 = vsel %vm719_vm1, %v3635_v21, %v3637_v40  ;;  %v3630_v25 = vsel %vm719_vm1, %v3614_v19, %v3617_v30  ;;  %v9169_v58 = vld [vmem:[%s9936_s14 + $0x8] sm:$0xff]  ;;  %v9176_v19 = vld [vmem:[%s9936_s14 + $0x10] sm:$0xff] }
0x120a   : > { %v3611_v63 = vrot.slane %v3586_v11, 6  ;;  %v3633_v2 = vrot.slane %v3586_v11, 2  ;;  %v3644_v10 = vsel %vm3624_vm6, %v3643_v32, %v3637_v40 }
0x120c   : > { %v3629_v33 = vsel %vm719_vm1, %v3608_v15, %v3611_v63  ;;  %v3640_v26 = vsel %vm719_vm1, %v3631_v0, %v3633_v2 }
0x120d   : > { %v3647_v20 = vpack.c.bf16 %v3630_v25, %v3629_v33  ;;  %v3641_v34 = vsel %vm3624_vm6, %v3640_v26, %v3633_v2 }
0x120e   : > { %v3648_v35 = vpack.c.bf16 %v3644_v10, %v3641_v34  ;;  %v9188_v10 = vld [vmem:[%s9936_s14 + $0x28] sm:$0xff] }
0x120f   : > { %7184 = vmatprep.mubr.msk.bf16.mxu1 %vm563_vm0, %v3647_v20  ;;  %v9183_v20 = vld [vmem:[%s9936_s14 + $0x18] sm:$0xff] }
0x1211   : > { %7185 = vmatmul.mubr.msk.bf16.gmra.mxu1 %vm563_vm0, %v3648_v35 }
0x1212   : > { %7190 = vmatprep.mubr.msk.bf16.mxu1 %vm8014_vm2, %v9955_v8 }
0x12c9   : > { %v7182_v39 = vpop.f32.mrf.mxu1 }
0x12ca   : > { %v3726_v6 = vadd.f32 %v7182_v39, %v6660_v41 }
0x12cb   : > { %v3717_v48 = vpop.f32.mrf.mxu1 }
0x12cc   : > { %v3718_v60 = vadd.f32 %v6660_v41, %v3717_v48 }
0x12cd   : > { %v7183_v37 = vpop.f32.mrf.mxu1 }
0x12ce   : > { %v3729_v45 = vadd.f32 %v7183_v37, %v6660_v41  ;;  %v9194_v37 = vld [vmem:[%s9936_s14 + $0x20] sm:$0xff] }
0x12cf   : > { %v3720_v62 = vpop.f32.mrf.mxu1 }
0x12d0   : > { %v9114_v13 = vpack.c.bf16 %v3729_v45, %v3726_v6  ;;  %v3721_v9 = vadd.f32 %v6660_v41, %v3720_v62 }
0x12d1   : > { %v7186_v44 = vpop.f32.mrf.mxu1 }
0x12d2   : > { %v9116_v24 = vpack.c.bf16 %v3721_v9, %v3718_v60  ;;  %3812 = vrot.lane.b32.xlu1 %v9114_v13, %s8015_s23  ;;  %v3742_v22 = vadd.f32 %v7186_v44, %v6660_v41 }
0x12d3   : > { %v3733_v23 = vpop.f32.mrf.mxu1 }
0x12d4   : > { %3762 = vrot.lane.b32.xlu0 %v9116_v24, %s8015_s23  ;;  %v3734_v29 = vadd.f32 %v6660_v41, %v3733_v23 }
0x12d5   : > { %v7187_v5 = vpop.f32.mrf.mxu1 }
0x12d6   : > { %v3745_v16 = vadd.f32 %v7187_v5, %v6660_v41 }
0x12d7   : > { %v3736_v12 = vpop.f32.mrf.mxu1 }
0x12d8   : > { %v3737_v49 = vadd.f32 %v6660_v41, %v3736_v12  ;;  %v9126_v53 = vpack.c.bf16 %v3745_v16, %v3742_v22 }
0x12da   : > { %v9122_v38 = vpack.c.bf16 %v3737_v49, %v3734_v29  ;;  %v9204_v29 = vld [vmem:[%s9936_s14 + $0x30] sm:$0xff] }
0x12dc   : > { %3862 = vrot.lane.b32.xlu1 %v9122_v38, %s8015_s23 }
0x12e0   : > { %3912 = vrot.lane.b32.xlu1 %v9126_v53, %s8015_s23  ;;  %s9961_s23 = smov 48  }
0x1344   : > { %v3813_v57 = vpop.permute.xlu1 %3812 }
0x1345   : > { %v3818_v7 = vsel %vm845_vm3, %v3813_v57, 0 }
0x1346   : > { %v3763_v31 = vpop.permute.xlu0 %3762 }
0x1347   : > { %v3768_v1 = vsel %vm845_vm3, %v3763_v31, 0 }
0x1348   : > { %7189 = vmatpush3.bf16.xpose.msra.mxu1 %v3768_v1 }
0x1349   : > { %7194 = vmatprep.subr.bf16.mxu1 %v9955_v8 }
0x134e   : > { %v3863_v61 = vpop.permute.xlu1 %3862 }
0x134f   : > { %v3868_v52 = vsel %vm845_vm3, %v3863_v61, 0  ;;  %7191 = vmatmul.mubr.msk.bf16.vlgmr.msra.gmra.mxu1 %vm845_vm3, %v9116_v24 }
0x1350   : > { %7195 = vmatpush3.bf16.xpose.msra.mxu1 %v3818_v7  ;;  %7201 = vmatpush3.bf16.xpose.msra.mxu0 %v3868_v52  ;;  %v9218_v7 = vld [vmem:[%s9936_s14 + $0x38] sm:$0xff] }
0x1351   : > { %7196 = vmatprep.mubr.msk.bf16.mxu1 %vm8014_vm2, %v9955_v8  ;;  %7206 = vmatprep.subr.bf16.mxu1 %v9955_v8 }
0x1352   : > { %7212 = vmatprep.subr.bf16.mxu0 %v9955_v8  ;;  %v3913_v18 = vpop.permute.xlu1 %3912 }
0x1353   : > { %v3918_v43 = vsel %vm845_vm3, %v3913_v18, 0 }
0x1357   : > { %7197 = vmatmul.mubr.msk.bf16.vlgmr.msra.gmra.mxu1 %vm845_vm3, %v9114_v13  ;;  %7203 = vmatmul.mubr.msk.bf16.vlgmr.msra.gmra.mxu0 %vm845_vm3, %v9122_v38 }
0x1358   : > { %7207 = vmatpush3.bf16.xpose.msra.mxu1 %v3918_v43  ;;  %7208 = vmatprep.mubr.msk.bf16.mxu1 %vm8014_vm2, %v9955_v8 }
0x1359   : > { %7218 = vmatprep.subr.bf16.mxu1 %v9955_v8  ;;  %7214 = vmatprep.mubr.msk.bf16.mxu0 %vm8014_vm2, %v9955_v8 }
0x135f   : > { %7209 = vmatmul.mubr.msk.bf16.vlgmr.msra.gmra.mxu1 %vm845_vm3, %v9126_v53 }
0x1360   : > { %7220 = vmatprep.mubr.msk.bf16.mxu1 %vm8014_vm2, %v9955_v8 }
0x140f   : > { %v3804_v36 = vpop.f32.mrf.mxu1 }
0x1410   : > { %v3805_v46 = vadd.f32 %v6667_v14, %v3804_v36 }
0x1411   : > { %v7192_v27 = vpop.f32.mrf.mxu1 }
0x1412   : > { %v3969_v59 = vadd.f32 %v9160_v55, %v3805_v46 }
0x1413   : > { %v3807_v54 = vpop.f32.mrf.mxu1 }
0x1414   : > { %v3808_v40 = vadd.f32 %v6668_v47, %v3807_v54  ;;  %v3977_v11 = vsel %vm1043_vm4, %v3969_v59, -inf }
0x1415   : > { %3978 = vmax.xlane.f32.xlu0 %v3977_v11  ;;  %v7193_v30 = vpop.f32.mrf.mxu1 }
0x1416   : > { %v3970_v21 = vadd.f32 %v9169_v58, %v3808_v40 }
0x1417   : > { %v3854_v15 = vpop.f32.mrf.mxu1  ;;  %v3904_v63 = vpop.f32.mrf.mxu0 }
0x1418   : > { %v3855_v0 = vadd.f32 %v6667_v14, %v3854_v15  ;;  %v3980_v2 = vsel %vm1043_vm4, %v3970_v21, -inf  ;;  %v3905_v35 = vadd.f32 %v6667_v14, %v3904_v63 }
0x1419   : > { %3981 = vmax.xlane.f32.xlu1 %v3980_v2  ;;  %v7198_v32 = vpop.f32.mrf.mxu1  ;;  %v7204_v33 = vpop.f32.mrf.mxu0 }
0x141a   : > { %v3971_v25 = vadd.f32 %v9176_v19, %v3855_v0  ;;  %v3973_v44 = vadd.f32 %v9194_v37, %v3905_v35 }
0x141b   : > { %v3857_v26 = vpop.f32.mrf.mxu1  ;;  %v3907_v34 = vpop.f32.mrf.mxu0 }
0x141c   : > { %v3858_v39 = vadd.f32 %v6668_v47, %v3857_v26  ;;  %v3908_v41 = vadd.f32 %v6668_v47, %v3907_v34  ;;  %v3983_v48 = vsel %vm1043_vm4, %v3971_v25, -inf  ;;  %v3989_v31 = vsel %vm1043_vm4, %v3973_v44, -inf }
0x141d   : > { %3984 = vmax.xlane.f32.xlu0 %v3983_v48  ;;  %v7199_v6 = vpop.f32.mrf.mxu1  ;;  %v7205_v45 = vpop.f32.mrf.mxu0 }
0x141e   : > { %v3972_v62 = vadd.f32 %v9183_v20, %v3858_v39  ;;  %v3974_v60 = vadd.f32 %v9188_v10, %v3908_v41 }
0x141f   : > { %v3954_v9 = vpop.f32.mrf.mxu1 }
0x1420   : > { %v3955_v23 = vadd.f32 %v6667_v14, %v3954_v9  ;;  %v3986_v5 = vsel %vm1043_vm4, %v3972_v62, -inf  ;;  %v3992_v12 = vsel %vm1043_vm4, %v3974_v60, -inf }
0x1421   : > { %3987 = vmax.xlane.f32.xlu0 %v3986_v5  ;;  %3993 = vmax.xlane.f32.xlu1 %v3992_v12  ;;  %v7210_v49 = vpop.f32.mrf.mxu1 }
0x1422   : > { %v3975_v22 = vadd.f32 %v9204_v29, %v3955_v23 }
0x1423   : > { %v3957_v16 = vpop.f32.mrf.mxu1 }
0x1424   : > { %v3995_v57 = vsel %vm1043_vm4, %v3975_v22, -inf  ;;  %v3958_v61 = vadd.f32 %v6668_v47, %v3957_v16 }
0x1425   : > { %3990 = vmax.xlane.f32.xlu0 %v3989_v31  ;;  %v7211_v1 = vpop.f32.mrf.mxu1 }
0x1426   : > { %v9221_v52 = vadd.f32 %v9218_v7, %v3958_v61 }
0x1428   : > { %v3998_v18 = vsel %vm1043_vm4, %v9221_v52, -inf }
0x1429   : > { %3996 = vmax.xlane.f32.xlu0 %v3995_v57 }
0x1432   : > { %4116 = vrot.lane.b32.xlu1 %v9114_v13, %s8016_s16 }
0x1436   : > { %4163 = vrot.lane.b32.xlu1 %v9122_v38, %s8016_s16 }
0x143f   : > { %4069 = vrot.lane.b32.xlu0 %v9116_v24, %s8016_s16 }
0x145a   : > { %3999 = vmax.xlane.f32.xlu1 %v3998_v18 }
0x146b   : > { %4210 = vrot.lane.b32.xlu1 %v9126_v53, %s8016_s16 }
0x149e   : > { %v3979_v43 = vpop.xlane.xlu0 %3978 }
0x149f   : > { %v4001_v14 = vsub.f32 %v3969_v59, %v3979_v43 }
0x14a1   : > { %v4009_v36 = vmul.f32 1.442695, %v4001_v14 }
0x14a2   : > { %v3982_v46 = vpop.xlane.xlu1 %3981 }
0x14a3   : > { %7715 = vpow2.f32 %v4009_v36  ;;  %v4002_v27 = vsub.f32 %v3970_v21, %v3982_v46 }
0x14a5   : > { %v4011_v47 = vmul.f32 1.442695, %v4002_v27 }
0x14a6   : > { %v3985_v54 = vpop.xlane.xlu0 %3984 }
0x14a7   : > { %7717 = vpow2.f32 %v4011_v47  ;;  %v4003_v40 = vsub.f32 %v3971_v25, %v3985_v54 }
0x14a9   : > { %v4013_v11 = vmul.f32 1.442695, %v4003_v40 }
0x14aa   : > { %v3988_v30 = vpop.xlane.xlu0 %3987  ;;  %v3994_v15 = vpop.xlane.xlu1 %3993 }
0x14ab   : > { %7719 = vpow2.f32 %v4013_v11  ;;  %v4004_v63 = vsub.f32 %v3972_v62, %v3988_v30  ;;  %v4006_v0 = vsub.f32 %v3974_v60, %v3994_v15 }
0x14ad   : > { %v4015_v2 = vmul.f32 1.442695, %v4004_v63  ;;  %v4019_v32 = vmul.f32 1.442695, %v4006_v0 }
0x14ae   : > { %v3991_v33 = vpop.xlane.xlu0 %3990  ;;  %v4117_v26 = vpop.permute.xlu1 %4116 }
0x14af   : > { %7721 = vpow2.f32 %v4015_v2  ;;  %v4005_v59 = vsub.f32 %v3973_v44, %v3991_v33  ;;  %7219 = vmatpush3.bf16.msra.mxu1 %v4117_v26 }
0x14b0   : > { %v9227_v34 = vpop.eup %7715  ;;  %7230 = vmatprep.subr.bf16.mxu1 %v9955_v8  ;;  %7723 = vpow2.f32 %v4019_v32 }
0x14b1   : > { %v4017_v21 = vmul.f32 1.442695, %v4005_v59  ;;  %v4025_v25 = vsel %vm1043_vm4, %v9227_v34, 0.0 }
0x14b2   : > { %4026 = vadd.xlane.f32.xlu0 %v4025_v25  ;;  %v3997_v35 = vpop.xlane.xlu0 %3996  ;;  %v4164_v31 = vpop.permute.xlu1 %4163 }
0x14b3   : > { %7725 = vpow2.f32 %v4017_v21  ;;  %v4007_v39 = vsub.f32 %v3975_v22, %v3997_v35 }
0x14b4   : > { %v7718_v41 = vpop.eup %7717 }
0x14b5   : > { %v4021_v48 = vmul.f32 1.442695, %v4007_v39  ;;  %v4028_v6 = vsel %vm1043_vm4, %v7718_v41, 0.0 }
0x14b6   : > { %v4070_v45 = vpop.permute.xlu0 %4069  ;;  %4029 = vadd.xlane.f32.xlu1 %v4028_v6 }
0x14b7   : > { %7727 = vpow2.f32 %v4021_v48  ;;  %7213 = vmatpush3.bf16.msra.mxu0 %v4070_v45 }
0x14b8   : > { %v7720_v62 = vpop.eup %7719  ;;  %7224 = vmatprep.subr.bf16.mxu0 %v9955_v8 }
0x14b9   : > { %v4031_v60 = vsel %vm1043_vm4, %v7720_v62, 0.0 }
0x14ba   : > { %4032 = vadd.xlane.f32.xlu0 %v4031_v60 }
0x14bc   : > { %v7722_v9 = vpop.eup %7721 }
0x14bd   : > { %v4034_v44 = vsel %vm1043_vm4, %v7722_v9, 0.0  ;;  %v7724_v23 = vpop.eup %7723 }
0x14be   : > { %4035 = vadd.xlane.f32.xlu1 %v4034_v44  ;;  %v4040_v49 = vsel %vm1043_vm4, %v7724_v23, 0.0 }
0x14c0   : > { %v7726_v5 = vpop.eup %7725 }
0x14c1   : > { %v4037_v12 = vsel %vm1043_vm4, %v7726_v5, 0.0 }
0x14c2   : > { %4038 = vadd.xlane.f32.xlu0 %v4037_v12  ;;  %4041 = vadd.xlane.f32.xlu1 %v4040_v49 }
0x14c4   : > { %v9238_v16 = vpop.eup %7727 }
0x14c5   : > { %v4043_v22 = vsel %vm1043_vm4, %v9238_v16, 0.0 }
0x14c6   : > { %4044 = vadd.xlane.f32.xlu0 %v4043_v22 }
0x14d3   : > { %4314 = vrot.lane.b32.xlu1 %v9114_v13, %s8017_s17 }
0x14dc   : > { %4263 = vrot.lane.b32.xlu0 %v9116_v24, %s8017_s17 }
0x14e0   : > { %4261 = vrot.lane.b32.xlu0 %v9116_v24, %s8018_s22 }
0x14e3   : > { %v4000_v1 = vpop.xlane.xlu1 %3999 }
0x14e4   : > { %v4008_v57 = vsub.f32 %v9221_v52, %v4000_v1  ;;  %4312 = vrot.lane.b32.xlu0 %v9114_v13, %s8018_s22 }
0x14e6   : > { %v4023_v61 = vmul.f32 1.442695, %v4008_v57 }
0x14e7   : > { %v4211_v52 = vpop.permute.xlu1 %4210 }
0x14e8   : > { %7729 = vpow2.f32 %v4023_v61  ;;  %4363 = vrot.lane.b32.xlu0 %v9122_v38, %s8018_s22 }
0x14f5   : > { %v9253_v18 = vpop.eup %7729 }
0x14f6   : > { %v4046_v43 = vsel %vm1043_vm4, %v9253_v18, 0.0 }
0x14f7   : > { %4047 = vadd.xlane.f32.xlu1 %v4046_v43 }
0x1508   : > { %4365 = vrot.lane.b32.xlu1 %v9122_v38, %s8017_s17 }
0x150c   : > { %4416 = vrot.lane.b32.xlu1 %v9126_v53, %s8017_s17 }
0x1510   : > { %4414 = vrot.lane.b32.xlu1 %v9126_v53, %s8018_s22 }
0x153b   : > { %v4027_v14 = vpop.xlane.xlu0 %4026 }
0x153c   : > { %7731 = vrcp.f32 %v4027_v14 }
0x153f   : > { %v4030_v36 = vpop.xlane.xlu1 %4029 }
0x1540   : > { %7733 = vrcp.f32 %v4030_v36 }
0x1543   : > { %v4033_v46 = vpop.xlane.xlu0 %4032 }
0x1544   : > { %7735 = vrcp.f32 %v4033_v46 }
0x1547   : > { %v4036_v27 = vpop.xlane.xlu1 %4035 }
0x1548   : > { %7737 = vrcp.f32 %v4036_v27 }
0x1549   : > { %v7732_v47 = vpop.eup %7731 }
0x154a   : > { %v4057_v30 = vmul.f32 %v7732_v47, %v9227_v34 }
0x154b   : > { %v4039_v54 = vpop.xlane.xlu0 %4038  ;;  %v4042_v40 = vpop.xlane.xlu1 %4041 }
0x154c   : > { %7739 = vrcp.f32 %v4039_v54 }
0x154d   : > { %v7734_v11 = vpop.eup %7733  ;;  %7741 = vrcp.f32 %v4042_v40 }
0x154e   : > { %v4058_v15 = vmul.f32 %v7734_v11, %v7718_v41 }
0x154f   : > { %v4045_v32 = vpop.xlane.xlu0 %4044  ;;  %v4315_v45 = vpop.permute.xlu1 %4314 }
0x1550   : > { %v4065_v63 = vpack.c.bf16 %v4058_v15, %v4057_v30  ;;  %7743 = vrcp.f32 %v4045_v32  ;;  %v4320_v1 = vsel %vm845_vm3, %v4315_v45, 0 }
0x1551   : > { %v7736_v0 = vpop.eup %7735 }
0x1552   : > { %7215 = vmatmul.mubr.msk.bf16.vlgmr.msra.gmra.mxu0 %vm1043_vm4, %v4065_v63  ;;  %v4059_v33 = vmul.f32 %v7736_v0, %v7720_v62 }
0x1553   : > { %7225 = vmatpush3.bf16.msra.mxu0 %v4164_v31  ;;  %7226 = vmatprep.mubr.msk.bf16.mxu0 %vm8014_vm2, %v9955_v8  ;;  %v4264_v39 = vpop.permute.xlu0 %4263 }
0x1554   : > { %7236 = vmatprep.subr.bf16.mxu0 %v9955_v8  ;;  %v4269_v48 = vsel %vm845_vm3, %v4264_v39, 0 }
0x1555   : > { %v7738_v2 = vpop.eup %7737 }
0x1556   : > { %v4060_v26 = vmul.f32 %v7738_v2, %v7722_v9  ;;  %v6669_v2 = vld [vmem:[%s9935_s13 + $0x50] sm:$0xff] }
0x1557   : > { %v4262_v6 = vpop.permute.xlu0 %4261 }
0x1558   : > { %v4066_v59 = vpack.c.bf16 %v4060_v26, %v4059_v33 }
0x1559   : > { %v7740_v21 = vpop.eup %7739 }
0x155a   : > { %v7742_v25 = vpop.eup %7741  ;;  %7221 = vmatmul.mubr.msk.bf16.vlgmr.msra.gmra.mxu1 %vm1043_vm4, %v4066_v59  ;;  %v4061_v34 = vmul.f32 %v7740_v21, %v7726_v5  ;;  %v6670_v59 = vld [vmem:[%s9935_s13 + $0x58] sm:$0xff] }
0x155b   : > { %7231 = vmatpush3.bf16.msra.mxu1 %v4211_v52  ;;  %v4062_v35 = vmul.f32 %v7742_v25, %v7724_v23  ;;  %7232 = vmatprep.mubr.msk.bf16.mxu1 %vm8014_vm2, %v9955_v8  ;;  %v4313_v44 = vpop.permute.xlu0 %4312 }
0x155c   : > { %7242 = vmatprep.subr.bf16.mxu1 %v9955_v8 }
0x155d   : > { %v4067_v41 = vpack.c.bf16 %v4062_v35, %v4061_v34  ;;  %v7744_v23 = vpop.eup %7743 }
0x155e   : > { %v4063_v49 = vmul.f32 %v7744_v23, %v9238_v16 }
0x155f   : > { %7227 = vmatmul.mubr.msk.bf16.vlgmr.msra.gmra.mxu0 %vm1043_vm4, %v4067_v41  ;;  %v4364_v5 = vpop.permute.xlu0 %4363 }
0x1560   : > { %7237 = vmatpush3.bf16.xpose.msra.mxu0 %v4269_v48  ;;  %7238 = vmatprep.mubr.msk.bf16.mxu0 %vm8014_vm2, %v9955_v8 }
0x1561   : > { %7248 = vmatprep.subr.bf16.mxu0 %v9955_v8 }
0x1567   : > { %7239 = vmatmul.mubr.msk.bf16.vlgmr.msra.gmra.mxu0 %vm845_vm3, %v4262_v6 }
0x1568   : > { %7250 = vmatprep.mubr.msk.bf16.mxu0 %vm8014_vm2, %v9955_v8 }
0x1580   : > { %v4048_v62 = vpop.xlane.xlu1 %4047 }
0x1581   : > { %7745 = vrcp.f32 %v4048_v62 }
0x1584   : > { %v4366_v60 = vpop.permute.xlu1 %4365 }
0x1585   : > { %v4371_v9 = vsel %vm845_vm3, %v4366_v60, 0 }
0x1586   : > { %7249 = vmatpush3.bf16.xpose.msra.mxu0 %v4371_v9 }
0x1587   : > { %7260 = vmatprep.subr.bf16.mxu0 %v9955_v8 }
0x1588   : > { %v4417_v57 = vpop.permute.xlu1 %4416 }
0x1589   : > { %v4422_v61 = vsel %vm845_vm3, %v4417_v57, 0 }
0x158c   : > { %v4415_v16 = vpop.permute.xlu1 %4414 }
0x158d   : > { %7251 = vmatmul.mubr.msk.bf16.vlgmr.msra.gmra.mxu0 %vm845_vm3, %v4364_v5 }
0x158e   : > { %v7746_v12 = vpop.eup %7745  ;;  %7262 = vmatprep.mubr.msk.bf16.mxu0 %vm8014_vm2, %v9955_v8 }
0x158f   : > { %v4064_v22 = vmul.f32 %v7746_v12, %v9253_v18 }
0x1591   : > { %v4068_v31 = vpack.c.bf16 %v4064_v22, %v4063_v49 }
0x1593   : > { %7233 = vmatmul.mubr.msk.bf16.vlgmr.msra.gmra.mxu1 %vm1043_vm4, %v4068_v31 }
0x1594   : > { %7243 = vmatpush3.bf16.xpose.msra.mxu1 %v4320_v1  ;;  %7244 = vmatprep.mubr.msk.bf16.mxu1 %vm8014_vm2, %v9955_v8 }
0x1595   : > { %7254 = vmatprep.subr.bf16.mxu1 %v9955_v8 }
0x159b   : > { %7245 = vmatmul.mubr.msk.bf16.vlgmr.msra.gmra.mxu1 %vm845_vm3, %v4313_v44 }
0x159c   : > { %7255 = vmatpush3.bf16.xpose.msra.mxu1 %v4422_v61  ;;  %7256 = vmatprep.mubr.msk.bf16.mxu1 %vm8014_vm2, %v9955_v8 }
0x159d   : > { %7266 = vmatprep.subr.bf16.mxu1 %v9955_v8 }
0x15a3   : > { %7257 = vmatmul.mubr.msk.bf16.vlgmr.msra.gmra.mxu1 %vm845_vm3, %v4415_v16 }
0x15a4   : > { %7268 = vmatprep.mubr.msk.bf16.mxu1 %vm8014_vm2, %v9955_v8 }
0x1612   : > { %v9300_v18 = vpop.f32.mrf.mxu0 }
0x1614   : > { %v7216_v43 = vpop.f32.mrf.mxu0 }
0x1616   : > { %v9302_v52 = vpop.f32.mrf.mxu0 }
0x1618   : > { %v7217_v36 = vpop.f32.mrf.mxu0 }
0x161a   : > { %v9306_v46 = vpop.f32.mrf.mxu1 }
0x161c   : > { %v7222_v27 = vpop.f32.mrf.mxu1 }
0x161e   : > { %v9308_v47 = vpop.f32.mrf.mxu1 }
0x161f   : > { %v9312_v40 = vpop.f32.mrf.mxu0 }
0x1620   : > { %v7223_v11 = vpop.f32.mrf.mxu1 }
0x1621   : > { %v7228_v30 = vpop.f32.mrf.mxu0 }
0x1623   : > { %v9314_v15 = vpop.f32.mrf.mxu0 }
0x1625   : > { %v7229_v0 = vpop.f32.mrf.mxu0 }
0x1627   : > { %v4305_v32 = vpop.f32.mrf.mxu0 }
0x1628   : > { %v4306_v33 = vadd.f32 %v6669_v2, %v4305_v32 }
0x1629   : > { %v7240_v26 = vpop.f32.mrf.mxu0 }
0x162a   : > { %v4473_v21 = vadd.f32 %v4306_v33, %v9160_v55 }
0x162b   : > { %v4308_v25 = vpop.f32.mrf.mxu0 }
0x162c   : > { %v4309_v34 = vadd.f32 %v6670_v59, %v4308_v25  ;;  %v4481_v35 = vsel %vm1043_vm4, %v4473_v21, -inf }
0x162d   : > { %4482 = vmax.xlane.f32.xlu0 %v4481_v35  ;;  %v7241_v39 = vpop.f32.mrf.mxu0 }
0x162e   : > { %v4474_v41 = vadd.f32 %v4309_v34, %v9169_v58 }
0x1630   : > { %v4484_v48 = vsel %vm1043_vm4, %v4474_v41, -inf }
0x1631   : > { %4485 = vmax.xlane.f32.xlu1 %v4484_v48 }
0x164d   : > { %v4407_v6 = vpop.f32.mrf.mxu0 }
0x164e   : > { %v4408_v36 = vadd.f32 %v6669_v2, %v4407_v6 }
0x164f   : > { %v7252_v45 = vpop.f32.mrf.mxu0 }
0x1650   : > { %v4477_v33 = vadd.f32 %v4408_v36, %v9194_v37 }
0x1651   : > { %v4410_v62 = vpop.f32.mrf.mxu0 }
0x1652   : > { %v4411_v60 = vadd.f32 %v6670_v59, %v4410_v62  ;;  %v4493_v48 = vsel %vm1043_vm4, %v4477_v33, -inf }
0x1653   : > { %v9328_v9 = vpop.f32.mrf.mxu1  ;;  %v7253_v44 = vpop.f32.mrf.mxu0 }
0x1654   : > { %v9331_v23 = vadd.f32 %v4411_v60, %v9188_v10 }
0x1655   : > { %v7234_v5 = vpop.f32.mrf.mxu1 }
0x1656   : > { %v4496_v12 = vsel %vm1043_vm4, %v9331_v23, -inf }
0x1657   : > { %v9335_v49 = vpop.f32.mrf.mxu1  ;;  %4497 = vmax.xlane.f32.xlu1 %v4496_v12 }
0x1659   : > { %v7235_v31 = vpop.f32.mrf.mxu1 }
0x165b   : > { %v4356_v1 = vpop.f32.mrf.mxu1 }
0x165c   : > { %v4357_v57 = vadd.f32 %v6669_v2, %v4356_v1 }
0x165d   : > { %v7246_v61 = vpop.f32.mrf.mxu1 }
0x165e   : > { %v4475_v16 = vadd.f32 %v4357_v57, %v9176_v19 }
0x165f   : > { %v4359_v43 = vpop.f32.mrf.mxu1 }
0x1660   : > { %v4360_v27 = vadd.f32 %v6670_v59, %v4359_v43  ;;  %v4487_v11 = vsel %vm1043_vm4, %v4475_v16, -inf }
0x1661   : > { %4488 = vmax.xlane.f32.xlu0 %v4487_v11  ;;  %v7247_v30 = vpop.f32.mrf.mxu1 }
0x1662   : > { %v4476_v0 = vadd.f32 %v4360_v27, %v9183_v20 }
0x1663   : > { %v4458_v32 = vpop.f32.mrf.mxu1 }
0x1664   : > { %v4459_v26 = vadd.f32 %v6669_v2, %v4458_v32  ;;  %v4490_v25 = vsel %vm1043_vm4, %v4476_v0, -inf }
0x1665   : > { %4491 = vmax.xlane.f32.xlu0 %v4490_v25  ;;  %v7258_v34 = vpop.f32.mrf.mxu1 }
0x1666   : > { %v4479_v39 = vadd.f32 %v4459_v26, %v9204_v29 }
0x1667   : > { %v4461_v35 = vpop.f32.mrf.mxu1 }
0x1668   : > { %4620 = vrot.lane.b32.xlu1 %v9114_v13, %s8019_s28  ;;  %v4499_v45 = vsel %vm1043_vm4, %v4479_v39, -inf  ;;  %v4462_v2 = vadd.f32 %v6670_v59, %v4461_v35 }
0x1669   : > { %4494 = vmax.xlane.f32.xlu0 %v4493_v48  ;;  %v7259_v6 = vpop.f32.mrf.mxu1 }
0x166a   : > { %v9354_v62 = vadd.f32 %v4462_v2, %v9218_v7 }
0x166c   : > { %4667 = vrot.lane.b32.xlu1 %v9122_v38, %s8019_s28  ;;  %v4502_v60 = vsel %vm1043_vm4, %v9354_v62, -inf }
0x166d   : > { %4500 = vmax.xlane.f32.xlu0 %v4499_v45 }
0x1683   : > { %4573 = vrot.lane.b32.xlu0 %v9116_v24, %s8019_s28 }
0x1690   : > { %4503 = vmax.xlane.f32.xlu1 %v4502_v60 }
0x16a1   : > { %4714 = vrot.lane.b32.xlu1 %v9126_v53, %s8019_s28  ;;  %s9960_s28 = smov 112  }
0x16b6   : > { %v4483_v44 = vpop.xlane.xlu0 %4482 }
0x16b7   : > { %v4505_v5 = vsub.f32 %v4473_v21, %v4483_v44 }
0x16b9   : > { %v4513_v12 = vmul.f32 1.442695, %v4505_v5 }
0x16ba   : > { %v4486_v31 = vpop.xlane.xlu1 %4485 }
0x16bb   : > { %7747 = vpow2.f32 %v4513_v12  ;;  %v4506_v1 = vsub.f32 %v4474_v41, %v4486_v31 }
0x16bd   : > { %v4515_v57 = vmul.f32 1.442695, %v4506_v1 }
0x16bf   : > { %7749 = vpow2.f32 %v4515_v57 }
0x16c8   : > { %v9360_v61 = vpop.eup %7747 }
0x16c9   : > { %v4529_v59 = vsel %vm1043_vm4, %v9360_v61, 0.0 }
0x16ca   : > { %4530 = vadd.xlane.f32.xlu0 %v4529_v59 }
0x16cc   : > { %v9364_v43 = vpop.eup %7749 }
0x16cd   : > { %v4532_v36 = vsel %vm1043_vm4, %v9364_v43, 0.0 }
0x16ce   : > { %4533 = vadd.xlane.f32.xlu1 %v4532_v36 }
0x16e0   : > { %v4498_v27 = vpop.xlane.xlu1 %4497 }
0x16e1   : > { %v4510_v30 = vsub.f32 %v9331_v23, %v4498_v27 }
0x16e3   : > { %v4523_v34 = vmul.f32 1.442695, %v4510_v30 }
0x16e4   : > { %v4621_v21 = vpop.permute.xlu1 %4620 }
0x16e5   : > { %7267 = vmatpush3.bf16.msra.mxu1 %v4621_v21 }
0x16e6   : > { %7278 = vmatprep.subr.bf16.mxu1 %v9955_v8 }
0x16e8   : > { %v4668_v36 = vpop.permute.xlu1 %4667 }
0x16ea   : > { %v4489_v41 = vpop.xlane.xlu0 %4488 }
0x16eb   : > { %v4507_v11 = vsub.f32 %v4475_v16, %v4489_v41 }
0x16ed   : > { %v4517_v32 = vmul.f32 1.442695, %v4507_v11 }
0x16ee   : > { %v4492_v26 = vpop.xlane.xlu0 %4491 }
0x16ef   : > { %7751 = vpow2.f32 %v4517_v32  ;;  %v4508_v25 = vsub.f32 %v4476_v0, %v4492_v26 }
0x16f1   : > { %v4519_v35 = vmul.f32 1.442695, %v4508_v25 }
0x16f2   : > { %v4495_v48 = vpop.xlane.xlu0 %4494 }
0x16f3   : > { %7753 = vpow2.f32 %v4519_v35  ;;  %v4509_v6 = vsub.f32 %v4477_v33, %v4495_v48 }
0x16f4   : > { %7755 = vpow2.f32 %v4523_v34 }
0x16f5   : > { %v4521_v45 = vmul.f32 1.442695, %v4509_v6 }
0x16f6   : > { %v4501_v2 = vpop.xlane.xlu0 %4500 }
0x16f7   : > { %7757 = vpow2.f32 %v4521_v45  ;;  %v4511_v60 = vsub.f32 %v4479_v39, %v4501_v2 }
0x16f9   : > { %v4525_v44 = vmul.f32 1.442695, %v4511_v60 }
0x16fa   : > { %v4574_v5 = vpop.permute.xlu0 %4573 }
0x16fb   : > { %7759 = vpow2.f32 %v4525_v44  ;;  %7261 = vmatpush3.bf16.msra.mxu0 %v4574_v5 }
0x16fc   : > { %v7752_v16 = vpop.eup %7751  ;;  %7272 = vmatprep.subr.bf16.mxu0 %v9955_v8 }
0x16fd   : > { %v4535_v23 = vsel %vm1043_vm4, %v7752_v16, 0.0 }
0x16fe   : > { %4536 = vadd.xlane.f32.xlu0 %v4535_v23 }
0x1700   : > { %v7754_v0 = vpop.eup %7753 }
0x1701   : > { %v4538_v12 = vsel %vm1043_vm4, %v7754_v0, 0.0  ;;  %v7756_v31 = vpop.eup %7755 }
0x1702   : > { %4539 = vadd.xlane.f32.xlu1 %v4538_v12  ;;  %v4544_v39 = vsel %vm1043_vm4, %v7756_v31, 0.0 }
0x1704   : > { %v7758_v33 = vpop.eup %7757 }
0x1705   : > { %v4541_v1 = vsel %vm1043_vm4, %v7758_v33, 0.0 }
0x1706   : > { %4542 = vadd.xlane.f32.xlu0 %v4541_v1  ;;  %4545 = vadd.xlane.f32.xlu1 %v4544_v39 }
0x1708   : > { %v9375_v57 = vpop.eup %7759 }
0x1709   : > { %v4547_v59 = vsel %vm1043_vm4, %v9375_v57, 0.0 }
0x170a   : > { %4548 = vadd.xlane.f32.xlu0 %v4547_v59 }
0x1717   : > { %4818 = vrot.lane.b32.xlu1 %v9114_v13, %s8020_s25 }
0x1719   : > { %v4504_v27 = vpop.xlane.xlu1 %4503 }
0x171a   : > { %v4512_v21 = vsub.f32 %v9354_v62, %v4504_v27 }
0x171c   : > { %v4527_v41 = vmul.f32 1.442695, %v4512_v21 }
0x171d   : > { %v4715_v62 = vpop.permute.xlu1 %4714 }
0x171e   : > { %7761 = vpow2.f32 %v4527_v41 }
0x1720   : > { %4767 = vrot.lane.b32.xlu0 %v9116_v24, %s8020_s25 }
0x1724   : > { %4765 = vrot.lane.b32.xlu0 %v9116_v24, %s9960_s28 }
0x1728   : > { %4816 = vrot.lane.b32.xlu0 %v9114_v13, %s9960_s28 }
0x172b   : > { %v9390_v11 = vpop.eup %7761 }
0x172c   : > { %4867 = vrot.lane.b32.xlu0 %v9122_v38, %s9960_s28  ;;  %v4550_v30 = vsel %vm1043_vm4, %v9390_v11, 0.0 }
0x173b   : > { %4551 = vadd.xlane.f32.xlu1 %v4550_v30 }
0x174c   : > { %4869 = vrot.lane.b32.xlu1 %v9122_v38, %s8020_s25 }
0x1750   : > { %4920 = vrot.lane.b32.xlu1 %v9126_v53, %s8020_s25 }
0x1753   : > { %v4531_v32 = vpop.xlane.xlu0 %4530 }
0x1754   : > { %4918 = vrot.lane.b32.xlu1 %v9126_v53, %s9960_s28  ;;  %7763 = vrcp.f32 %v4531_v32 }
0x1757   : > { %v4534_v26 = vpop.xlane.xlu1 %4533 }
0x1758   : > { %7765 = vrcp.f32 %v4534_v26 }
0x1761   : > { %v7764_v25 = vpop.eup %7763 }
0x1762   : > { %v4561_v35 = vmul.f32 %v7764_v25, %v9360_v61 }
0x1765   : > { %v7766_v34 = vpop.eup %7765 }
0x1766   : > { %v4562_v48 = vmul.f32 %v7766_v34, %v9364_v43 }
0x1768   : > { %v4569_v6 = vpack.c.bf16 %v4562_v48, %v4561_v35 }
0x176a   : > { %7263 = vmatmul.mubr.msk.bf16.vlgmr.msra.gmra.mxu0 %vm1043_vm4, %v4569_v6 }
0x176b   : > { %7273 = vmatpush3.bf16.msra.mxu0 %v4668_v36  ;;  %7274 = vmatprep.mubr.msk.bf16.mxu0 %vm8014_vm2, %v9955_v8 }
0x176c   : > { %7284 = vmatprep.subr.bf16.mxu0 %v9955_v8 }
0x1787   : > { %v4537_v45 = vpop.xlane.xlu0 %4536 }
0x1788   : > { %7767 = vrcp.f32 %v4537_v45 }
0x178b   : > { %v4540_v2 = vpop.xlane.xlu1 %4539 }
0x178c   : > { %7769 = vrcp.f32 %v4540_v2 }
0x178f   : > { %v4543_v60 = vpop.xlane.xlu0 %4542  ;;  %v4546_v44 = vpop.xlane.xlu1 %4545 }
0x1790   : > { %7771 = vrcp.f32 %v4543_v60 }
0x1791   : > { %7773 = vrcp.f32 %v4546_v44 }
0x1793   : > { %v4549_v12 = vpop.xlane.xlu0 %4548 }
0x1794   : > { %7775 = vrcp.f32 %v4549_v12 }
0x1795   : > { %v7768_v61 = vpop.eup %7767 }
0x1796   : > { %v4563_v43 = vmul.f32 %v7768_v61, %v7752_v16 }
0x1797   : > { %v4768_v21 = vpop.permute.xlu0 %4767 }
0x1798   : > { %v4773_v30 = vsel %vm845_vm3, %v4768_v21, 0 }
0x1799   : > { %v7770_v5 = vpop.eup %7769 }
0x179a   : > { %v4564_v23 = vmul.f32 %v7770_v5, %v7754_v0  ;;  %v4819_v0 = vpop.permute.xlu1 %4818 }
0x179b   : > { %v4766_v16 = vpop.permute.xlu0 %4765  ;;  %v4824_v45 = vsel %vm845_vm3, %v4819_v0, 0 }
0x179c   : > { %v4570_v1 = vpack.c.bf16 %v4564_v23, %v4563_v43 }
0x179d   : > { %v7772_v39 = vpop.eup %7771 }
0x179e   : > { %v7774_v59 = vpop.eup %7773  ;;  %7269 = vmatmul.mubr.msk.bf16.vlgmr.msra.gmra.mxu1 %vm1043_vm4, %v4570_v1  ;;  %v4565_v36 = vmul.f32 %v7772_v39, %v7758_v33 }
0x179f   : > { %7279 = vmatpush3.bf16.msra.mxu1 %v4715_v62  ;;  %v4566_v27 = vmul.f32 %v7774_v59, %v7756_v31  ;;  %7280 = vmatprep.mubr.msk.bf16.mxu1 %vm8014_vm2, %v9955_v8  ;;  %v4817_v32 = vpop.permute.xlu0 %4816 }
0x17a0   : > { %7290 = vmatprep.subr.bf16.mxu1 %v9955_v8 }
0x17a1   : > { %v4571_v41 = vpack.c.bf16 %v4566_v27, %v4565_v36  ;;  %v7776_v26 = vpop.eup %7775 }
0x17a2   : > { %v4567_v35 = vmul.f32 %v7776_v26, %v9375_v57 }
0x17a3   : > { %7275 = vmatmul.mubr.msk.bf16.vlgmr.msra.gmra.mxu0 %vm1043_vm4, %v4571_v41  ;;  %v4868_v25 = vpop.permute.xlu0 %4867 }
0x17a4   : > { %7285 = vmatpush3.bf16.xpose.msra.mxu0 %v4773_v30  ;;  %7286 = vmatprep.mubr.msk.bf16.mxu0 %vm8014_vm2, %v9955_v8 }
0x17a5   : > { %7296 = vmatprep.subr.bf16.mxu0 %v9955_v8 }
0x17ab   : > { %7287 = vmatmul.mubr.msk.bf16.vlgmr.msra.gmra.mxu0 %vm845_vm3, %v4766_v16  ;;  %v6671_v16 = vld [vmem:[%s9935_s13 + $0x60] sm:$0xff] }
0x17ac   : > { %7298 = vmatprep.mubr.msk.bf16.mxu0 %vm8014_vm2, %v9955_v8 }
0x17c4   : > { %v4552_v31 = vpop.xlane.xlu1 %4551 }
0x17c5   : > { %7777 = vrcp.f32 %v4552_v31 }
0x17c8   : > { %v4870_v33 = vpop.permute.xlu1 %4869 }
0x17c9   : > { %v4875_v62 = vsel %vm845_vm3, %v4870_v33, 0 }
0x17ca   : > { %7297 = vmatpush3.bf16.xpose.msra.mxu0 %v4875_v62  ;;  %v6672_v62 = vld [vmem:[%s9935_s13 + $0x68] sm:$0xff] }
0x17cb   : > { %7308 = vmatprep.subr.bf16.mxu0 %v9955_v8 }
0x17cc   : > { %v4921_v2 = vpop.permute.xlu1 %4920 }
0x17cd   : > { %v4926_v60 = vsel %vm845_vm3, %v4921_v2, 0 }
0x17d0   : > { %v4919_v57 = vpop.permute.xlu1 %4918 }
0x17d1   : > { %7299 = vmatmul.mubr.msk.bf16.vlgmr.msra.gmra.mxu0 %vm845_vm3, %v4868_v25 }
0x17d2   : > { %v7778_v34 = vpop.eup %7777  ;;  %7310 = vmatprep.mubr.msk.bf16.mxu0 %vm8014_vm2, %v9955_v8 }
0x17d3   : > { %v4568_v48 = vmul.f32 %v7778_v34, %v9390_v11 }
0x17d5   : > { %v4572_v6 = vpack.c.bf16 %v4568_v48, %v4567_v35 }
0x17d7   : > { %7281 = vmatmul.mubr.msk.bf16.vlgmr.msra.gmra.mxu1 %vm1043_vm4, %v4572_v6 }
0x17d8   : > { %7291 = vmatpush3.bf16.xpose.msra.mxu1 %v4824_v45  ;;  %7292 = vmatprep.mubr.msk.bf16.mxu1 %vm8014_vm2, %v9955_v8 }
0x17d9   : > { %7302 = vmatprep.subr.bf16.mxu1 %v9955_v8 }
0x17df   : > { %7293 = vmatmul.mubr.msk.bf16.vlgmr.msra.gmra.mxu1 %vm845_vm3, %v4817_v32 }
0x17e0   : > { %7303 = vmatpush3.bf16.xpose.msra.mxu1 %v4926_v60  ;;  %7304 = vmatprep.mubr.msk.bf16.mxu1 %vm8014_vm2, %v9955_v8 }
0x17e1   : > { %7314 = vmatprep.subr.bf16.mxu1 %v9955_v8 }
0x17e7   : > { %7305 = vmatmul.mubr.msk.bf16.vlgmr.msra.gmra.mxu1 %vm845_vm3, %v4919_v57 }
0x17e8   : > { %7316 = vmatprep.mubr.msk.bf16.mxu1 %vm8014_vm2, %v9955_v8 }
0x182a   : > { %v9438_v11 = vpop.f32.mrf.mxu0 }
0x182c   : > { %v7264_v44 = vpop.f32.mrf.mxu0 }
0x182e   : > { %v9440_v61 = vpop.f32.mrf.mxu0 }
0x182f   : > { %v4761_v5 = vpack.c.bf16 %v9440_v61, %v9438_v11 }
0x1830   : > { %v7265_v43 = vpop.f32.mrf.mxu0 }
0x185e   : > { %v9444_v23 = vpop.f32.mrf.mxu1 }
0x1860   : > { %v7270_v12 = vpop.f32.mrf.mxu1 }
0x1862   : > { %v9446_v1 = vpop.f32.mrf.mxu1 }
0x1863   : > { %v4762_v39 = vpack.c.bf16 %v9446_v1, %v9444_v23  ;;  %v9450_v59 = vpop.f32.mrf.mxu0 }
0x1864   : > { %v7271_v36 = vpop.f32.mrf.mxu1 }
0x1865   : > { %v7276_v27 = vpop.f32.mrf.mxu0 }
0x1867   : > { %v9452_v21 = vpop.f32.mrf.mxu0 }
0x1868   : > { %v4763_v41 = vpack.c.bf16 %v9452_v21, %v9450_v59 }
0x1869   : > { %v7277_v30 = vpop.f32.mrf.mxu0 }
0x186b   : > { %v4809_v0 = vpop.f32.mrf.mxu0 }
0x186c   : > { %v4810_v31 = vadd.f32 %v6671_v16, %v4809_v0 }
0x186d   : > { %v7288_v33 = vpop.f32.mrf.mxu0 }
0x186e   : > { %v4977_v32 = vadd.f32 %v4810_v31, %v9160_v55 }
0x186f   : > { %v4812_v26 = vpop.f32.mrf.mxu0 }
0x1870   : > { %v4813_v25 = vadd.f32 %v6672_v62, %v4812_v26  ;;  %v4985_v34 = vsel %vm1043_vm4, %v4977_v32, -inf }
0x1871   : > { %4986 = vmax.xlane.f32.xlu0 %v4985_v34  ;;  %v7289_v35 = vpop.f32.mrf.mxu0 }
0x1872   : > { %v4978_v48 = vadd.f32 %v4813_v25, %v9169_v58 }
0x1874   : > { %v4988_v6 = vsel %vm1043_vm4, %v4978_v48, -inf }
0x1875   : > { %4989 = vmax.xlane.f32.xlu1 %v4988_v6 }
0x1891   : > { %v4911_v45 = vpop.f32.mrf.mxu0 }
0x1892   : > { %v4912_v34 = vadd.f32 %v6671_v16, %v4911_v45 }
0x1893   : > { %v7300_v2 = vpop.f32.mrf.mxu0 }
0x1895   : > { %v4914_v60 = vpop.f32.mrf.mxu0 }
0x1896   : > { %v4915_v57 = vadd.f32 %v6672_v62, %v4914_v60 }
0x1897   : > { %v9466_v44 = vpop.f32.mrf.mxu1  ;;  %v7301_v43 = vpop.f32.mrf.mxu0 }
0x1898   : > { %v9469_v55 = vadd.f32 %v4915_v57, %v9188_v10  ;;  %v4981_v57 = vadd.f32 %v4912_v34, %v9194_v37 }
0x1899   : > { %v7282_v12 = vpop.f32.mrf.mxu1 }
0x189a   : > { %v5000_v36 = vsel %vm1043_vm4, %v9469_v55, -inf  ;;  %v4997_v45 = vsel %vm1043_vm4, %v4981_v57, -inf }
0x189b   : > { %v9473_v27 = vpop.f32.mrf.mxu1  ;;  %5001 = vmax.xlane.f32.xlu1 %v5000_v36 }
0x189c   : > { %v9968_v11 = vpack.c.bf16 %v9473_v27, %v9466_v44  ;;  %v9969_v27 = vmov 0.0  }
0x189d   : > { %v7283_v30 = vpop.f32.mrf.mxu1 }
0x189f   : > { %v4860_v0 = vpop.f32.mrf.mxu1 }
0x18a0   : > { %v4861_v31 = vadd.f32 %v6671_v16, %v4860_v0 }
0x18a1   : > { %v7294_v33 = vpop.f32.mrf.mxu1 }
0x18a2   : > { %v4979_v26 = vadd.f32 %v4861_v31, %v9176_v19 }
0x18a3   : > { %v4863_v25 = vpop.f32.mrf.mxu1 }
0x18a4   : > { %v4864_v10 = vadd.f32 %v6672_v62, %v4863_v25  ;;  %v4991_v35 = vsel %vm1043_vm4, %v4979_v26, -inf }
0x18a5   : > { %4992 = vmax.xlane.f32.xlu0 %v4991_v35  ;;  %v7295_v6 = vpop.f32.mrf.mxu1 }
0x18a6   : > { %v4980_v2 = vadd.f32 %v4864_v10, %v9183_v20 }
0x18a7   : > { %v4962_v60 = vpop.f32.mrf.mxu1 }
0x18a8   : > { %v4963_v43 = vadd.f32 %v6671_v16, %v4962_v60  ;;  %v4994_v12 = vsel %vm1043_vm4, %v4980_v2, -inf }
0x18a9   : > { %4995 = vmax.xlane.f32.xlu0 %v4994_v12  ;;  %v7306_v36 = vpop.f32.mrf.mxu1 }
0x18aa   : > { %v4983_v19 = vadd.f32 %v4963_v43, %v9204_v29 }
0x18ab   : > { %v4965_v30 = vpop.f32.mrf.mxu1 }
0x18ac   : > { %5124 = vrot.lane.b32.xlu1 %v9114_v13, %s9961_s23  ;;  %v5003_v20 = vsel %vm1043_vm4, %v4983_v19, -inf  ;;  %v4966_v37 = vadd.f32 %v6672_v62, %v4965_v30 }
0x18ad   : > { %4998 = vmax.xlane.f32.xlu0 %v4997_v45  ;;  %v7307_v0 = vpop.f32.mrf.mxu1 }
0x18ae   : > { %v9492_v16 = vadd.f32 %v4966_v37, %v9218_v7 }
0x18b0   : > { %5171 = vrot.lane.b32.xlu1 %v9122_v38, %s9961_s23  ;;  %v5006_v29 = vsel %vm1043_vm4, %v9492_v16, -inf }
0x18b1   : > { %5004 = vmax.xlane.f32.xlu0 %v5003_v20 }
0x18c7   : > { %5077 = vrot.lane.b32.xlu0 %v9116_v24, %s9961_s23 }
0x18d4   : > { %5007 = vmax.xlane.f32.xlu1 %v5006_v29 }
0x18e5   : > { %5218 = vrot.lane.b32.xlu1 %v9126_v53, %s9961_s23  ;;  %s9970_s23 = smov 24  }
0x18fa   : > { %v4987_v31 = vpop.xlane.xlu0 %4986 }
0x18fb   : > { %v5009_v33 = vsub.f32 %v4977_v32, %v4987_v31 }
0x18fd   : > { %v5017_v25 = vmul.f32 1.442695, %v5009_v33 }
0x18fe   : > { %v4990_v34 = vpop.xlane.xlu1 %4989 }
0x18ff   : > { %7779 = vpow2.f32 %v5017_v25  ;;  %v5010_v10 = vsub.f32 %v4978_v48, %v4990_v34 }
0x1901   : > { %v5019_v35 = vmul.f32 1.442695, %v5010_v10 }
0x1903   : > { %7781 = vpow2.f32 %v5019_v35 }
0x190c   : > { %v9498_v6 = vpop.eup %7779 }
0x190d   : > { %v5033_v7 = vsel %vm1043_vm4, %v9498_v6, 0.0 }
0x190e   : > { %5034 = vadd.xlane.f32.xlu0 %v5033_v7 }
0x1910   : > { %v9502_v62 = vpop.eup %7781 }
0x1911   : > { %v5036_v60 = vsel %vm1043_vm4, %v9502_v62, 0.0 }
0x1912   : > { %5037 = vadd.xlane.f32.xlu1 %v5036_v60 }
0x1924   : > { %v5002_v43 = vpop.xlane.xlu1 %5001 }
0x1925   : > { %v5014_v36 = vsub.f32 %v9469_v55, %v5002_v43 }
0x1927   : > { %v5027_v20 = vmul.f32 1.442695, %v5014_v36 }
0x1928   : > { %v5125_v32 = vpop.permute.xlu1 %5124 }
0x1929   : > { %7315 = vmatpush3.bf16.msra.mxu1 %v5125_v32 }
0x192a   : > { %7326 = vmatprep.subr.bf16.mxu1 %v9955_v8 }
0x192e   : > { %v4993_v48 = vpop.xlane.xlu0 %4992 }
0x192f   : > { %v5011_v12 = vsub.f32 %v4979_v26, %v4993_v48 }
0x1931   : > { %v5021_v30 = vmul.f32 1.442695, %v5011_v12  ;;  %v5172_v12 = vpop.permute.xlu1 %5171 }
0x1932   : > { %v4996_v45 = vpop.xlane.xlu0 %4995 }
0x1933   : > { %7783 = vpow2.f32 %v5021_v30  ;;  %v5012_v0 = vsub.f32 %v4980_v2, %v4996_v45 }
0x1935   : > { %v5023_v37 = vmul.f32 1.442695, %v5012_v0 }
0x1936   : > { %v4999_v29 = vpop.xlane.xlu0 %4998 }
0x1937   : > { %7785 = vpow2.f32 %v5023_v37  ;;  %v5013_v31 = vsub.f32 %v4981_v57, %v4999_v29 }
0x1938   : > { %7787 = vpow2.f32 %v5027_v20 }
0x1939   : > { %v5025_v33 = vmul.f32 1.442695, %v5013_v31 }
0x193a   : > { %v5005_v25 = vpop.xlane.xlu0 %5004 }
0x193b   : > { %7789 = vpow2.f32 %v5025_v33  ;;  %v5015_v34 = vsub.f32 %v4983_v19, %v5005_v25 }
0x193d   : > { %v5029_v10 = vmul.f32 1.442695, %v5015_v34 }
0x193e   : > { %v5078_v35 = vpop.permute.xlu0 %5077 }
0x193f   : > { %7791 = vpow2.f32 %v5029_v10  ;;  %7309 = vmatpush3.bf16.msra.mxu0 %v5078_v35 }
0x1940   : > { %v7784_v26 = vpop.eup %7783  ;;  %7320 = vmatprep.subr.bf16.mxu0 %v9955_v8 }
0x1941   : > { %v5039_v55 = vsel %vm1043_vm4, %v7784_v26, 0.0 }
0x1942   : > { %5040 = vadd.xlane.f32.xlu0 %v5039_v55 }
0x1944   : > { %v7786_v2 = vpop.eup %7785 }
0x1945   : > { %v5042_v7 = vsel %vm1043_vm4, %v7786_v2, 0.0  ;;  %v7788_v60 = vpop.eup %7787 }
0x1946   : > { %5043 = vadd.xlane.f32.xlu1 %v5042_v7  ;;  %v5048_v19 = vsel %vm1043_vm4, %v7788_v60, 0.0 }
0x1948   : > { %v7790_v57 = vpop.eup %7789 }
0x1949   : > { %v5045_v43 = vsel %vm1043_vm4, %v7790_v57, 0.0 }
0x194a   : > { %5046 = vadd.xlane.f32.xlu0 %v5045_v43  ;;  %5049 = vadd.xlane.f32.xlu1 %v5048_v19 }
0x194c   : > { %v9513_v32 = vpop.eup %7791 }
0x194d   : > { %v5051_v48 = vsel %vm1043_vm4, %v9513_v32, 0.0 }
0x194e   : > { %5052 = vadd.xlane.f32.xlu0 %v5051_v48 }
0x195b   : > { %5322 = vrot.lane.b32.xlu1 %v9114_v13, %s9962_s24 }
0x195d   : > { %v5008_v36 = vpop.xlane.xlu1 %5007 }
0x195e   : > { %v5016_v30 = vsub.f32 %v9492_v16, %v5008_v36 }
0x1960   : > { %v5031_v45 = vmul.f32 1.442695, %v5016_v30 }
0x1961   : > { %v5219_v16 = vpop.permute.xlu1 %5218 }
0x1962   : > { %7793 = vpow2.f32 %v5031_v45 }
0x1964   : > { %5271 = vrot.lane.b32.xlu0 %v9116_v24, %s9962_s24 }
0x1968   : > { %5269 = vrot.lane.b32.xlu0 %v9116_v24, %s9963_s27 }
0x196c   : > { %5320 = vrot.lane.b32.xlu0 %v9114_v13, %s9963_s27 }
0x196f   : > { %v9528_v0 = vpop.eup %7793 }
0x1970   : > { %5371 = vrot.lane.b32.xlu0 %v9122_v38, %s9963_s27  ;;  %v5054_v20 = vsel %vm1043_vm4, %v9528_v0, 0.0 }
0x197f   : > { %5055 = vadd.xlane.f32.xlu1 %v5054_v20 }
0x1990   : > { %5373 = vrot.lane.b32.xlu1 %v9122_v38, %s9962_s24 }
0x1994   : > { %5424 = vrot.lane.b32.xlu1 %v9126_v53, %s9962_s24 }
0x1997   : > { %v5035_v37 = vpop.xlane.xlu0 %5034 }
0x1998   : > { %5422 = vrot.lane.b32.xlu1 %v9126_v53, %s9963_s27  ;;  %7795 = vrcp.f32 %v5035_v37 }
0x199b   : > { %v5038_v29 = vpop.xlane.xlu1 %5037 }
0x199c   : > { %7797 = vrcp.f32 %v5038_v29 }
0x19a5   : > { %v7796_v31 = vpop.eup %7795 }
0x19a6   : > { %v5065_v25 = vmul.f32 %v7796_v31, %v9498_v6 }
0x19a9   : > { %v7798_v33 = vpop.eup %7797 }
0x19aa   : > { %v5066_v34 = vmul.f32 %v7798_v33, %v9502_v62 }
0x19ac   : > { %v5073_v10 = vpack.c.bf16 %v5066_v34, %v5065_v25 }
0x19ae   : > { %7311 = vmatmul.mubr.msk.bf16.vlgmr.msra.gmra.mxu0 %vm1043_vm4, %v5073_v10 }
0x19af   : > { %7321 = vmatpush3.bf16.msra.mxu0 %v5172_v12  ;;  %7322 = vmatprep.mubr.msk.bf16.mxu0 %vm8014_vm2, %v9955_v8 }
0x19b0   : > { %7332 = vmatprep.subr.bf16.mxu0 %v9955_v8 }
0x19cb   : > { %v5041_v35 = vpop.xlane.xlu0 %5040 }
0x19cc   : > { %7799 = vrcp.f32 %v5041_v35 }
0x19cf   : > { %v5044_v55 = vpop.xlane.xlu1 %5043 }
0x19d0   : > { %7801 = vrcp.f32 %v5044_v55 }
0x19d3   : > { %v5047_v7 = vpop.xlane.xlu0 %5046  ;;  %v5050_v43 = vpop.xlane.xlu1 %5049 }
0x19d4   : > { %7803 = vrcp.f32 %v5047_v7 }
0x19d5   : > { %7805 = vrcp.f32 %v5050_v43 }
0x19d7   : > { %v5053_v36 = vpop.xlane.xlu0 %5052 }
0x19d8   : > { %7807 = vrcp.f32 %v5053_v36 }
0x19d9   : > { %v7800_v6 = vpop.eup %7799 }
0x19da   : > { %v5067_v62 = vmul.f32 %v7800_v6, %v7784_v26 }
0x19db   : > { %v5272_v29 = vpop.permute.xlu0 %5271 }
0x19dc   : > { %v5277_v33 = vsel %vm845_vm3, %v5272_v29, 0 }
0x19dd   : > { %v7802_v19 = vpop.eup %7801 }
0x19de   : > { %v5068_v48 = vmul.f32 %v7802_v19, %v7786_v2  ;;  %v5323_v2 = vpop.permute.xlu1 %5322 }
0x19df   : > { %v5270_v26 = vpop.permute.xlu0 %5269  ;;  %v5328_v6 = vsel %vm845_vm3, %v5323_v2, 0 }
0x19e0   : > { %v5074_v30 = vpack.c.bf16 %v5068_v48, %v5067_v62 }
0x19e1   : > { %v7804_v12 = vpop.eup %7803 }
0x19e2   : > { %v7806_v45 = vpop.eup %7805  ;;  %v5069_v20 = vmul.f32 %v7804_v12, %v7790_v57  ;;  %7317 = vmatmul.mubr.msk.bf16.vlgmr.msra.gmra.mxu1 %vm1043_vm4, %v5074_v30 }
0x19e3   : > { %v5070_v37 = vmul.f32 %v7806_v45, %v7788_v60  ;;  %7327 = vmatpush3.bf16.msra.mxu1 %v5219_v16  ;;  %7328 = vmatprep.mubr.msk.bf16.mxu1 %vm8014_vm2, %v9955_v8  ;;  %v5321_v25 = vpop.permute.xlu0 %5320 }
0x19e4   : > { %7338 = vmatprep.subr.bf16.mxu1 %v9955_v8 }
0x19e5   : > { %v5075_v31 = vpack.c.bf16 %v5070_v37, %v5069_v20  ;;  %v7808_v34 = vpop.eup %7807 }
0x19e6   : > { %v5071_v55 = vmul.f32 %v7808_v34, %v9513_v32  ;;  %v5473_v34 = vld [vmem:[%s9936_s14] sm:$0xff] }
0x19e7   : > { %7323 = vmatmul.mubr.msk.bf16.vlgmr.msra.gmra.mxu0 %vm1043_vm4, %v5075_v31  ;;  %v5372_v10 = vpop.permute.xlu0 %5371 }
0x19e8   : > { %7333 = vmatpush3.bf16.xpose.msra.mxu0 %v5277_v33  ;;  %7334 = vmatprep.mubr.msk.bf16.mxu0 %vm8014_vm2, %v9955_v8 }
0x19e9   : > { %7344 = vmatprep.subr.bf16.mxu0 %v9955_v8 }
0x19ef   : > { %7335 = vmatmul.mubr.msk.bf16.vlgmr.msra.gmra.mxu0 %vm845_vm3, %v5270_v26 }
0x19f0   : > { %7346 = vmatprep.mubr.msk.bf16.mxu0 %vm8014_vm2, %v9955_v8 }
0x1a08   : > { %v5056_v60 = vpop.xlane.xlu1 %5055 }
0x1a09   : > { %7809 = vrcp.f32 %v5056_v60  ;;  %v5480_v60 = vld [vmem:[%s9936_s14 + $0x38] sm:$0xff] }
0x1a0c   : > { %v5374_v57 = vpop.permute.xlu1 %5373 }
0x1a0d   : > { %v5379_v16 = vsel %vm845_vm3, %v5374_v57, 0 }
0x1a0e   : > { %7345 = vmatpush3.bf16.xpose.msra.mxu0 %v5379_v16  ;;  %v6673_v16 = vld [vmem:[%s9935_s13 + $0x70] sm:$0xff] }
0x1a0f   : > { %7356 = vmatprep.subr.bf16.mxu0 %v9955_v8 }
0x1a10   : > { %v5425_v19 = vpop.permute.xlu1 %5424 }
0x1a11   : > { %v5430_v62 = vsel %vm845_vm3, %v5425_v19, 0 }
0x1a14   : > { %v5423_v32 = vpop.permute.xlu1 %5422 }
0x1a15   : > { %7347 = vmatmul.mubr.msk.bf16.vlgmr.msra.gmra.mxu0 %vm845_vm3, %v5372_v10 }
0x1a16   : > { %v7810_v35 = vpop.eup %7809  ;;  %7358 = vmatprep.mubr.msk.bf16.mxu0 %vm8014_vm2, %v9955_v8 }
0x1a17   : > { %v5072_v7 = vmul.f32 %v7810_v35, %v9528_v0 }
0x1a19   : > { %v5076_v43 = vpack.c.bf16 %v5072_v7, %v5071_v55  ;;  %v6674_v55 = vld [vmem:[%s9935_s13 + $0x78] sm:$0xff] }
0x1a1b   : > { %7329 = vmatmul.mubr.msk.bf16.vlgmr.msra.gmra.mxu1 %vm1043_vm4, %v5076_v43 }
0x1a1c   : > { %7339 = vmatpush3.bf16.xpose.msra.mxu1 %v5328_v6  ;;  %7340 = vmatprep.mubr.msk.bf16.mxu1 %vm8014_vm2, %v9955_v8  ;;  %v5474_v6 = vld [vmem:[%s9936_s14 + $0x8] sm:$0xff] }
0x1a1d   : > { %7350 = vmatprep.subr.bf16.mxu1 %v9955_v8 }
0x1a23   : > { %7341 = vmatmul.mubr.msk.bf16.vlgmr.msra.gmra.mxu1 %vm845_vm3, %v5321_v25 }
0x1a24   : > { %7351 = vmatpush3.bf16.xpose.msra.mxu1 %v5430_v62  ;;  %7352 = vmatprep.mubr.msk.bf16.mxu1 %vm8014_vm2, %v9955_v8 }
0x1a25   : > { %7362 = vmatprep.subr.bf16.mxu1 %v9955_v8 }
0x1a2b   : > { %7353 = vmatmul.mubr.msk.bf16.vlgmr.msra.gmra.mxu1 %vm845_vm3, %v5423_v32 }
0x1a2c   : > { %7364 = vmatprep.mubr.msk.bf16.mxu1 %vm8014_vm2, %v9955_v8 }
0x1a6e   : > { %v9576_v0 = vpop.f32.mrf.mxu0 }
0x1a70   : > { %v7312_v48 = vpop.f32.mrf.mxu0 }
0x1a72   : > { %v9578_v36 = vpop.f32.mrf.mxu0 }
0x1a73   : > { %v5265_v30 = vpack.c.bf16 %v9578_v36, %v9576_v0 }
0x1a74   : > { %v7313_v12 = vpop.f32.mrf.mxu0 }
0x1aa2   : > { %v9582_v45 = vpop.f32.mrf.mxu1 }
0x1aa4   : > { %v7318_v20 = vpop.f32.mrf.mxu1 }
0x1aa6   : > { %v9584_v37 = vpop.f32.mrf.mxu1 }
0x1aa7   : > { %v9588_v31 = vpop.f32.mrf.mxu0 }
0x1aa8   : > { %v7319_v33 = vpop.f32.mrf.mxu1 }
0x1aa9   : > { %v7324_v26 = vpop.f32.mrf.mxu0 }
0x1aab   : > { %v9590_v2 = vpop.f32.mrf.mxu0 }
0x1aad   : > { %v7325_v57 = vpop.f32.mrf.mxu0 }
0x1aae   : > { %v5478_v57 = vld [vmem:[%s9936_s14 + $0x28] sm:$0xff] }
0x1aaf   : > { %v5313_v25 = vpop.f32.mrf.mxu0 }
0x1ab0   : > { %v5314_v10 = vadd.f32 %v6673_v16, %v5313_v25 }
0x1ab1   : > { %v7336_v35 = vpop.f32.mrf.mxu0 }
0x1ab2   : > { %v5481_v7 = vadd.f32 %v5473_v34, %v5314_v10 }
0x1ab3   : > { %v5316_v43 = vpop.f32.mrf.mxu0 }
0x1ab4   : > { %v5317_v19 = vadd.f32 %v6674_v55, %v5316_v43  ;;  %v5489_v62 = vsel %vm1043_vm4, %v5481_v7, -inf }
0x1ab5   : > { %5490 = vmax.xlane.f32.xlu0 %v5489_v62  ;;  %v7337_v32 = vpop.f32.mrf.mxu0 }
0x1ab6   : > { %v5482_v48 = vadd.f32 %v5474_v6, %v5317_v19 }
0x1ab8   : > { %v5492_v12 = vsel %vm1043_vm4, %v5482_v48, -inf }
0x1ab9   : > { %5493 = vmax.xlane.f32.xlu1 %v5492_v12 }
0x1ad5   : > { %v5415_v20 = vpop.f32.mrf.mxu0 }
0x1ad7   : > { %v7348_v33 = vpop.f32.mrf.mxu0 }
0x1ad8   : > { %v5475_v33 = vld [vmem:[%s9936_s14 + $0x10] sm:$0xff] }
0x1ad9   : > { %v5418_v26 = vpop.f32.mrf.mxu0 }
0x1ada   : > { %v5419_v25 = vadd.f32 %v6674_v55, %v5418_v26 }
0x1adb   : > { %v9611_v34 = vpop.f32.mrf.mxu1  ;;  %v7349_v10 = vpop.f32.mrf.mxu0 }
0x1adc   : > { %v5486_v35 = vadd.f32 %v5478_v57, %v5419_v25  ;;  %v5476_v57 = vld [vmem:[%s9936_s14 + $0x18] sm:$0xff]  ;;  %v5416_v25 = vadd.f32 %v6673_v16, %v5415_v20 }
0x1add   : > { %v7330_v43 = vpop.f32.mrf.mxu1 }
0x1ade   : > { %v5504_v62 = vsel %vm1043_vm4, %v5486_v35, -inf }
0x1adf   : > { %v9614_v32 = vpop.f32.mrf.mxu1  ;;  %5505 = vmax.xlane.f32.xlu1 %v5504_v62 }
0x1ae1   : > { %v7331_v19 = vpop.f32.mrf.mxu1 }
0x1ae2   : > { %v5477_v19 = vld [vmem:[%s9936_s14 + $0x20] sm:$0xff] }
0x1ae3   : > { %v5364_v12 = vpop.f32.mrf.mxu1 }
0x1ae4   : > { %v5365_v26 = vadd.f32 %v6673_v16, %v5364_v12  ;;  %v5485_v12 = vadd.f32 %v5477_v19, %v5416_v25 }
0x1ae5   : > { %v7342_v22 = vpop.f32.mrf.mxu1 }
0x1ae6   : > { %v5483_v63 = vadd.f32 %v5475_v33, %v5365_v26  ;;  %v5479_v26 = vld [vmem:[%s9936_s14 + $0x30] sm:$0xff] }
0x1ae7   : > { %v5367_v10 = vpop.f32.mrf.mxu1 }
0x1ae8   : > { %v5368_v43 = vadd.f32 %v6674_v55, %v5367_v10  ;;  %v5495_v62 = vsel %vm1043_vm4, %v5483_v63, -inf }
0x1ae9   : > { %5496 = vmax.xlane.f32.xlu0 %v5495_v62  ;;  %v7343_v54 = vpop.f32.mrf.mxu1 }
0x1aea   : > { %v5484_v14 = vadd.f32 %v5476_v57, %v5368_v43  ;;  %v5501_v54 = vsel %vm1043_vm4, %v5485_v12, -inf }
0x1aeb   : > { %v5466_v6 = vpop.f32.mrf.mxu1 }
0x1aec   : > { %v5467_v22 = vadd.f32 %v6673_v16, %v5466_v6  ;;  %v5498_v33 = vsel %vm1043_vm4, %v5484_v14, -inf }
0x1aed   : > { %5499 = vmax.xlane.f32.xlu0 %v5498_v33  ;;  %v7354_v20 = vpop.f32.mrf.mxu1 }
0x1aee   : > { %v5487_v8 = vadd.f32 %v5479_v26, %v5467_v22 }
0x1aef   : > { %v5469_v10 = vpop.f32.mrf.mxu1 }
0x1af0   : > { %v5470_v62 = vadd.f32 %v6674_v55, %v5469_v10  ;;  %v5507_v6 = vsel %vm1043_vm4, %v5487_v8, -inf }
0x1af1   : > { %5502 = vmax.xlane.f32.xlu0 %v5501_v54  ;;  %v7355_v57 = vpop.f32.mrf.mxu1 }
0x1af2   : > { %v5488_v16 = vadd.f32 %v5480_v60, %v5470_v62 }
0x1af4   : > { %v5510_v25 = vsel %vm1043_vm4, %v5488_v16, -inf }
0x1af5   : > { %5508 = vmax.xlane.f32.xlu0 %v5507_v6  ;;  %5511 = vmax.xlane.f32.xlu1 %v5510_v25 }
0x1b3e   : > { %v5491_v43 = vpop.xlane.xlu0 %5490 }
0x1b3f   : > { %v5513_v19 = vsub.f32 %v5481_v7, %v5491_v43 }
0x1b41   : > { %v5521_v33 = vmul.f32 1.442695, %v5513_v19 }
0x1b42   : > { %v5494_v20 = vpop.xlane.xlu1 %5493 }
0x1b43   : > { %7811 = vpow2.f32 %v5521_v33  ;;  %v5514_v58 = vsub.f32 %v5482_v48, %v5494_v20 }
0x1b45   : > { %v5523_v29 = vmul.f32 1.442695, %v5514_v58 }
0x1b47   : > { %7813 = vpow2.f32 %v5523_v29 }
0x1b50   : > { %v9638_v55 = vpop.eup %7811 }
0x1b51   : > { %v5537_v22 = vsel %vm1043_vm4, %v9638_v55, 0.0 }
0x1b52   : > { %5538 = vadd.xlane.f32.xlu0 %v5537_v22 }
0x1b54   : > { %v9642_v60 = vpop.eup %7813 }
0x1b55   : > { %v5540_v26 = vsel %vm1043_vm4, %v9642_v60, 0.0 }
0x1b56   : > { %5541 = vadd.xlane.f32.xlu1 %v5540_v26 }
0x1b68   : > { %v5506_v10 = vpop.xlane.xlu1 %5505 }
0x1b69   : > { %v5518_v54 = vsub.f32 %v5486_v35, %v5506_v10 }
0x1b6b   : > { %v5531_v29 = vmul.f32 1.442695, %v5518_v54 }
0x1b72   : > { %v5497_v7 = vpop.xlane.xlu0 %5496 }
0x1b73   : > { %v5515_v62 = vsub.f32 %v5483_v63, %v5497_v7 }
0x1b75   : > { %v5525_v57 = vmul.f32 1.442695, %v5515_v62 }
0x1b76   : > { %v5500_v48 = vpop.xlane.xlu0 %5499 }
0x1b77   : > { %7815 = vpow2.f32 %v5525_v57  ;;  %v5516_v58 = vsub.f32 %v5484_v14, %v5500_v48 }
0x1b79   : > { %v5527_v6 = vmul.f32 1.442695, %v5516_v58 }
0x1b7a   : > { %v5503_v25 = vpop.xlane.xlu0 %5502 }
0x1b7b   : > { %7817 = vpow2.f32 %v5527_v6  ;;  %v5517_v43 = vsub.f32 %v5485_v12, %v5503_v25 }
0x1b7c   : > { %7819 = vpow2.f32 %v5531_v29 }
0x1b7d   : > { %v5529_v19 = vmul.f32 1.442695, %v5517_v43 }
0x1b7e   : > { %v5509_v33 = vpop.xlane.xlu0 %5508  ;;  %v5512_v57 = vpop.xlane.xlu1 %5511 }
0x1b7f   : > { %7821 = vpow2.f32 %v5529_v19  ;;  %v5519_v20 = vsub.f32 %v5487_v8, %v5509_v33  ;;  %v5520_v48 = vsub.f32 %v5488_v16, %v5512_v57 }
0x1b81   : > { %v5533_v22 = vmul.f32 1.442695, %v5519_v20  ;;  %v5535_v58 = vmul.f32 1.442695, %v5520_v48 }
0x1b83   : > { %7823 = vpow2.f32 %v5533_v22 }
0x1b84   : > { %v7816_v26 = vpop.eup %7815  ;;  %7825 = vpow2.f32 %v5535_v58 }
0x1b85   : > { %v5543_v63 = vsel %vm1043_vm4, %v7816_v26, 0.0 }
0x1b86   : > { %5544 = vadd.xlane.f32.xlu0 %v5543_v63 }
0x1b88   : > { %v7818_v35 = vpop.eup %7817 }
0x1b89   : > { %v5546_v10 = vsel %vm1043_vm4, %v7818_v35, 0.0  ;;  %v9648_v14 = vpop.eup %7819 }
0x1b8a   : > { %5547 = vadd.xlane.f32.xlu1 %v5546_v10  ;;  %v5552_v62 = vsel %vm1043_vm4, %v9648_v14, 0.0 }
0x1b8c   : > { %v7822_v7 = vpop.eup %7821 }
0x1b8d   : > { %v5549_v12 = vsel %vm1043_vm4, %v7822_v7, 0.0 }
0x1b8e   : > { %5550 = vadd.xlane.f32.xlu0 %v5549_v12  ;;  %5553 = vadd.xlane.f32.xlu1 %v5552_v62  ;;  %v7512_v62 = vld [vmem:[#allocation4 + $0x10] sm:$0xff]  }
0x1b90   : > { %v9653_v8 = vpop.eup %7823 }
0x1b91   : > { %v5555_v54 = vsel %vm1043_vm4, %v9653_v8, 0.0 }
0x1b92   : > { %5556 = vadd.xlane.f32.xlu0 %v5555_v54 }
0x1b9f   : > { %5628 = vrot.lane.b32.xlu1 %v9114_v13, %s9964_s26  ;;  %v7826_v13 = vpop.eup %7825 }
0x1ba3   : > { %5675 = vrot.lane.b32.xlu1 %v9122_v38, %s9964_s26  ;;  %v9967_v38 = vpack.c.bf16 %v9584_v37, %v9582_v45 }
0x1ba8   : > { %5581 = vrot.lane.b32.xlu0 %v9116_v24, %s9964_s26  ;;  %v5558_v24 = vsel %vm1043_vm4, %v7826_v13, 0.0 }
0x1bac   : > { %5777 = vrot.lane.b32.xlu0 %v4761_v5, %s9965_s21 }
0x1bb0   : > { %5789 = vrot.lane.b32.xlu0 %v5265_v30, %s9966_s29 }
0x1bb4   : > { %5781 = vrot.lane.b32.xlu0 %v4763_v41, %s9965_s21 }
0x1bc7   : > { %5559 = vadd.xlane.f32.xlu1 %v5558_v24 }
0x1bd8   : > { %5722 = vrot.lane.b32.xlu1 %v9126_v53, %s9964_s26 }
0x1bdb   : > { %v5539_v5 = vpop.xlane.xlu0 %5538 }
0x1bdc   : > { %5779 = vrot.lane.b32.xlu1 %v4762_v39, %s9965_s21 }
0x1bdf   : > { %v5542_v61 = vpop.xlane.xlu1 %5541 }
0x1be0   : > { %5791 = vrot.lane.b32.xlu1 %v9967_v38, %s9966_s29  ;;  %7827 = vrcp.f32 %v5542_v61 }
0x1be1   : > { %7829 = vrcp.f32 %v5539_v5 }
0x1be4   : > { %5783 = vrot.lane.b32.xlu1 %v9968_v11, %s9965_s21  ;;  %s9977_s21 = sshll.u32 %s9979_s19, 6 }
0x1be5   : > { %s553_s24 = scalar_lea.vmem %s9937_s15, %s9977_s21 }
0x1bed   : > { %v7828_v39 = vpop.eup %7827 }
0x1bee   : > { %v7830_v0 = vpop.eup %7829  ;;  %v5570_v44 = vmul.f32 %v7828_v39, %v9642_v60  ;;  %v9972_v39 = vpack.c.bf16 %v9614_v32, %v9611_v34 }
0x1bef   : > { %v5569_v30 = vmul.f32 %v7830_v0, %v9638_v55 }
0x1bf1   : > { %v5577_v16 = vpack.c.bf16 %v5570_v44, %v5569_v30 }
0x1c0f   : > { %v5545_v53 = vpop.xlane.xlu0 %5544 }
0x1c10   : > { %7831 = vrcp.f32 %v5545_v53 }
0x1c13   : > { %v5548_v59 = vpop.xlane.xlu1 %5547 }
0x1c14   : > { %7833 = vrcp.f32 %v5548_v59  ;;  %v9971_v59 = vpack.c.bf16 %v9590_v2, %v9588_v31 }
0x1c17   : > { %v5551_v23 = vpop.xlane.xlu0 %5550  ;;  %v5554_v1 = vpop.xlane.xlu1 %5553 }
0x1c18   : > { %7835 = vrcp.f32 %v5551_v23 }
0x1c19   : > { %7837 = vrcp.f32 %v5554_v1 }
0x1c1b   : > { %v5557_v21 = vpop.xlane.xlu0 %5556  ;;  %v5629_v41 = vpop.permute.xlu1 %5628 }
0x1c1c   : > { %7363 = vmatpush3.bf16.msra.mxu1 %v5629_v41  ;;  %7839 = vrcp.f32 %v5557_v21 }
0x1c1d   : > { %7374 = vmatprep.subr.bf16.mxu1 %v9969_v27  ;;  %v7832_v36 = vpop.eup %7831 }
0x1c1e   : > { %v5571_v29 = vmul.f32 %v7832_v36, %v7816_v26 }
0x1c1f   : > { %v5582_v45 = vpop.permute.xlu0 %5581  ;;  %v5676_v25 = vpop.permute.xlu1 %5675 }
0x1c20   : > { %7357 = vmatpush3.bf16.msra.mxu0 %v5582_v45 }
0x1c21   : > { %v7834_v37 = vpop.eup %7833  ;;  %7368 = vmatprep.subr.bf16.mxu0 %v9969_v27 }
0x1c22   : > { %v5572_v6 = vmul.f32 %v7834_v37, %v7818_v35 }
0x1c23   : > { %7359 = vmatmul.mubr.msk.bf16.vlgmr.msra.gmra.mxu0 %vm1043_vm4, %v5577_v16  ;;  %v5778_v30 = vpop.permute.xlu0 %5777  ;;  %v9973_v16 = vpack.c.bf16 %v9302_v52, %v9300_v18 }
0x1c24   : > { %v5578_v43 = vpack.c.bf16 %v5572_v6, %v5571_v29  ;;  %7369 = vmatpush3.bf16.msra.mxu0 %v5676_v25  ;;  %7370 = vmatprep.mubr.msk.bf16.mxu0 %vm8014_vm2, %v9969_v27 }
0x1c25   : > { %v7836_v60 = vpop.eup %7835  ;;  %v5811_v34 = vsel %vm845_vm3, %v9973_v16, %v5778_v30 }
0x1c26   : > { %v7838_v19 = vpop.eup %7837  ;;  %v5573_v33 = vmul.f32 %v7836_v60, %v7822_v7  ;;  %7365 = vmatmul.mubr.msk.bf16.vlgmr.msra.gmra.mxu1 %vm1043_vm4, %v5578_v43  ;;  %v9974_v43 = vpack.c.bf16 %v9308_v47, %v9306_v46 }
0x1c27   : > { %v5574_v55 = vmul.f32 %v7838_v19, %v9648_v14  ;;  %7376 = vmatprep.mubr.msk.bf16.mxu1 %vm8014_vm2, %v9969_v27  ;;  %v7511_v14 = vld [vmem:[#allocation4 + $0x18] sm:$0xff]   ;;  %v5790_v2 = vpop.permute.xlu0 %5789 }
0x1c28   : > { %7380 = vmatprep.subr.bf16.mxu0 %v7511_v14  ;;  %v5822_v29 = vsel %vm1043_vm4, %v5811_v34, %v5790_v2 }
0x1c29   : > { %v5579_v20 = vpack.c.bf16 %v5574_v55, %v5573_v33  ;;  %v7840_v63 = vpop.eup %7839  ;;  %v9975_v55 = vpack.c.bf16 %v9314_v15, %v9312_v40 }
0x1c2a   : > { %v5575_v10 = vmul.f32 %v7840_v63, %v9653_v8  ;;  %v9976_v63 = vpack.c.bf16 %v9335_v49, %v9328_v9 }
0x1c2b   : > { %7371 = vmatmul.mubr.msk.bf16.vlgmr.msra.gmra.mxu0 %vm1043_vm4, %v5579_v20  ;;  %v5782_v37 = vpop.permute.xlu0 %5781 }
0x1c2c   : > { %7381 = vmatpush3.bf16.msra.mxu0 %v7511_v14  ;;  %v5817_v20 = vsel %vm845_vm3, %v9975_v55, %v5782_v37 }
0x1c2d   : > { %7382 = vmatprep.subr.bf16.mxu0 %v7512_v62 }
0x1c30   : > { %7383 = vmatpush3.bf16.msra.mxu0 %v7512_v62 }
0x1c50   : > { %v5560_v22 = vpop.xlane.xlu1 %5559 }
0x1c51   : > { %7841 = vrcp.f32 %v5560_v22 }
0x1c54   : > { %v5723_v26 = vpop.permute.xlu1 %5722 }
0x1c55   : > { %7375 = vmatpush3.bf16.msra.mxu1 %v5723_v26 }
0x1c58   : > { %v5780_v31 = vpop.permute.xlu1 %5779 }
0x1c59   : > { %v5814_v60 = vsel %vm845_vm3, %v9974_v43, %v5780_v31 }
0x1c5c   : > { %v5792_v45 = vpop.permute.xlu1 %5791 }
0x1c5d   : > { %v5824_v19 = vsel %vm1043_vm4, %v5814_v60, %v5792_v45 }
0x1c5e   : > { %v7842_v35 = vpop.eup %7841 }
0x1c5f   : > { %v5576_v7 = vmul.f32 %v7842_v35, %v7826_v13 }
0x1c60   : > { %v5784_v32 = vpop.permute.xlu1 %5783 }
0x1c61   : > { %v5580_v12 = vpack.c.bf16 %v5576_v7, %v5575_v10  ;;  %v5820_v35 = vsel %vm845_vm3, %v9976_v63, %v5784_v32 }
0x1c63   : > { %7377 = vmatmul.mubr.msk.bf16.vlgmr.msra.gmra.mxu1 %vm1043_vm4, %v5580_v12 }
0x1ce3   : > { %v5621_v54 = vpop.f32.mrf.mxu0 }
0x1ce5   : > { %v7360_v57 = vpop.f32.mrf.mxu0 }
0x1ce6   : > { %v5668_v48 = vpop.f32.mrf.mxu1 }
0x1ce7   : > { %v5624_v58 = vpop.f32.mrf.mxu0 }
0x1ce8   : > { %v5769_v24 = vpack.c.bf16 %v5624_v58, %v5621_v54  ;;  %v7366_v38 = vpop.f32.mrf.mxu1 }
0x1ce9   : > { %v7361_v11 = vpop.f32.mrf.mxu0 }
0x1cea   : > { %5801 = vrot.lane.b32.xlu0 %v5769_v24, %s9970_s23  ;;  %v5671_v8 = vpop.f32.mrf.mxu1 }
0x1ceb   : > { %v5770_v13 = vpack.c.bf16 %v5671_v8, %v5668_v48  ;;  %v5715_v61 = vpop.f32.mrf.mxu0 }
0x1cec   : > { %v7367_v5 = vpop.f32.mrf.mxu1 }
0x1ced   : > { %5803 = vrot.lane.b32.xlu1 %v5770_v13, %s9970_s23  ;;  %v7372_v53 = vpop.f32.mrf.mxu0 }
0x1cee   : > { %5793 = vrot.lane.b32.xlu0 %v9971_v59, %s9966_s29 }
0x1cef   : > { %v5718_v23 = vpop.f32.mrf.mxu0 }
0x1cf0   : > { %v5771_v1 = vpack.c.bf16 %v5718_v23, %v5715_v61 }
0x1cf1   : > { %5795 = vrot.lane.b32.xlu1 %v9972_v39, %s9966_s29  ;;  %v7373_v21 = vpop.f32.mrf.mxu0 }
0x1cf2   : > { %5805 = vrot.lane.b32.xlu0 %v5771_v1, %s9970_s23 }
0x1d23   : > { %v5762_v41 = vpop.f32.mrf.mxu1 }
0x1d25   : > { %v7378_v0 = vpop.f32.mrf.mxu1 }
0x1d27   : > { %v5765_v44 = vpop.f32.mrf.mxu1 }
0x1d28   : > { %v5772_v27 = vpack.c.bf16 %v5765_v44, %v5762_v41 }
0x1d29   : > { %v7379_v36 = vpop.f32.mrf.mxu1 }
0x1d2a   : > { %5807 = vrot.lane.b32.xlu1 %v5772_v27, %s9970_s23 }
0x1d5c   : > { %v5802_v6 = vpop.permute.xlu0 %5801 }
0x1d5d   : > { %v5830_v25 = vsel %vm2848_vm5, %v5822_v29, %v5802_v6 }
0x1d5e   : > { %7384 = vmatprep.mubr.msk.bf16.mxu0 %vm563_vm0, %v5830_v25 }
0x1d5f   : > { %v5804_v33 = vpop.permute.xlu1 %5803 }
0x1d60   : > { %v5832_v18 = vsel %vm2848_vm5, %v5824_v19, %v5804_v33  ;;  %v5794_v52 = vpop.permute.xlu0 %5793  ;;  %v6713_v19 = vld [vmem:[%s9928_s6 + $0x1] ss:$0 sm:$0xff] }
0x1d61   : > { %7385 = vmatmul.mubr.msk.bf16.vlgmr.msra.gmra.mxu0 %vm563_vm0, %v5832_v18  ;;  %v5826_v22 = vsel %vm1043_vm4, %v5817_v20, %v5794_v52 }
0x1d63   : > { %v5796_v26 = vpop.permute.xlu1 %5795 }
0x1d64   : > { %v5806_v46 = vpop.permute.xlu0 %5805  ;;  %v5828_v10 = vsel %vm1043_vm4, %v5820_v35, %v5796_v26 }
0x1d65   : > { %v5834_v47 = vsel %vm2848_vm5, %v5826_v22, %v5806_v46 }
0x1d66   : > { %7388 = vmatprep.mubr.msk.bf16.mxu0 %vm563_vm0, %v5834_v47 }
0x1d9c   : > { %v5808_v7 = vpop.permute.xlu1 %5807 }
0x1d9d   : > { %v5836_v40 = vsel %vm2848_vm5, %v5828_v10, %v5808_v7 }
0x1d9e   : > { %7389 = vmatmul.mubr.msk.bf16.gmra.mxu0 %vm563_vm0, %v5836_v40 }
0x1e21   : > { %v7386_v15 = vpop.f32.mrf.mxu0 }
0x1e22   : > { %v5938_v58 = vrot.slane %v7386_v15, 2  ;;  %v5943_v1 = vrot.slane %v7386_v15, 6 }
0x1e23   : > { %v5896_v12 = vpop.f32.mrf.mxu0 }
0x1e24   : > { %v5941_v57 = vrot.slane %v5896_v12, 6  ;;  %v5945_v61 = vrot.slane %v5896_v12, 2 }
0x1e25   : > { %v7387_v14 = vpop.f32.mrf.mxu0 }
0x1e26   : > { %v5959_v38 = vsel %vm3621_vm7, %v5938_v58, %v5941_v57  ;;  %v5953_v21 = vrot.slane %v7387_v14, 6  ;;  %v5961_v30 = vsel %vm3621_vm7, %v5943_v1, %v5945_v61  ;;  %v5948_v32 = vrot.slane %v7387_v14, 2 }
0x1e27   : > { %v5899_v62 = vpop.f32.mrf.mxu0  ;;  %v5960_v39 = vsel %vm3624_vm6, %v5959_v38, %v5938_v58  ;;  %v5962_v43 = vsel %vm3624_vm6, %v5961_v30, %v5943_v1 }
0x1e28   : > { %v5965_v54 = vrot.slane %v5899_v62, 4  ;;  %v5951_v37 = vrot.slane %v5899_v62, 6  ;;  %v5992_v25 = vadd.f32 %v5960_v39, %v8991_v50 }
0x1e2a   : > { %v5973_v9 = vsel %vm719_vm1, %v5965_v54, %v7387_v14  ;;  %v5963_v55 = vsel %vm3621_vm7, %v5948_v32, %v5951_v37  ;;  %v9771_v50 = vadd.f32 %v6713_v19, %v5992_v25 }
0x1e2b   : > { %v5964_v26 = vsel %vm3624_vm6, %v5963_v55, %v5948_v32  ;;  %v7514_v55 = vld [vmem:[#allocation6 + $0x10] sm:$0xff]  }
0x1e2c   : > { %v5994_v7 = vadd.f32 %v5964_v26, %v9002_v51 }
0x1e2e   : > { %v9796_v12 = vadd.f32 %v6713_v19, %v5994_v7 }
0x1e30   : > { %v6023_v62 = vsel %vm563_vm0, %v9796_v12, 0.0 }
0x1e5e   : > { %v7390_v48 = vpop.f32.mrf.mxu0 }
0x1e5f   : > { %v5968_v24 = vrot.slane %v7390_v48, 4 }
0x1e60   : > { %v5912_v49 = vpop.f32.mrf.mxu0 }
0x1e61   : > { %v5974_v11 = vsel %vm3624_vm6, %v5973_v9, %v5968_v24  ;;  %v5971_v8 = vrot.slane %v5912_v49, 4  ;;  %v5975_v13 = vsel %vm719_vm1, %v5912_v49, %v5968_v24 }
0x1e62   : > { %v5981_v5 = vrot.slane %v5974_v11, 6  ;;  %v7391_v53 = vpop.f32.mrf.mxu0  ;;  %v5976_v59 = vsel %vm3624_vm6, %v5975_v13, %v7390_v48 }
0x1e63   : > { %v5977_v23 = vsel %vm719_vm1, %v5971_v8, %v7390_v48  ;;  %v5928_v0 = vrot.slane %v7391_v53, 2  ;;  %v5933_v44 = vrot.slane %v7391_v53, 6  ;;  %v5982_v31 = vrot.slane %v5976_v59, 6 }
0x1e64   : > { %v5915_v41 = vpop.f32.mrf.mxu0  ;;  %v5984_v2 = vrot.slane %v5977_v23, 6  ;;  %v5989_v45 = vsel %vm3621_vm7, %v5953_v21, %v5981_v5 }
0x1e65   : > { %v5931_v27 = vrot.slane %v5915_v41, 6  ;;  %v5935_v36 = vrot.slane %v5915_v41, 2  ;;  %v5995_v18 = vadd.f32 %v5989_v45, %v9011_v56  ;;  %v5983_v40 = vsel %vm3621_vm7, %v5981_v5, %v5982_v31 }
0x1e66   : > { %v5985_v52 = vsel %vm3621_vm7, %v5982_v31, %v5984_v2  ;;  %v5996_v14 = vadd.f32 %v5983_v40, %v9017_v3 }
0x1e67   : > { %v5955_v16 = vsel %vm3621_vm7, %v5928_v0, %v5931_v27  ;;  %v5957_v34 = vsel %vm3621_vm7, %v5933_v44, %v5935_v36  ;;  %v9778_v47 = vadd.f32 %v6713_v19, %v5995_v18  ;;  %v5997_v56 = vadd.f32 %v5985_v52, %v9022_v4  ;;  %v7513_v52 = vld [vmem:[#allocation6 + $0x18] sm:$0xff]  }
0x1e68   : > { %v5956_v29 = vsel %vm3624_vm6, %v5955_v16, %v5928_v0  ;;  %v5958_v6 = vsel %vm3624_vm6, %v5957_v34, %v5933_v44  ;;  %v9801_v51 = vadd.f32 %v6713_v19, %v5996_v14  ;;  %7392 = vmatprep.subr.bf16.mxu1 %v7513_v52 }
0x1e69   : > { %v5991_v60 = vadd.f32 %v5958_v6, %v9015_v28  ;;  %v5990_v33 = vadd.f32 %v5956_v29, %v9004_v17  ;;  %v5993_v28 = vadd.f32 %v5962_v43, %v8996_v42  ;;  %v6026_v35 = vsel %vm563_vm0, %v9778_v47, 0.0  ;;  %7393 = vmatpush3.bf16.msra.mxu1 %v7513_v52 }
0x1e6a   : > { %v6017_v42 = vsel %vm563_vm0, %v9771_v50, 0.0  ;;  %v9788_v10 = vadd.f32 %v6713_v19, %v5997_v56  ;;  %v6029_v54 = vsel %vm563_vm0, %v9801_v51, 0.0  ;;  %7394 = vmatprep.subr.bf16.mxu1 %v7514_v55 }
0x1e6b   : > { %v9767_v20 = vadd.f32 %v6713_v19, %v5991_v60  ;;  %v9769_v22 = vadd.f32 %v6713_v19, %v5990_v33  ;;  %v9782_v63 = vadd.f32 %v6713_v19, %v5993_v28 }
0x1e6c   : > { %v6032_v4 = vsel %vm563_vm0, %v9788_v10, 0.0 }
0x1e6d   : > { %v6014_v46 = vsel %vm563_vm0, %v9767_v20, 0.0  ;;  %v6011_v17 = vsel %vm563_vm0, %v9769_v22, 0.0  ;;  %v6020_v15 = vsel %vm563_vm0, %v9782_v63, 0.0  ;;  %7395 = vmatpush3.bf16.msra.mxu1 %v7514_v55 }
0x1e6e   : > { %6015 = vadd.xlane.f32.xlu1 %v6014_v46  ;;  %6012 = vadd.xlane.f32.xlu0 %v6011_v17 }
0x1e72   : > { %6027 = vadd.xlane.f32.xlu1 %v6026_v35  ;;  %6018 = vadd.xlane.f32.xlu0 %v6017_v42 }
0x1e76   : > { %6033 = vadd.xlane.f32.xlu1 %v6032_v4  ;;  %6021 = vadd.xlane.f32.xlu0 %v6020_v15 }
0x1e7a   : > { %6024 = vadd.xlane.f32.xlu0 %v6023_v62 }
0x1e7e   : > { %6030 = vadd.xlane.f32.xlu0 %v6029_v54 }
0x1ef7   : > { %v6016_v57 = vpop.xlane.xlu1 %6015  ;;  %v6013_v48 = vpop.xlane.xlu0 %6012 }
0x1ef8   : > { %v6036_v58 = vmul.f32 0.03125, %v6016_v57  ;;  %v6035_v24 = vmul.f32 0.03125, %v6013_v48 }
0x1efa   : > { %v9806_v9 = vsub.f32 %v9767_v20, %v6036_v58  ;;  %v9809_v3 = vsub.f32 %v9769_v22, %v6035_v24 }
0x1efb   : > { %v6028_v49 = vpop.xlane.xlu1 %6027  ;;  %v6019_v38 = vpop.xlane.xlu0 %6018 }
0x1efc   : > { %v6037_v11 = vmul.f32 0.03125, %v6019_v38  ;;  %v6052_v8 = vmul.f32 %v9806_v9, %v9806_v9  ;;  %v6051_v13 = vmul.f32 %v9809_v3, %v9809_v3  ;;  %v6040_v61 = vmul.f32 0.03125, %v6028_v49 }
0x1efe   : > { %v9816_v5 = vsub.f32 %v9771_v50, %v6037_v11  ;;  %v6062_v53 = vsel %vm563_vm0, %v6052_v8, 0.0  ;;  %v6059_v59 = vsel %vm563_vm0, %v6051_v13, 0.0  ;;  %v9823_v41 = vsub.f32 %v9778_v47, %v6040_v61  ;;  %v6714_v61 = vld [vmem:[%s9929_s7 + $0x1] ss:$0 sm:$0xff] }
0x1eff   : > { %6063 = vadd.xlane.f32.xlu1 %v6062_v53  ;;  %v6034_v23 = vpop.xlane.xlu1 %6033  ;;  %6060 = vadd.xlane.f32.xlu0 %v6059_v59  ;;  %v6022_v1 = vpop.xlane.xlu0 %6021 }
0x1f00   : > { %v6038_v39 = vmul.f32 0.03125, %v6022_v1  ;;  %v6053_v21 = vmul.f32 %v9816_v5, %v9816_v5  ;;  %v6042_v0 = vmul.f32 0.03125, %v6034_v23  ;;  %v6056_v16 = vmul.f32 %v9823_v41, %v9823_v41 }
0x1f02   : > { %v9826_v44 = vsub.f32 %v9782_v63, %v6038_v39  ;;  %v6065_v27 = vsel %vm563_vm0, %v6053_v21, 0.0  ;;  %v9832_v2 = vsub.f32 %v9788_v10, %v6042_v0  ;;  %v6074_v25 = vsel %vm563_vm0, %v6056_v16, 0.0  ;;  %v6715_v21 = vld [vmem:[%s9930_s8 + $0x1] ss:$0 sm:$0xff] }
0x1f03   : > { %6066 = vadd.xlane.f32.xlu0 %v6065_v27  ;;  %v6025_v36 = vpop.xlane.xlu0 %6024 }
0x1f04   : > { %v6039_v30 = vmul.f32 0.03125, %v6025_v36  ;;  %v6054_v31 = vmul.f32 %v9826_v44, %v9826_v44  ;;  %v6058_v60 = vmul.f32 %v9832_v2, %v9832_v2 }
0x1f06   : > { %v9835_v45 = vsub.f32 %v9796_v12, %v6039_v30  ;;  %v6068_v37 = vsel %vm563_vm0, %v6054_v31, 0.0  ;;  %v6080_v33 = vsel %vm563_vm0, %v6058_v60, 0.0 }
0x1f07   : > { %6069 = vadd.xlane.f32.xlu1 %v6068_v37  ;;  %v6031_v34 = vpop.xlane.xlu0 %6030 }
0x1f08   : > { %v6041_v32 = vmul.f32 0.03125, %v6031_v34  ;;  %v6055_v29 = vmul.f32 %v9835_v45, %v9835_v45 }
0x1f0a   : > { %v9843_v6 = vsub.f32 %v9801_v51, %v6041_v32  ;;  %v6071_v43 = vsel %vm563_vm0, %v6055_v29, 0.0 }
0x1f0b   : > { %6075 = vadd.xlane.f32.xlu1 %v6074_v25  ;;  %6072 = vadd.xlane.f32.xlu0 %v6071_v43 }
0x1f0c   : > { %v6057_v19 = vmul.f32 %v9843_v6, %v9843_v6 }
0x1f0e   : > { %v6077_v18 = vsel %vm563_vm0, %v6057_v19, 0.0 }
0x1f0f   : > { %6081 = vadd.xlane.f32.xlu1 %v6080_v33  ;;  %6078 = vadd.xlane.f32.xlu0 %v6077_v18 }
0x1f88   : > { %v6064_v28 = vpop.xlane.xlu1 %6063  ;;  %v6061_v46 = vpop.xlane.xlu0 %6060 }
0x1f89   : > { %v6084_v17 = vmul.f32 0.03125, %v6064_v28  ;;  %v6083_v56 = vmul.f32 0.03125, %v6061_v46 }
0x1f8b   : > { %v6092_v26 = vadd.f32 1e-05, %v6084_v17  ;;  %v6091_v35 = vadd.f32 1e-05, %v6083_v56 }
0x1f8c   : > { %v6067_v42 = vpop.xlane.xlu0 %6066 }
0x1f8d   : > { %7843 = vrsqrt.f32 %v6092_v26  ;;  %v6085_v7 = vmul.f32 0.03125, %v6067_v42 }
0x1f8e   : > { %7845 = vrsqrt.f32 %v6091_v35 }
0x1f8f   : > { %v6093_v40 = vadd.f32 1e-05, %v6085_v7 }
0x1f90   : > { %v6070_v4 = vpop.xlane.xlu1 %6069 }
0x1f91   : > { %7847 = vrsqrt.f32 %v6093_v40  ;;  %v6086_v15 = vmul.f32 0.03125, %v6070_v4  ;;  %v7515_v40 = vld [vmem:[#allocation7 + $0x78] sm:$0xff]   ;;  %v7517_v4 = vld [vmem:[#allocation7 + $0x68] sm:$0xff]  }
0x1f92   : > { %7404 = vmatprep.subr.bf16.mxu0 %v7515_v40 }
0x1f93   : > { %v6094_v14 = vadd.f32 1e-05, %v6086_v15  ;;  %7405 = vmatpush3.bf16.msra.mxu0 %v7515_v40  ;;  %v7519_v15 = vld [vmem:[#allocation7 + $0x58] sm:$0xff]  }
0x1f94   : > { %v6076_v62 = vpop.xlane.xlu1 %6075  ;;  %v6073_v54 = vpop.xlane.xlu0 %6072 }
0x1f95   : > { %7849 = vrsqrt.f32 %v6094_v14  ;;  %v6088_v57 = vmul.f32 0.03125, %v6076_v62  ;;  %v6087_v48 = vmul.f32 0.03125, %v6073_v54  ;;  %v7520_v14 = vld [vmem:[#allocation7 + $0x50] sm:$0xff]   ;;  %v7521_v62 = vld [vmem:[#allocation7 + $0x48] sm:$0xff]   ;;  %v7522_v54 = vld [vmem:[#allocation7 + $0x40] sm:$0xff]  }
0x1f97   : > { %v6096_v58 = vadd.f32 1e-05, %v6088_v57  ;;  %v6095_v24 = vadd.f32 1e-05, %v6087_v48  ;;  %v6716_v57 = vld [vmem:[%s9932_s10 + $0x1] ss:$0 sm:$0xff] }
0x1f98   : > { %v6082_v49 = vpop.xlane.xlu1 %6081  ;;  %v6079_v38 = vpop.xlane.xlu0 %6078 }
0x1f99   : > { %7851 = vrsqrt.f32 %v6096_v58  ;;  %v6090_v11 = vmul.f32 0.03125, %v6082_v49  ;;  %v6089_v8 = vmul.f32 0.03125, %v6079_v38 }
0x1f9a   : > { %v7844_v13 = vpop.eup %7843  ;;  %7853 = vrsqrt.f32 %v6095_v24 }
0x1f9b   : > { %v7846_v53 = vpop.eup %7845  ;;  %v6098_v59 = vadd.f32 1e-05, %v6090_v11  ;;  %v6097_v23 = vadd.f32 1e-05, %v6089_v8  ;;  %v6108_v1 = vmul.f32 %v7844_v13, %v9806_v9 }
0x1f9c   : > { %v6107_v39 = vmul.f32 %v7846_v53, %v9809_v3 }
0x1f9d   : > { %7855 = vrsqrt.f32 %v6098_v59  ;;  %v6121_v0 = vmul.f32 %v6714_v61, %v6108_v1 }
0x1f9e   : > { %v7848_v27 = vpop.eup %7847  ;;  %7857 = vrsqrt.f32 %v6097_v23  ;;  %v6120_v36 = vmul.f32 %v6714_v61, %v6107_v39 }
0x1f9f   : > { %v6109_v30 = vmul.f32 %v7848_v27, %v9816_v5  ;;  %v6134_v31 = vadd.f32 %v6715_v21, %v6121_v0 }
0x1fa0   : > { %v6133_v37 = vadd.f32 %v6715_v21, %v6120_v36 }
0x1fa1   : > { %v6122_v32 = vmul.f32 %v6714_v61, %v6109_v30 }
0x1fa2   : > { %v7850_v16 = vpop.eup %7849  ;;  %v6141_v34 = vpack.c.bf16 %v6134_v31, %v6133_v37 }
0x1fa3   : > { %v6110_v9 = vmul.f32 %v7850_v16, %v9826_v44  ;;  %v6135_v43 = vadd.f32 %v6715_v21, %v6122_v32 }
0x1fa4   : > { %7396 = vmatprep.mubr.msk.bf16.mxu1 %vm563_vm0, %v6141_v34 }
0x1fa5   : > { %v6123_v3 = vmul.f32 %v6714_v61, %v6110_v9 }
0x1fa6   : > { %v7852_v29 = vpop.eup %7851 }
0x1fa7   : > { %v7854_v25 = vpop.eup %7853  ;;  %v6136_v60 = vadd.f32 %v6715_v21, %v6123_v3  ;;  %v6112_v19 = vmul.f32 %v7852_v29, %v9823_v41 }
0x1fa8   : > { %v6111_v33 = vmul.f32 %v7854_v25, %v9835_v45 }
0x1fa9   : > { %v6142_v18 = vpack.c.bf16 %v6136_v60, %v6135_v43  ;;  %v6125_v5 = vmul.f32 %v6714_v61, %v6112_v19 }
0x1faa   : > { %v7856_v52 = vpop.eup %7855  ;;  %v6124_v55 = vmul.f32 %v6714_v61, %v6111_v33 }
0x1fab   : > { %v7858_v28 = vpop.eup %7857  ;;  %v6114_v46 = vmul.f32 %v7856_v52, %v9832_v2  ;;  %7397 = vmatmul.mubr.msk.bf16.vlgmr.msra.gmra.mxu1 %vm563_vm0, %v6142_v18  ;;  %v6138_v44 = vadd.f32 %v6715_v21, %v6125_v5  ;;  %v7516_v2 = vld [vmem:[#allocation7 + $0x70] sm:$0xff]  }
0x1fac   : > { %v6113_v17 = vmul.f32 %v7858_v28, %v9843_v6  ;;  %v6137_v56 = vadd.f32 %v6715_v21, %v6124_v55  ;;  %7406 = vmatprep.subr.bf16.mxu0 %v7516_v2  ;;  %v7518_v6 = vld [vmem:[#allocation7 + $0x60] sm:$0xff]  }
0x1fad   : > { %v6127_v26 = vmul.f32 %v6714_v61, %v6114_v46  ;;  %7407 = vmatpush3.bf16.msra.mxu0 %v7516_v2 }
0x1fae   : > { %v6143_v35 = vpack.c.bf16 %v6138_v44, %v6137_v56  ;;  %v6126_v42 = vmul.f32 %v6714_v61, %v6113_v17  ;;  %7408 = vmatprep.subr.bf16.mxu0 %v7517_v4 }
0x1faf   : > { %v6140_v7 = vadd.f32 %v6715_v21, %v6127_v26 }
0x1fb0   : > { %7400 = vmatprep.mubr.msk.bf16.mxu1 %vm563_vm0, %v6143_v35  ;;  %v6139_v41 = vadd.f32 %v6715_v21, %v6126_v42 }
0x1fb1   : > { %7409 = vmatpush3.bf16.msra.mxu0 %v7517_v4 }
0x1fb2   : > { %v6144_v45 = vpack.c.bf16 %v6140_v7, %v6139_v41  ;;  %7410 = vmatprep.subr.bf16.mxu0 %v7518_v6 }
0x1fb4   : > { %7401 = vmatmul.mubr.msk.bf16.gmra.mxu1 %vm563_vm0, %v6144_v45 }
0x1fb5   : > { %7411 = vmatpush3.bf16.msra.mxu0 %v7518_v6 }
0x1fb6   : > { %7412 = vmatprep.subr.bf16.mxu0 %v7519_v15 }
0x1fb9   : > { %7413 = vmatpush3.bf16.msra.mxu0 %v7519_v15 }
0x1fba   : > { %7414 = vmatprep.subr.bf16.mxu0 %v7520_v14 }
0x1fbd   : > { %7415 = vmatpush3.bf16.msra.mxu0 %v7520_v14 }
0x1fbe   : > { %7416 = vmatprep.subr.bf16.mxu0 %v7521_v62 }
0x1fc1   : > { %7417 = vmatpush3.bf16.msra.mxu0 %v7521_v62 }
0x1fc2   : > { %7418 = vmatprep.subr.bf16.mxu0 %v7522_v54 }
0x1fc5   : > { %7419 = vmatpush3.bf16.msra.mxu0 %v7522_v54 }
0x206b   : > { %v7398_v48 = vpop.f32.mrf.mxu1 }
0x206c   : > { %v9874_v58 = vadd.f32 %v7398_v48, %v6716_v57 }
0x206d   : > { %v6213_v24 = vpop.f32.mrf.mxu1 }
0x206e   : > { %v6254_v49 = vmul.f32 0.044715, %v9874_v58  ;;  %v9877_v38 = vadd.f32 %v6716_v57, %v6213_v24 }
0x206f   : > { %v7399_v11 = vpop.f32.mrf.mxu1 }
0x2070   : > { %v6262_v8 = vmul.f32 %v6254_v49, %v9874_v58  ;;  %v6252_v13 = vmul.f32 0.044715, %v9877_v38  ;;  %v6225_v61 = vadd.f32 %v7399_v11, %v6716_v57 }
0x2071   : > { %v6216_v53 = vpop.f32.mrf.mxu1 }
0x2072   : > { %v6270_v59 = vmul.f32 %v6262_v8, %v9874_v58  ;;  %v6260_v23 = vmul.f32 %v6252_v13, %v9877_v38  ;;  %v6255_v1 = vmul.f32 0.044715, %v6225_v61  ;;  %v6217_v39 = vadd.f32 %v6716_v57, %v6216_v53 }
0x2074   : > { %v6278_v21 = vadd.f32 %v6270_v59, %v9874_v58  ;;  %v6268_v0 = vmul.f32 %v6260_v23, %v9877_v38  ;;  %v6263_v27 = vmul.f32 %v6255_v1, %v6225_v61  ;;  %v7402_v36 = vpop.f32.mrf.mxu1  ;;  %v6253_v30 = vmul.f32 0.044715, %v6217_v39 }
0x2075   : > { %v9885_v31 = vadd.f32 %v7402_v36, %v6716_v57  ;;  %v6247_v59 = vmul.f32 0.5, %v6225_v61  ;;  %v6244_v23 = vmul.f32 0.5, %v9877_v38  ;;  %v6245_v1 = vmul.f32 0.5, %v6217_v39 }
0x2076   : > { %v6286_v37 = vmul.f32 0.7978846, %v6278_v21  ;;  %v6271_v16 = vmul.f32 %v6263_v27, %v6225_v61  ;;  %v6229_v34 = vpop.f32.mrf.mxu1  ;;  %v6276_v32 = vadd.f32 %v6268_v0, %v9877_v38  ;;  %v6261_v9 = vmul.f32 %v6253_v30, %v6217_v39 }
0x2077   : > { %v6258_v3 = vmul.f32 0.044715, %v9885_v31  ;;  %v6230_v29 = vadd.f32 %v6716_v57, %v6229_v34  ;;  %v6246_v0 = vmul.f32 0.5, %v9874_v58 }
0x2078   : > { %7859 = vtanh.f32 %v6286_v37  ;;  %v6279_v25 = vadd.f32 %v6271_v16, %v6225_v61  ;;  %v7403_v43 = vpop.f32.mrf.mxu1  ;;  %v6284_v60 = vmul.f32 0.7978846, %v6276_v32  ;;  %v6269_v19 = vmul.f32 %v6261_v9, %v6217_v39 }
0x2079   : > { %v6266_v33 = vmul.f32 %v6258_v3, %v9885_v31  ;;  %v6256_v18 = vmul.f32 0.044715, %v6230_v29  ;;  %v6241_v5 = vadd.f32 %v7403_v43, %v6716_v57  ;;  %v6248_v61 = vmul.f32 0.5, %v6230_v29 }
0x207a   : > { %v6287_v52 = vmul.f32 0.7978846, %v6279_v25  ;;  %v6232_v55 = vpop.f32.mrf.mxu1  ;;  %7861 = vtanh.f32 %v6284_v60  ;;  %v6277_v56 = vadd.f32 %v6269_v19, %v6217_v39 }
0x207b   : > { %v6274_v28 = vmul.f32 %v6266_v33, %v9885_v31  ;;  %v6264_v46 = vmul.f32 %v6256_v18, %v6230_v29  ;;  %v6259_v44 = vmul.f32 0.044715, %v6241_v5  ;;  %v6233_v17 = vadd.f32 %v6716_v57, %v6232_v55 }
0x207c   : > { %7863 = vtanh.f32 %v6287_v52  ;;  %v6285_v41 = vmul.f32 0.7978846, %v6277_v56  ;;  %v6251_v19 = vmul.f32 0.5, %v6241_v5  ;;  %v6250_v52 = vmul.f32 0.5, %v9885_v31 }
0x207d   : > { %v6282_v26 = vadd.f32 %v6274_v28, %v9885_v31  ;;  %v6272_v35 = vmul.f32 %v6264_v46, %v6230_v29  ;;  %v6267_v42 = vmul.f32 %v6259_v44, %v6241_v5  ;;  %v6257_v7 = vmul.f32 0.044715, %v6233_v17 }
0x207e   : > { %7865 = vtanh.f32 %v6285_v41  ;;  %v6249_v38 = vmul.f32 0.5, %v6233_v17 }
0x207f   : > { %v6275_v45 = vmul.f32 %v6267_v42, %v6241_v5  ;;  %v6265_v40 = vmul.f32 %v6257_v7, %v6233_v17  ;;  %v6280_v2 = vadd.f32 %v6272_v35, %v6230_v29  ;;  %v6290_v4 = vmul.f32 0.7978846, %v6282_v26  ;;  %v6731_v29 = vld [vmem:[%s9934_s12 + $0x1] ss:$0 sm:$0xff] }
0x2081   : > { %v6283_v6 = vadd.f32 %v6275_v45, %v6241_v5  ;;  %v6273_v15 = vmul.f32 %v6265_v40, %v6233_v17  ;;  %v6288_v14 = vmul.f32 0.7978846, %v6280_v2 }
0x2083   : > { %v6291_v62 = vmul.f32 0.7978846, %v6283_v6  ;;  %v6281_v54 = vadd.f32 %v6273_v15, %v6233_v17  ;;  %7867 = vtanh.f32 %v6288_v14 }
0x2084   : > { %7869 = vtanh.f32 %v6290_v4 }
0x2085   : > { %v7860_v57 = vpop.eup %7859  ;;  %7871 = vtanh.f32 %v6291_v62  ;;  %v6289_v48 = vmul.f32 0.7978846, %v6281_v54 }
0x2086   : > { %v6302_v53 = vadd.f32 1.0, %v7860_v57 }
0x2087   : > { %v7862_v24 = vpop.eup %7861  ;;  %7873 = vtanh.f32 %v6289_v48 }
0x2088   : > { %v6300_v8 = vadd.f32 1.0, %v7862_v24  ;;  %v6310_v34 = vmul.f32 %v6302_v53, %v6246_v0 }
0x2089   : > { %v7864_v49 = vpop.eup %7863 }
0x208a   : > { %v6303_v11 = vadd.f32 1.0, %v7864_v49  ;;  %v6308_v30 = vmul.f32 %v6300_v8, %v6244_v23 }
0x208b   : > { %v7866_v13 = vpop.eup %7865 }
0x208c   : > { %v6301_v21 = vadd.f32 1.0, %v7866_v13  ;;  %v6311_v27 = vmul.f32 %v6303_v11, %v6247_v59 }
0x208e   : > { %v6309_v37 = vmul.f32 %v6301_v21, %v6245_v1  ;;  %v6317_v3 = vpack.c.bf16 %v6311_v27, %v6310_v34 }
0x2090   : > { %v7868_v36 = vpop.eup %7867  ;;  %v6316_v9 = vpack.c.bf16 %v6309_v37, %v6308_v30 }
0x2091   : > { %v7870_v16 = vpop.eup %7869  ;;  %v6304_v25 = vadd.f32 1.0, %v7868_v36 }
0x2092   : > { %v7872_v32 = vpop.eup %7871  ;;  %7420 = vmatprep.mubr.bf16.mxu0 %v6316_v9  ;;  %v6306_v58 = vadd.f32 1.0, %v7870_v16 }
0x2093   : > { %v6307_v43 = vadd.f32 1.0, %v7872_v32  ;;  %7421 = vmatmul.mubr.bf16.vlgmr.msra.gmra.mxu0 %v6317_v3  ;;  %v6312_v33 = vmul.f32 %v6304_v25, %v6248_v61 }
0x2094   : > { %v7874_v60 = vpop.eup %7873  ;;  %v6314_v46 = vmul.f32 %v6306_v58, %v6250_v52 }
0x2095   : > { %v6305_v39 = vadd.f32 1.0, %v7874_v60  ;;  %v6315_v55 = vmul.f32 %v6307_v43, %v6251_v19 }
0x2097   : > { %v6313_v18 = vmul.f32 %v6305_v39, %v6249_v38  ;;  %v6319_v44 = vpack.c.bf16 %v6315_v55, %v6314_v46 }
0x2099   : > { %v6318_v28 = vpack.c.bf16 %v6313_v18, %v6312_v33 }
0x209b   : > { %7424 = vmatprep.mubr.bf16.mxu0 %v6318_v28 }
0x209c   : > { %7425 = vmatmul.mubr.bf16.gmra.mxu0 %v6319_v44 }
0x2153   : > { %v7422_v56 = vpop.f32.mrf.mxu0 }
0x2154   : > { %v6452_v17 = vadd.f32 %v7422_v56, %v9771_v50 }
0x2155   : > { %v6419_v5 = vpop.f32.mrf.mxu0 }
0x2156   : > { %v6465_v31 = vadd.f32 %v6731_v29, %v6452_v17  ;;  %v6450_v26 = vadd.f32 %v6419_v5, %v9769_v22 }
0x2157   : > { %v7423_v35 = vpop.f32.mrf.mxu0 }
0x2158   : > { %6473 = vst.msk [vmem:[%s553_s24 + $0x10] sm:$0xff] %vm563_vm0, %v6465_v31  ;;  %v6463_v42 = vadd.f32 %v6731_v29, %v6450_v26  ;;  %v6453_v7 = vadd.f32 %v7423_v35, %v9782_v63 }
0x2159   : > { %v6422_v41 = vpop.f32.mrf.mxu0 }
0x215a   : > { %6471 = vst.msk [vmem:[%s553_s24] sm:$0xff] %vm563_vm0, %v6463_v42  ;;  %v6466_v45 = vadd.f32 %v6731_v29, %v6453_v7  ;;  %v6451_v50 = vadd.f32 %v6422_v41, %v9767_v20 }
0x215c   : > { %v7426_v40 = vpop.f32.mrf.mxu0  ;;  %6474 = vst.msk [vmem:[%s553_s24 + $0x18] sm:$0xff] %vm563_vm0, %v6466_v45  ;;  %v6464_v2 = vadd.f32 %v6731_v29, %v6451_v50 }
0x215d   : > { %v6456_v4 = vadd.f32 %v7426_v40, %v9801_v51 }
0x215e   : > { %v6435_v6 = vpop.f32.mrf.mxu0  ;;  %6472 = vst.msk [vmem:[%s553_s24 + $0x8] sm:$0xff] %vm563_vm0, %v6464_v2 }
0x215f   : > { %v6469_v22 = vadd.f32 %v6731_v29, %v6456_v4  ;;  %v6454_v15 = vadd.f32 %v6435_v6, %v9796_v12 }
0x2160   : > { %v7427_v14 = vpop.f32.mrf.mxu0 }
0x2161   : > { %6477 = vst.msk [vmem:[%s553_s24 + $0x30] sm:$0xff] %vm563_vm0, %v6469_v22  ;;  %v6467_v63 = vadd.f32 %v6731_v29, %v6454_v15  ;;  %v6457_v62 = vadd.f32 %v7427_v14, %v9788_v10 }
0x2162   : > { %v6438_v54 = vpop.f32.mrf.mxu0 }
0x2163   : > { %6475 = vst.msk [vmem:[%s553_s24 + $0x20] sm:$0xff] %vm563_vm0, %v6467_v63  ;;  %v6470_v20 = vadd.f32 %v6731_v29, %v6457_v62  ;;  %v6455_v57 = vadd.f32 %v6438_v54, %v9778_v47 }
0x2165   : > { %6478 = vst.msk [vmem:[%s553_s24 + $0x38] sm:$0xff] %vm563_vm0, %v6470_v20  ;;  %v6468_v51 = vadd.f32 %v6731_v29, %v6455_v57 }
0x2167   : > { %6476 = vst.msk [vmem:[%s553_s24 + $0x28] sm:$0xff] %vm563_vm0, %v6468_v51 }
0x2168 PF: > { %s28_s18 = sadd.s32 1, %s8005_s18  }
0x2169   : > { %p25_p2 = scmp.ge.s32.totalorder %s28_s18, 4  }
0x216b   :  { %27 = sbr.rel (!%p25_p2) target bundleno = 3 (0x3), region = 132 }
0x2170   :  { %6500 = vsyncpa [#allocation3], 1 }
0x2171   :  { %6502 = vsyncpa [#allocation3 + $0x1], 1 }
0x2172   :  { %6503 = vsyncpa [#allocation5], 1 }
0x2173   :  { %6504 = vsyncpa [#allocation8], 1 }

</bundles_post_ra>
